<compile_context>
chip_gen: v6e
topology: v6e:2x2x1
jax: 0.10.0
libtpu: 0.0.40
codegen_flags: <defaults>
</compile_context>

<pallas_src>
import jax
import jax.numpy as jnp
from jax import lax
from jax.experimental import pallas as pl
from jax.experimental.pallas import tpu as pltpu

EPS = 1e-5   # PyTorch BatchNorm2d default
LANE = 128   # TPU lane width


# ----------------------------------------------------------------------------
# small helpers
# ----------------------------------------------------------------------------
def _round_up(x, m):
    return ((x + m - 1) // m) * m


def _pad_last(a, target):
    pad = target - a.shape[-1]
    if pad == 0:
        return a
    return jnp.pad(a, [(0, 0)] * (a.ndim - 1) + [(0, pad)])


def _pad_2d(w, rows, cols):
    pr, pc = rows - w.shape[0], cols - w.shape[1]
    if pr == 0 and pc == 0:
        return w
    return jnp.pad(w, ((0, pr), (0, pc)))


def fold_bn(gamma, beta, mean, var):
    scale = gamma / jnp.sqrt(var + EPS)
    shift = beta - mean * scale
    return scale, shift


def _pick_row_tile(H, W, wp, ce_p, budget_bytes=6 << 20):
    """Largest row tile dividing H whose f32 intermediates fit the budget."""
    best = 1
    for th in range(1, H + 1):
        if H % th:
            continue
        rows = th + 2
        t_f32 = 4 * rows * W * wp * 4        # conv1 output + 3 shifted copies
        acc_f32 = th * W * wp * 4            # depthwise accumulator
        u_bf = th * W * wp * 2               # pointwise output (bf16)
        y_f32 = th * W * ce_p * 4            # conv3 accumulator
        out_db = 2 * th * W * ce_p * 2       # double-buffered output block
        if t_f32 + acc_f32 + u_bf + y_f32 + out_db <= budget_bytes:
            best = th
    return best


# ----------------------------------------------------------------------------
# fully fused bottleneck kernel: one (batch, row-tile) step does everything
# ----------------------------------------------------------------------------
def _fused_bottleneck_kernel(x_ref, w1_ref, s1_ref, b1_ref,
                             dww_ref, dwb_ref, pww_ref, s2_ref, sh2_ref,
                             w3_ref, s3_ref, b3_ref, o_ref):
    # x_ref : (1, H+2, W, cin_p) bf16   (H-padded by one halo row each side)
    # o_ref : (1, TH, W, ce_p)  bf16
    TH, W, ce_p = o_ref.shape[1], o_ref.shape[2], o_ref.shape[3]
    H = x_ref.shape[1] - 2
    cin_p = x_ref.shape[3]
    wp = w1_ref.shape[1]
    f32 = jnp.float32

    row0 = pl.program_id(1) * TH              # first output row of this tile

    # ---- load the (TH+2)-row input window once (includes the 1-row halo) ---
    xt = x_ref[0, pl.ds(row0, TH + 2), :, :]            # (TH+2, W, cin_p) bf16

    # ---- conv1 (1x1, no bias) + bn1 + relu on the window --------------------
    t = jnp.dot(xt.reshape((TH + 2) * W, cin_p), w1_ref[...],
                preferred_element_type=f32)
    t = jnp.maximum(t * s1_ref[...] + b1_ref[...], 0.0)
    t = t.reshape(TH + 2, W, wp)

    # Zero halo rows outside the image: the depthwise padding is applied AFTER
    # conv1/bn1/relu in the PyTorch module, so those rows must be exact zeros.
    rid = lax.broadcasted_iota(jnp.int32, (TH + 2, W), 0)
    absr = rid + (row0 - 1)                   # original image row index
    valid = ((absr >= 0) & (absr < H)).astype(f32)
    t = t * valid[:, :, None]

    # ---- depthwise 3x3 (+bias) + relu ---------------------------------------
    # Column-shifted variants built once on values (zero-column halo); the row
    # taps below are aligned static leading-dim slices -> no misaligned loads.
    zc = jnp.zeros((TH + 2, 1, wp), f32)
    t_l = jnp.concatenate([zc, t[:, :W - 1, :]], axis=1)   # value at col j-1
    t_r = jnp.concatenate([t[:, 1:, :], zc], axis=1)       # value at col j+1
    cols = (t_l, t, t_r)

    w9 = dww_ref[...]                                       # (9, wp) f32
    acc = jnp.zeros((TH, W, wp), f32)
    for kh in range(3):
        for kw in range(3):
            k = kh * 3 + kw
            tap = w9[k:k + 1, :].reshape(1, 1, wp)
            acc = acc + cols[kw][kh:kh + TH] * tap
    d = jnp.maximum(acc + dwb_ref[...].reshape(1, 1, wp), 0.0)
    d = d.astype(jnp.bfloat16).reshape(TH * W, wp)

    # ---- pointwise 1x1 (+bias folded into shift) + bn2 + relu ---------------
    u = jnp.dot(d, pww_ref[...], preferred_element_type=f32)
    u = jnp.maximum(u * s2_ref[...] + sh2_ref[...], 0.0).astype(jnp.bfloat16)

    # ---- conv3 (1x1, no bias) + bn3 + residual + relu ------------------------
    y = jnp.dot(u, w3_ref[...], preferred_element_type=f32)
    y = y * s3_ref[...] + b3_ref[...]
    iden = xt[1:TH + 1].reshape(TH * W, cin_p).astype(f32)  # center rows of x
    y = jnp.maximum(y + iden, 0.0)
    o_ref[0, :, :, :] = y.reshape(TH, W, ce_p).astype(o_ref.dtype)


# ----------------------------------------------------------------------------
# wrapper
# ----------------------------------------------------------------------------
def bottleneck_forward(x_nchw, p):
    N, Cin, H, W = x_nchw.shape
    width = p["w1"].shape[1]
    cexp = p["w3"].shape[1]
    assert Cin == cexp, "identity shortcut requires in_channels == out_channels*4"

    cin_p = _round_up(Cin, LANE)
    wp = _round_up(width, LANE)
    ce_p = cin_p                                   # == round_up(cexp, LANE)

    # Single layout pass over the input: NCHW->NHWC, 1-row H halo, channel pad
    # to the lane width, bf16 cast (serves as MXU operand AND residual).
    x = jnp.transpose(x_nchw, (0, 2, 3, 1))
    x = jnp.pad(x, ((0, 0), (1, 1), (0, 0), (0, cin_p - Cin))).astype(jnp.bfloat16)

    # Fold eval-mode BN into scale/shift; fold the pointwise bias through bn2.
    s1, b1 = fold_bn(*p["bn1"])
    s2, b2 = fold_bn(*p["bn2"])
    s3, b3 = fold_bn(*p["bn3"])
    sh2 = s2 * p["pw_b"] + b2

    w1 = _pad_2d(p["w1"], cin_p, wp).astype(jnp.bfloat16)
    pww = _pad_2d(p["pw_w"], wp, wp).astype(jnp.bfloat16)
    w3 = _pad_2d(p["w3"], wp, ce_p).astype(jnp.bfloat16)
    dww = _pad_last(p["dw_w"], wp).reshape(9, wp).astype(jnp.float32)
    dwb = _pad_last(p["dw_b"], wp).reshape(1, wp).astype(jnp.float32)

    def vec(v, c):
        return _pad_last(v, c).reshape(1, c).astype(jnp.float32)

    s1p, b1p = vec(s1, wp), vec(b1, wp)
    s2p, sh2p = vec(s2, wp), vec(sh2, wp)
    s3p, b3p = vec(s3, ce_p), vec(b3, ce_p)

    th = _pick_row_tile(H, W, wp, ce_p)
    grid = (N, H // th)

    M = N * H * W
    flops = 2 * M * (cin_p * wp + wp * wp + wp * ce_p + 9 * wp)
    bytes_accessed = (N * (H + 2) * W * cin_p * 2        # input (bf16)
                      + M * ce_p * 2                     # output (bf16)
                      + 2 * (cin_p * wp + wp * wp + wp * ce_p)   # bf16 weights
                      + 4 * (10 * wp + 6 * wp + 2 * ce_p))       # f32 vectors

    const = lambda n, h: (0, 0)
    out = pl.pallas_call(
        _fused_bottleneck_kernel,
        out_shape=jax.ShapeDtypeStruct((N, H, W, ce_p), jnp.bfloat16),
        grid=grid,
        in_specs=[
            pl.BlockSpec((1, H + 2, W, cin_p), lambda n, h: (n, 0, 0, 0)),
            pl.BlockSpec((cin_p, wp), const),    # w1
            pl.BlockSpec((1, wp), const),        # bn1 scale
            pl.BlockSpec((1, wp), const),        # bn1 shift
            pl.BlockSpec((9, wp), const),        # depthwise taps
            pl.BlockSpec((1, wp), const),        # depthwise bias
            pl.BlockSpec((wp, wp), const),       # pointwise weight
            pl.BlockSpec((1, wp), const),        # bn2 scale
            pl.BlockSpec((1, wp), const),        # bn2 shift (pw bias folded)
            pl.BlockSpec((wp, ce_p), const),     # w3
            pl.BlockSpec((1, ce_p), const),      # bn3 scale
            pl.BlockSpec((1, ce_p), const),      # bn3 shift
        ],
        out_specs=pl.BlockSpec((1, th, W, ce_p), lambda n, h: (n, h, 0, 0)),
        compiler_params=pltpu.CompilerParams(
            dimension_semantics=("parallel", "parallel")),
        cost_estimate=pl.CostEstimate(flops=int(flops), transcendentals=0,
                                      bytes_accessed=int(bytes_accessed)),
    )(x, w1, s1p, b1p, dww, dwb, pww, s2p, sh2p, w3, s3p, b3p)

    out = out[..., :cexp]                               # drop channel padding
    return jnp.transpose(out, (0, 3, 1, 2)).astype(jnp.float32)


# ----------------------------------------------------------------------------
# Pure-JAX reference (same math & precision choices, no Pallas)
# ----------------------------------------------------------------------------
def reference(x_nchw, p):
    bf16, f32 = jnp.bfloat16, jnp.float32
    xb = jnp.transpose(x_nchw, (0, 2, 3, 1)).astype(bf16)
    N, H, W, Cin = xb.shape

    def mm(a, w):
        return jnp.dot(a.astype(bf16), w.astype(bf16), preferred_element_type=f32)

    s1, b1 = fold_bn(*p["bn1"])
    s2, b2 = fold_bn(*p["bn2"])
    s3, b3 = fold_bn(*p["bn3"])

    t = jnp.maximum(mm(xb, p["w1"]) * s1 + b1, 0.0)          # f32
    tp = jnp.pad(t, ((0, 0), (1, 1), (1, 1), (0, 0)))
    d = jnp.zeros(t.shape, f32)
    for kh in range(3):
        for kw in range(3):
            d = d + tp[:, kh:kh + H, kw:kw + W, :] * p["dw_w"][kh, kw]
    d = jnp.maximum(d + p["dw_b"], 0.0).astype(bf16)

    u = jnp.maximum(mm(d, p["pw_w"]) * s2 + (s2 * p["pw_b"] + b2), 0.0).astype(bf16)

    y = mm(u, p["w3"]) * s3 + b3
    y = jnp.maximum(y + xb.astype(f32), 0.0).astype(bf16)
    return jnp.transpose(y.astype(f32), (0, 3, 1, 2))


# ----------------------------------------------------------------------------
def make_params(key, in_channels, out_channels, base_width=64, groups=1):
    width = int(out_channels * (base_width / 64.0)) * groups
    cexp = out_channels * 4
    ks = jax.random.split(key, 16)

    def bn_stats(k, c):
        k1, k2, k3, k4 = jax.random.split(k, 4)
        gamma = 1.0 + 0.1 * jax.random.normal(k1, (c,), jnp.float32)
        beta = 0.1 * jax.random.normal(k2, (c,), jnp.float32)
        mean = 0.1 * jax.random.normal(k3, (c,), jnp.float32)
        var = jax.random.uniform(k4, (c,), jnp.float32, 0.5, 1.5)
        return (gamma, beta, mean, var)

    return {
        "w1": 0.2 * jax.random.normal(ks[0], (in_channels, width), jnp.float32),
        "bn1": bn_stats(ks[1], width),
        "dw_w": 0.2 * jax.random.normal(ks[2], (3, 3, width), jnp.float32),
        "dw_b": 0.1 * jax.random.normal(ks[3], (width,), jnp.float32),
        "pw_w": 0.2 * jax.random.normal(ks[4], (width, width), jnp.float32),
        "pw_b": 0.1 * jax.random.normal(ks[5], (width,), jnp.float32),
        "bn2": bn_stats(ks[6], width),
        "w3": 0.2 * jax.random.normal(ks[7], (width, cexp), jnp.float32),
        "bn3": bn_stats(ks[8], cexp),
    }


if __name__ == "__main__":
    # Bottleneck(in_channels=16, out_channels=4): width=4, expansion output=16,
    # so the identity shortcut (downsample=None) is shape-compatible.
    N, Cin, H, W = 2, 16, 16, 16
    out_channels = 4

    key = jax.random.PRNGKey(0)
    kx, kp = jax.random.split(key)
    x = jax.random.normal(kx, (N, Cin, H, W), jnp.float32)
    params = make_params(kp, Cin, out_channels)

    out = jax.block_until_ready(bottleneck_forward(x, params))
    ref = jax.block_until_ready(reference(x, params))

    assert out.shape == (N, out_channels * 4, H, W)
    assert jnp.allclose(out, ref, rtol=1e-2, atol=1e-2), "mismatch vs reference"

    print("KERNEL_OK")
</pallas_src>

<mosaic_0001>
module attributes {stable_mosaic.version = 11 : i64} {
  func.func @_fused_bottleneck_kernel(%arg0: i32, %arg1: i32, %arg2: memref<1x18x16x128xbf16, #tpu.memory_space<vmem>>, %arg3: memref<128x128xbf16, #tpu.memory_space<vmem>>, %arg4: memref<1x128xf32, #tpu.memory_space<vmem>>, %arg5: memref<1x128xf32, #tpu.memory_space<vmem>>, %arg6: memref<9x128xf32, #tpu.memory_space<vmem>>, %arg7: memref<1x128xf32, #tpu.memory_space<vmem>>, %arg8: memref<128x128xbf16, #tpu.memory_space<vmem>>, %arg9: memref<1x128xf32, #tpu.memory_space<vmem>>, %arg10: memref<1x128xf32, #tpu.memory_space<vmem>>, %arg11: memref<128x128xbf16, #tpu.memory_space<vmem>>, %arg12: memref<1x128xf32, #tpu.memory_space<vmem>>, %arg13: memref<1x128xf32, #tpu.memory_space<vmem>>, %arg14: memref<1x16x16x128xbf16, #tpu.memory_space<vmem>>) attributes {dimension_semantics = [#tpu.dimension_semantics<parallel>, #tpu.dimension_semantics<parallel>], iteration_bounds = array<i64: 2, 1>, scalar_prefetch = 0 : i64, scratch_operands = 0 : i64, tpu.core_type = #tpu.core_type<tc>, window_params = [{transform_indices = @transform_0, window_bounds = array<i64: 1, 18, 16, 128>}, {pipeline_mode = #tpu.pipeline_mode<synchronous>, transform_indices = @transform_1, window_bounds = array<i64: 128, 128>}, {pipeline_mode = #tpu.pipeline_mode<synchronous>, transform_indices = @transform_2, window_bounds = array<i64: 1, 128>}, {pipeline_mode = #tpu.pipeline_mode<synchronous>, transform_indices = @transform_3, window_bounds = array<i64: 1, 128>}, {pipeline_mode = #tpu.pipeline_mode<synchronous>, transform_indices = @transform_4, window_bounds = array<i64: 9, 128>}, {pipeline_mode = #tpu.pipeline_mode<synchronous>, transform_indices = @transform_5, window_bounds = array<i64: 1, 128>}, {pipeline_mode = #tpu.pipeline_mode<synchronous>, transform_indices = @transform_6, window_bounds = array<i64: 128, 128>}, {pipeline_mode = #tpu.pipeline_mode<synchronous>, transform_indices = @transform_7, window_bounds = array<i64: 1, 128>}, {pipeline_mode = #tpu.pipeline_mode<synchronous>, transform_indices = @transform_8, window_bounds = array<i64: 1, 128>}, {pipeline_mode = #tpu.pipeline_mode<synchronous>, transform_indices = @transform_9, window_bounds = array<i64: 128, 128>}, {pipeline_mode = #tpu.pipeline_mode<synchronous>, transform_indices = @transform_10, window_bounds = array<i64: 1, 128>}, {pipeline_mode = #tpu.pipeline_mode<synchronous>, transform_indices = @transform_11, window_bounds = array<i64: 1, 128>}, {transform_indices = @transform_12, window_bounds = array<i64: 1, 16, 16, 128>}]} {
    %c16_i32 = arith.constant 16 : i32
    %0 = arith.muli %arg1, %c16_i32 : i32
    %c0 = arith.constant 0 : index
    %1 = arith.index_cast %0 : i32 to index
    %c0_0 = arith.constant 0 : index
    %c0_1 = arith.constant 0 : index
    %2 = vector.load %arg2[%c0, %1, %c0_0, %c0_1] : memref<1x18x16x128xbf16, #tpu.memory_space<vmem>>, vector<1x18x16x128xbf16>
    %3 = vector.shape_cast %2 : vector<1x18x16x128xbf16> to vector<18x16x128xbf16>
    %4 = vector.shape_cast %3 : vector<18x16x128xbf16> to vector<288x128xbf16>
    %c0_2 = arith.constant 0 : index
    %c0_3 = arith.constant 0 : index
    %5 = vector.load %arg3[%c0_2, %c0_3] : memref<128x128xbf16, #tpu.memory_space<vmem>>, vector<128x128xbf16>
    %cst = arith.constant dense<0.000000e+00> : vector<288x128xf32>
    %6 = tpu.matmul %4, %5, %cst {dimension_numbers = #tpu.dot_dimension_numbers<[1], [0], [0], [1], [0, 0, 1, 1], [], []>} : vector<288x128xbf16>, vector<128x128xbf16>, vector<288x128xf32> -> vector<288x128xf32>
    %c0_4 = arith.constant 0 : index
    %c0_5 = arith.constant 0 : index
    %7 = vector.load %arg4[%c0_4, %c0_5] : memref<1x128xf32, #tpu.memory_space<vmem>>, vector<1x128xf32>
    %8 = vector.broadcast %7 : vector<1x128xf32> to vector<288x128xf32>
    %9 = arith.mulf %6, %8 : vector<288x128xf32>
    %c0_6 = arith.constant 0 : index
    %c0_7 = arith.constant 0 : index
    %10 = vector.load %arg5[%c0_6, %c0_7] : memref<1x128xf32, #tpu.memory_space<vmem>>, vector<1x128xf32>
    %11 = vector.broadcast %10 : vector<1x128xf32> to vector<288x128xf32>
    %12 = arith.addf %9, %11 : vector<288x128xf32>
    %cst_8 = arith.constant 0.000000e+00 : f32
    %13 = vector.broadcast %cst_8 : f32 to vector<288x128xf32>
    %14 = arith.maximumf %12, %13 : vector<288x128xf32>
    %15 = vector.shape_cast %14 : vector<288x128xf32> to vector<18x16x128xf32>
    %16 = tpu.iota {dimensions = array<i32: 0>} : vector<18x16xi32>
    %c1_i32 = arith.constant 1 : i32
    %17 = arith.subi %0, %c1_i32 : i32
    %18 = vector.broadcast %17 : i32 to vector<18x16xi32>
    %19 = arith.addi %16, %18 : vector<18x16xi32>
    %c0_i32 = arith.constant 0 : i32
    %20 = vector.broadcast %c0_i32 : i32 to vector<18x16xi32>
    %21 = arith.cmpi sge, %19, %20 : vector<18x16xi32>
    %c16_i32_9 = arith.constant 16 : i32
    %22 = vector.broadcast %c16_i32_9 : i32 to vector<18x16xi32>
    %23 = arith.cmpi slt, %19, %22 : vector<18x16xi32>
    %24 = arith.andi %21, %23 : vector<18x16xi1>
    %25 = arith.extui %24 : vector<18x16xi1> to vector<18x16xi32>
    %26 = arith.sitofp %25 : vector<18x16xi32> to vector<18x16xf32>
    %27 = vector.shape_cast %26 : vector<18x16xf32> to vector<18x16x1xf32>
    %28 = vector.broadcast %27 : vector<18x16x1xf32> to vector<18x16x128xf32>
    %29 = arith.mulf %15, %28 : vector<18x16x128xf32>
    %cst_10 = arith.constant 0.000000e+00 : f32
    %30 = vector.broadcast %cst_10 : f32 to vector<18x1x128xf32>
    %31 = vector.extract_strided_slice %29 {offsets = [0, 0, 0], sizes = [18, 15, 128], strides = [1, 1, 1]} : vector<18x16x128xf32> to vector<18x15x128xf32>
    %32 = tpu.concatenate %30, %31 in 1 : vector<18x1x128xf32>, vector<18x15x128xf32> -> vector<18x16x128xf32>
    %33 = vector.extract_strided_slice %29 {offsets = [0, 1, 0], sizes = [18, 15, 128], strides = [1, 1, 1]} : vector<18x16x128xf32> to vector<18x15x128xf32>
    %34 = tpu.concatenate %33, %30 in 1 : vector<18x15x128xf32>, vector<18x1x128xf32> -> vector<18x16x128xf32>
    %c0_11 = arith.constant 0 : index
    %c0_12 = arith.constant 0 : index
    %35 = vector.load %arg6[%c0_11, %c0_12] : memref<9x128xf32, #tpu.memory_space<vmem>>, vector<9x128xf32>
    %cst_13 = arith.constant 0.000000e+00 : f32
    %36 = vector.broadcast %cst_13 : f32 to vector<16x16x128xf32>
    %37 = vector.extract_strided_slice %35 {offsets = [0, 0], sizes = [1, 128], strides = [1, 1]} : vector<9x128xf32> to vector<1x128xf32>
    %38 = vector.shape_cast %37 : vector<1x128xf32> to vector<1x1x128xf32>
    %39 = vector.extract_strided_slice %32 {offsets = [0, 0, 0], sizes = [16, 16, 128], strides = [1, 1, 1]} : vector<18x16x128xf32> to vector<16x16x128xf32>
    %40 = vector.broadcast %38 : vector<1x1x128xf32> to vector<16x16x128xf32>
    %41 = arith.mulf %39, %40 : vector<16x16x128xf32>
    %42 = arith.addf %36, %41 : vector<16x16x128xf32>
    %43 = vector.extract_strided_slice %35 {offsets = [1, 0], sizes = [1, 128], strides = [1, 1]} : vector<9x128xf32> to vector<1x128xf32>
    %44 = vector.shape_cast %43 : vector<1x128xf32> to vector<1x1x128xf32>
    %45 = vector.extract_strided_slice %29 {offsets = [0, 0, 0], sizes = [16, 16, 128], strides = [1, 1, 1]} : vector<18x16x128xf32> to vector<16x16x128xf32>
    %46 = vector.broadcast %44 : vector<1x1x128xf32> to vector<16x16x128xf32>
    %47 = arith.mulf %45, %46 : vector<16x16x128xf32>
    %48 = arith.addf %42, %47 : vector<16x16x128xf32>
    %49 = vector.extract_strided_slice %35 {offsets = [2, 0], sizes = [1, 128], strides = [1, 1]} : vector<9x128xf32> to vector<1x128xf32>
    %50 = vector.shape_cast %49 : vector<1x128xf32> to vector<1x1x128xf32>
    %51 = vector.extract_strided_slice %34 {offsets = [0, 0, 0], sizes = [16, 16, 128], strides = [1, 1, 1]} : vector<18x16x128xf32> to vector<16x16x128xf32>
    %52 = vector.broadcast %50 : vector<1x1x128xf32> to vector<16x16x128xf32>
    %53 = arith.mulf %51, %52 : vector<16x16x128xf32>
    %54 = arith.addf %48, %53 : vector<16x16x128xf32>
    %55 = vector.extract_strided_slice %35 {offsets = [3, 0], sizes = [1, 128], strides = [1, 1]} : vector<9x128xf32> to vector<1x128xf32>
    %56 = vector.shape_cast %55 : vector<1x128xf32> to vector<1x1x128xf32>
    %57 = vector.extract_strided_slice %32 {offsets = [1, 0, 0], sizes = [16, 16, 128], strides = [1, 1, 1]} : vector<18x16x128xf32> to vector<16x16x128xf32>
    %58 = vector.broadcast %56 : vector<1x1x128xf32> to vector<16x16x128xf32>
    %59 = arith.mulf %57, %58 : vector<16x16x128xf32>
    %60 = arith.addf %54, %59 : vector<16x16x128xf32>
    %61 = vector.extract_strided_slice %35 {offsets = [4, 0], sizes = [1, 128], strides = [1, 1]} : vector<9x128xf32> to vector<1x128xf32>
    %62 = vector.shape_cast %61 : vector<1x128xf32> to vector<1x1x128xf32>
    %63 = vector.extract_strided_slice %29 {offsets = [1, 0, 0], sizes = [16, 16, 128], strides = [1, 1, 1]} : vector<18x16x128xf32> to vector<16x16x128xf32>
    %64 = vector.broadcast %62 : vector<1x1x128xf32> to vector<16x16x128xf32>
    %65 = arith.mulf %63, %64 : vector<16x16x128xf32>
    %66 = arith.addf %60, %65 : vector<16x16x128xf32>
    %67 = vector.extract_strided_slice %35 {offsets = [5, 0], sizes = [1, 128], strides = [1, 1]} : vector<9x128xf32> to vector<1x128xf32>
    %68 = vector.shape_cast %67 : vector<1x128xf32> to vector<1x1x128xf32>
    %69 = vector.extract_strided_slice %34 {offsets = [1, 0, 0], sizes = [16, 16, 128], strides = [1, 1, 1]} : vector<18x16x128xf32> to vector<16x16x128xf32>
    %70 = vector.broadcast %68 : vector<1x1x128xf32> to vector<16x16x128xf32>
    %71 = arith.mulf %69, %70 : vector<16x16x128xf32>
    %72 = arith.addf %66, %71 : vector<16x16x128xf32>
    %73 = vector.extract_strided_slice %35 {offsets = [6, 0], sizes = [1, 128], strides = [1, 1]} : vector<9x128xf32> to vector<1x128xf32>
    %74 = vector.shape_cast %73 : vector<1x128xf32> to vector<1x1x128xf32>
    %75 = vector.extract_strided_slice %32 {offsets = [2, 0, 0], sizes = [16, 16, 128], strides = [1, 1, 1]} : vector<18x16x128xf32> to vector<16x16x128xf32>
    %76 = vector.broadcast %74 : vector<1x1x128xf32> to vector<16x16x128xf32>
    %77 = arith.mulf %75, %76 : vector<16x16x128xf32>
    %78 = arith.addf %72, %77 : vector<16x16x128xf32>
    %79 = vector.extract_strided_slice %35 {offsets = [7, 0], sizes = [1, 128], strides = [1, 1]} : vector<9x128xf32> to vector<1x128xf32>
    %80 = vector.shape_cast %79 : vector<1x128xf32> to vector<1x1x128xf32>
    %81 = vector.extract_strided_slice %29 {offsets = [2, 0, 0], sizes = [16, 16, 128], strides = [1, 1, 1]} : vector<18x16x128xf32> to vector<16x16x128xf32>
    %82 = vector.broadcast %80 : vector<1x1x128xf32> to vector<16x16x128xf32>
    %83 = arith.mulf %81, %82 : vector<16x16x128xf32>
    %84 = arith.addf %78, %83 : vector<16x16x128xf32>
    %85 = vector.extract_strided_slice %35 {offsets = [8, 0], sizes = [1, 128], strides = [1, 1]} : vector<9x128xf32> to vector<1x128xf32>
    %86 = vector.shape_cast %85 : vector<1x128xf32> to vector<1x1x128xf32>
    %87 = vector.extract_strided_slice %34 {offsets = [2, 0, 0], sizes = [16, 16, 128], strides = [1, 1, 1]} : vector<18x16x128xf32> to vector<16x16x128xf32>
    %88 = vector.broadcast %86 : vector<1x1x128xf32> to vector<16x16x128xf32>
    %89 = arith.mulf %87, %88 : vector<16x16x128xf32>
    %90 = arith.addf %84, %89 : vector<16x16x128xf32>
    %c0_14 = arith.constant 0 : index
    %c0_15 = arith.constant 0 : index
    %91 = vector.load %arg7[%c0_14, %c0_15] : memref<1x128xf32, #tpu.memory_space<vmem>>, vector<1x128xf32>
    %92 = vector.shape_cast %91 : vector<1x128xf32> to vector<1x1x128xf32>
    %93 = vector.broadcast %92 : vector<1x1x128xf32> to vector<16x16x128xf32>
    %94 = arith.addf %90, %93 : vector<16x16x128xf32>
    %cst_16 = arith.constant 0.000000e+00 : f32
    %95 = vector.broadcast %cst_16 : f32 to vector<16x16x128xf32>
    %96 = arith.maximumf %94, %95 : vector<16x16x128xf32>
    %97 = arith.truncf %96 : vector<16x16x128xf32> to vector<16x16x128xbf16>
    %98 = vector.shape_cast %97 : vector<16x16x128xbf16> to vector<256x128xbf16>
    %c0_17 = arith.constant 0 : index
    %c0_18 = arith.constant 0 : index
    %99 = vector.load %arg8[%c0_17, %c0_18] : memref<128x128xbf16, #tpu.memory_space<vmem>>, vector<128x128xbf16>
    %cst_19 = arith.constant dense<0.000000e+00> : vector<256x128xf32>
    %100 = tpu.matmul %98, %99, %cst_19 {dimension_numbers = #tpu.dot_dimension_numbers<[1], [0], [0], [1], [0, 0, 1, 1], [], []>} : vector<256x128xbf16>, vector<128x128xbf16>, vector<256x128xf32> -> vector<256x128xf32>
    %c0_20 = arith.constant 0 : index
    %c0_21 = arith.constant 0 : index
    %101 = vector.load %arg9[%c0_20, %c0_21] : memref<1x128xf32, #tpu.memory_space<vmem>>, vector<1x128xf32>
    %102 = vector.broadcast %101 : vector<1x128xf32> to vector<256x128xf32>
    %103 = arith.mulf %100, %102 : vector<256x128xf32>
    %c0_22 = arith.constant 0 : index
    %c0_23 = arith.constant 0 : index
    %104 = vector.load %arg10[%c0_22, %c0_23] : memref<1x128xf32, #tpu.memory_space<vmem>>, vector<1x128xf32>
    %105 = vector.broadcast %104 : vector<1x128xf32> to vector<256x128xf32>
    %106 = arith.addf %103, %105 : vector<256x128xf32>
    %cst_24 = arith.constant 0.000000e+00 : f32
    %107 = vector.broadcast %cst_24 : f32 to vector<256x128xf32>
    %108 = arith.maximumf %106, %107 : vector<256x128xf32>
    %109 = arith.truncf %108 : vector<256x128xf32> to vector<256x128xbf16>
    %c0_25 = arith.constant 0 : index
    %c0_26 = arith.constant 0 : index
    %110 = vector.load %arg11[%c0_25, %c0_26] : memref<128x128xbf16, #tpu.memory_space<vmem>>, vector<128x128xbf16>
    %cst_27 = arith.constant dense<0.000000e+00> : vector<256x128xf32>
    %111 = tpu.matmul %109, %110, %cst_27 {dimension_numbers = #tpu.dot_dimension_numbers<[1], [0], [0], [1], [0, 0, 1, 1], [], []>} : vector<256x128xbf16>, vector<128x128xbf16>, vector<256x128xf32> -> vector<256x128xf32>
    %c0_28 = arith.constant 0 : index
    %c0_29 = arith.constant 0 : index
    %112 = vector.load %arg12[%c0_28, %c0_29] : memref<1x128xf32, #tpu.memory_space<vmem>>, vector<1x128xf32>
    %113 = vector.broadcast %112 : vector<1x128xf32> to vector<256x128xf32>
    %114 = arith.mulf %111, %113 : vector<256x128xf32>
    %c0_30 = arith.constant 0 : index
    %c0_31 = arith.constant 0 : index
    %115 = vector.load %arg13[%c0_30, %c0_31] : memref<1x128xf32, #tpu.memory_space<vmem>>, vector<1x128xf32>
    %116 = vector.broadcast %115 : vector<1x128xf32> to vector<256x128xf32>
    %117 = arith.addf %114, %116 : vector<256x128xf32>
    %118 = vector.extract_strided_slice %3 {offsets = [1, 0, 0], sizes = [16, 16, 128], strides = [1, 1, 1]} : vector<18x16x128xbf16> to vector<16x16x128xbf16>
    %119 = vector.shape_cast %118 : vector<16x16x128xbf16> to vector<256x128xbf16>
    %120 = arith.extf %119 : vector<256x128xbf16> to vector<256x128xf32>
    %121 = arith.addf %117, %120 : vector<256x128xf32>
    %cst_32 = arith.constant 0.000000e+00 : f32
    %122 = vector.broadcast %cst_32 : f32 to vector<256x128xf32>
    %123 = arith.maximumf %121, %122 : vector<256x128xf32>
    %124 = vector.shape_cast %123 : vector<256x128xf32> to vector<16x16x128xf32>
    %125 = arith.truncf %124 : vector<16x16x128xf32> to vector<16x16x128xbf16>
    %c0_33 = arith.constant 0 : index
    %c0_34 = arith.constant 0 : index
    %c0_35 = arith.constant 0 : index
    %c0_36 = arith.constant 0 : index
    %126 = vector.load %arg14[%c0_33, %c0_34, %c0_35, %c0_36] : memref<1x16x16x128xbf16, #tpu.memory_space<vmem>>, vector<1x16x16x128xbf16>
    %127 = vector.shape_cast %126 : vector<1x16x16x128xbf16> to vector<16x16x128xbf16>
    %128 = vector.shape_cast %125 : vector<16x16x128xbf16> to vector<1x16x16x128xbf16>
    tpu.vector_store %arg14[%c0_33, %c0_34, %c0_35, %c0_36], %128 {strides = array<i32>} : memref<1x16x16x128xbf16, #tpu.memory_space<vmem>>, vector<1x16x16x128xbf16>,
    return
  }
  func.func @transform_0(%arg0: i32, %arg1: i32) -> (i32, i32, i32, i32) {
    %c0_i32 = arith.constant 0 : i32
    %c0_i32_0 = arith.constant 0 : i32
    %c0_i32_1 = arith.constant 0 : i32
    %c0_i32_2 = arith.constant 0 : i32
    return %arg0, %c0_i32, %c0_i32_0, %c0_i32_1 : i32, i32, i32, i32
  }
  func.func @transform_1(%arg0: i32, %arg1: i32) -> (i32, i32) {
    %c0_i32 = arith.constant 0 : i32
    %c0_i32_0 = arith.constant 0 : i32
    %c0_i32_1 = arith.constant 0 : i32
    return %c0_i32, %c0_i32_0 : i32, i32
  }
  func.func @transform_2(%arg0: i32, %arg1: i32) -> (i32, i32) {
    %c0_i32 = arith.constant 0 : i32
    %c0_i32_0 = arith.constant 0 : i32
    %c0_i32_1 = arith.constant 0 : i32
    return %c0_i32, %c0_i32_0 : i32, i32
  }
  func.func @transform_3(%arg0: i32, %arg1: i32) -> (i32, i32) {
    %c0_i32 = arith.constant 0 : i32
    %c0_i32_0 = arith.constant 0 : i32
    %c0_i32_1 = arith.constant 0 : i32
    return %c0_i32, %c0_i32_0 : i32, i32
  }
  func.func @transform_4(%arg0: i32, %arg1: i32) -> (i32, i32) {
    %c0_i32 = arith.constant 0 : i32
    %c0_i32_0 = arith.constant 0 : i32
    %c0_i32_1 = arith.constant 0 : i32
    return %c0_i32, %c0_i32_0 : i32, i32
  }
  func.func @transform_5(%arg0: i32, %arg1: i32) -> (i32, i32) {
    %c0_i32 = arith.constant 0 : i32
    %c0_i32_0 = arith.constant 0 : i32
    %c0_i32_1 = arith.constant 0 : i32
    return %c0_i32, %c0_i32_0 : i32, i32
  }
  func.func @transform_6(%arg0: i32, %arg1: i32) -> (i32, i32) {
    %c0_i32 = arith.constant 0 : i32
    %c0_i32_0 = arith.constant 0 : i32
    %c0_i32_1 = arith.constant 0 : i32
    return %c0_i32, %c0_i32_0 : i32, i32
  }
  func.func @transform_7(%arg0: i32, %arg1: i32) -> (i32, i32) {
    %c0_i32 = arith.constant 0 : i32
    %c0_i32_0 = arith.constant 0 : i32
    %c0_i32_1 = arith.constant 0 : i32
    return %c0_i32, %c0_i32_0 : i32, i32
  }
  func.func @transform_8(%arg0: i32, %arg1: i32) -> (i32, i32) {
    %c0_i32 = arith.constant 0 : i32
    %c0_i32_0 = arith.constant 0 : i32
    %c0_i32_1 = arith.constant 0 : i32
    return %c0_i32, %c0_i32_0 : i32, i32
  }
  func.func @transform_9(%arg0: i32, %arg1: i32) -> (i32, i32) {
    %c0_i32 = arith.constant 0 : i32
    %c0_i32_0 = arith.constant 0 : i32
    %c0_i32_1 = arith.constant 0 : i32
    return %c0_i32, %c0_i32_0 : i32, i32
  }
  func.func @transform_10(%arg0: i32, %arg1: i32) -> (i32, i32) {
    %c0_i32 = arith.constant 0 : i32
    %c0_i32_0 = arith.constant 0 : i32
    %c0_i32_1 = arith.constant 0 : i32
    return %c0_i32, %c0_i32_0 : i32, i32
  }
  func.func @transform_11(%arg0: i32, %arg1: i32) -> (i32, i32) {
    %c0_i32 = arith.constant 0 : i32
    %c0_i32_0 = arith.constant 0 : i32
    %c0_i32_1 = arith.constant 0 : i32
    return %c0_i32, %c0_i32_0 : i32, i32
  }
  func.func @transform_12(%arg0: i32, %arg1: i32) -> (i32, i32, i32, i32) {
    %c0_i32 = arith.constant 0 : i32
    %c0_i32_0 = arith.constant 0 : i32
    %c0_i32_1 = arith.constant 0 : i32
    return %arg0, %arg1, %c0_i32, %c0_i32_0 : i32, i32, i32, i32
  }
}

</mosaic_0001>

<bundles_post_ra>
// kernel: tpu_custom_call.1
= control target key start
LH: loop header
LB: loop body
LE: loop exit
PB: predicated region body
PF: predicated region fallthrough
CT: control target
= control target key end

     0   :  { %s5837_s0 = inlined_call_operand.hbm [shape: bf16[2,18,16,128], index: 0, kind: input, shape index: {}]   ;;  %s5838_s1 = inlined_call_operand.hbm [shape: bf16[128,128], index: 1, kind: input, shape index: {}]   ;;  %s5839_s2 = inlined_call_operand.vmem [shape: f32[1,128], index: 2, kind: input, shape index: {}]   ;;  %s5840_s3 = inlined_call_operand.vmem [shape: f32[1,128], index: 3, kind: input, shape index: {}]   ;;  %s5841_s4 = inlined_call_operand.hbm [shape: f32[9,128], index: 4, kind: input, shape index: {}]   ;;  %s5842_s5 = inlined_call_operand.vmem [shape: f32[1,128], index: 5, kind: input, shape index: {}]   ;;  %s5843_s6 = inlined_call_operand.hbm [shape: bf16[128,128], index: 6, kind: input, shape index: {}]   ;;  %s5844_s7 = inlined_call_operand.vmem [shape: f32[1,128], index: 7, kind: input, shape index: {}]   ;;  %s5845_s8 = inlined_call_operand.vmem [shape: f32[1,128], index: 8, kind: input, shape index: {}]   ;;  %s5846_s9 = inlined_call_operand.hbm [shape: bf16[128,128], index: 9, kind: input, shape index: {}]   ;;  %s5847_s10 = inlined_call_operand.vmem [shape: f32[1,128], index: 10, kind: input, shape index: {}]   ;;  %s5848_s11 = inlined_call_operand.vmem [shape: f32[1,128], index: 11, kind: input, shape index: {}]   ;;  %s5849_s12 = inlined_call_operand.hbm [shape: bf16[2,16,16,128], index: 12, kind: output, shape index: {}]  }
   0x1   :  { %5896 = sst [smem:[#allocation60_spill]] %s5838_s1 }
   0x2   :  { %5897 = sst [smem:[#allocation61_spill]] %s5841_s4 }
   0x3   :  { %5898 = sst [smem:[#allocation62_spill]] %s5843_s6 }
   0x4   :  { %5899 = sst [smem:[#allocation63_spill]] %s5846_s9 }
   0x5   :  { %5900 = sst [smem:[#allocation64_spill]] %s5849_s12 }
   0x6   :  { %17 = vsyncpa [#allocation3], 0 }
   0x7   :  { %19 = vsyncpa [#allocation3 + $0x1], 0 }
   0x8   :  { %20 = vsyncpa [#allocation6], 0 }
   0x9   :  { %21 = vsyncpa [#allocation9], 0 }
   0xa   :  { %22 = vsyncpa [#allocation4], 0 }
   0xb   :  { %24 = vsyncpa [#allocation4 + $0x1], 0  ;;  %s4118_s21 = smov 0   ;;  %s4120_s22 = smov 0  }
   0xc   :  { %s4122_s23 = smov 0   ;;  %s4124_s24 = smov 0  }
   0xd   :  { %s4126_s25 = smov 0   ;;  %s4128_s26 = smov 0  }
   0xe LB: > { %5901 = sst [smem:[#allocation16_spill]] %s4017_s21  ;;  %s3155_s27 = sadd.s32 4294967295, %s4037_s26   ;;  %s4037_s26 = sphi %s4128_s26, %s30_s26   ;;  %s4033_s25 = sphi %s4126_s25, %s6099_s25   ;;  %s4029_s24 = sphi %s4124_s24, %s6098_s24   ;;  %s4025_s23 = sphi %s4122_s23, %s6097_s23   ;;  %s4021_s22 = sphi %s4120_s22, %s6096_s22   ;;  %s4017_s21 = sphi %s4118_s21, %s6095_s21  }
   0xf   : > { %5902 = sst [smem:[#allocation17_spill]] %s4029_s24  ;;  %s3156_s28 = sadd.s32 4294967294, %s4037_s26  }
  0x10   : > { %5903 = sst [smem:[#allocation18_spill]] %s4037_s26  ;;  %p62_p0 = scmp.ne.s32.totalorder %s4021_s22, %s4017_s21 }
  0x11   : > { %p4152_p1 = scmp.eq.s32.totalorder %s3155_s27, 0  ;;  %p4156_p2 = scmp.eq.s32.totalorder %s3155_s27, 1 }
  0x12   : > { %p325_p3 = scmp.eq.s32.totalorder %s3156_s28, 1  ;;  %p3157_p5 = scmp.ge.s32.totalorder %s4037_s26, 1 }
  0x13   : > { %p4162_p4 = por %p4152_p1, %p62_p0  ;;  %p332_p7 = scmp.lt.s32.totalorder %s4037_s26, 3 }
  0x14   : > { %p4167_p6 = por %p325_p3, %p62_p0  ;;  %s4039_s16 = smov [#allocation5]  }
  0x15   : > { %p4172_p8 = pnand %p3157_p5, %p332_p7  ;;  %s344_s17 = sshll.u32 %s4039_s16, 4  ;;  %s345_s17 = int_to_ptr.vmem [resolvable:$true] %s344_s17 }
  0x16   : > { %s5907_s14 = scalar_select %p4167_p6, 1, 0 }
  0x17   : > { %p3648_p9 = pneg %p4172_p8  ;;  %s4040_s19 = smov [#allocation8]  }
  0x18   : > { %5908 = sst [smem:[#allocation19_spill]] %s5907_s14  ;;  %s379_s20 = sshll.u32 %s4040_s19, 4  ;;  %s380_s20 = int_to_ptr.vmem [resolvable:$true] %s379_s20 }
  0x19   : > { %p4181_p11 = pnand %p3648_p9, %p4152_p1  ;;  %s4041_s27 = smov [#allocation7]  }
  0x1a   : > { %s363_s28 = sshll.u32 %s4041_s27, 4  ;;  %s3828_s14 = scalar_lea.vmem %s345_s17, 1024  ;;  %s364_s28 = int_to_ptr.vmem [resolvable:$true] %s363_s28 }
  0x1b   : > { %p3819_p12 = pneg %p4181_p11  ;;  %p3829_p13 = scmp.ne.s32.totalorder %s345_s17, %s3828_s14 }
  0x1c   : > { %p3836_p5 = scmp.lt.s32.totalorder %s345_s17, %s345_s17  ;;  %p3837_p7 = scmp.lt.s32.totalorder %s3828_s14, %s3828_s14 }
  0x1d   : > { %p3831_p0 = pnand %p3829_p13, %p3819_p12 }
  0x1e   : > { %p3838_p9 = por %p3837_p7, %p3836_p5 }
  0x1f   : > { %p3832_p3 = pneg %p3831_p0 }
  0x21   : > { %p3839_p10 = pnand %p3838_p9, %p3832_p3 }
  0x23   : > { %3842 = shalt.err (!%p3839_p10)
}
  0x24   : > { %s5853_s16 = smov 64   ;;  %s5855_s19 = smov 4  }
  0x25   : > { %s5911_s1 = sld [smem:[#allocation60_spill]]  ;;  %s3854_s12 = scalar_lea.vmem %s380_s20, 1024 }
  0x26   : > { %p3855_p13 = scmp.ne.s32.totalorder %s380_s20, %s3854_s12  ;;  %p3862_p3 = scmp.lt.s32.totalorder %s380_s20, %s380_s20 }
  0x27   : > { %p3863_p10 = scmp.lt.s32.totalorder %s3854_s12, %s3854_s12 }
  0x28   : > { %p3857_p0 = pnand %p3855_p13, %p3819_p12 }
  0x29   : > { %p3864_p7 = por %p3863_p10, %p3862_p3 }
  0x2a   : > { %p3858_p5 = pneg %p3857_p0 }
  0x2b   : > { %3651 = dma.hbm_to_vmem [thread:$0]  (!%p4181_p11), %s5911_s1, 1024, %s345_s17, [#allocation6], %s5853_s16, %s5853_s16, %s5855_s19  }
  0x2c   : > { %p3865_p9 = pnand %p3864_p7, %p3858_p5 }
  0x2e   : > { %3868 = shalt.err (!%p3865_p9)
}
  0x2f   : > { %s5912_s6 = sld [smem:[#allocation62_spill]]  ;;  %s3880_s21 = scalar_lea.vmem %s364_s28, 256 }
  0x30   : > { %p3881_p6 = scmp.ne.s32.totalorder %s364_s28, %s3880_s21  ;;  %p3888_p3 = scmp.lt.s32.totalorder %s364_s28, %s364_s28 }
  0x31   : > { %p3889_p5 = scmp.lt.s32.totalorder %s3880_s21, %s3880_s21 }
  0x32   : > { %p3883_p13 = pnand %p3881_p6, %p3819_p12 }
  0x33   : > { %p3890_p10 = por %p3889_p5, %p3888_p3 }
  0x34   : > { %p3884_p0 = pneg %p3883_p13 }
  0x35   : > { %3657 = dma.hbm_to_vmem [thread:$0]  (!%p4181_p11), %s5912_s6, 1024, %s380_s20, [#allocation9], %s5853_s16, %s5853_s16, %s5855_s19  }
  0x36   : > { %p3891_p7 = pnand %p3890_p10, %p3884_p0 }
  0x38   : > { %3894 = shalt.err (!%p3891_p7)
}
  0x39   : > { %s4044_s12 = smov 128   ;;  %s4045_s17 = smov 8  }
  0x3a   : > { %s5913_s4 = sld [smem:[#allocation61_spill]]  ;;  %s4046_s20 = smov [#allocation10]  }
  0x3b   : > { %s398_s14 = sshll.u32 %s4046_s20, 4  ;;  %s399_s14 = int_to_ptr.vmem [resolvable:$true] %s398_s14 }
  0x3c   : > { %s3906_s16 = scalar_lea.vmem %s399_s14, 1024  ;;  %p3914_p0 = scmp.lt.s32.totalorder %s399_s14, %s399_s14 }
  0x3d   : > { %p3907_p6 = scmp.ne.s32.totalorder %s399_s14, %s3906_s16  ;;  %p3915_p3 = scmp.lt.s32.totalorder %s3906_s16, %s3906_s16 }
  0x3f   : > { %p3909_p9 = pnand %p3907_p6, %p3819_p12  ;;  %p3916_p5 = por %p3915_p3, %p3914_p0 }
  0x40   : > { %3654 = dma.hbm_to_vmem [thread:$0]  (!%p4181_p11), %s5913_s4, 256, %s364_s28, [#allocation6], %s4044_s12, %s4044_s12, %s4045_s17  }
  0x41   : > { %p3910_p13 = pneg %p3909_p9 }
  0x43   : > { %p3917_p10 = pnand %p3916_p5, %p3910_p13 }
  0x45   : > { %3920 = shalt.err (!%p3917_p10)
}
  0x46   : > { %s5914_s21 = smov 64   ;;  %s5915_s9 = sld [smem:[#allocation63_spill]] }
  0x47   : > { %s42_s16 = sadd.s32 1, %s4033_s25  ;;  %s49_s18 = sadd.s32 1, %s4025_s23 }
  0x48   : > { %p44_p12 = scmp.ge.s32.totalorder %s42_s16, 2  ;;  %p56_p7 = scmp.ne.s32.totalorder %s4025_s23, %s4021_s22 }
  0x49   : > { %p57_p6 = scmp.eq.s32.totalorder %s4037_s26, 0  ;;  %p3673_p9 = scmp.lt.s32.totalorder %s4037_s26, 2 }
  0x4a   : > { %s6101_s16 = smov (%p44_p12, %s42_s16), 0  ;;  %p4238_p0 = por %p4156_p2, %p56_p7 }
  0x4b   : > { %5916 = sst [smem:[#allocation20_spill]] %s6101_s16  ;;  %p58_p13 = por %p57_p6, %p56_p7 }
  0x4c   : > { %3660 = dma.hbm_to_vmem [thread:$0]  (!%p4181_p11), %s5915_s9, 1024, %s399_s14, [#allocation9], %s5914_s21, %s5914_s21, %s5855_s19  }
  0x4d   : > { %s46_s24 = ssub.s32 %s4033_s25, %s6101_s16  ;;  %s418_s27 = sand.u32 1, %s4025_s23  }
  0x4e   : > { %p47_p3 = scmp.eq.s32.totalorder %s46_s24, 0  ;;  %s3625_s20 = smul.u32 144, %s418_s27 }
  0x4f   : > { %p4245_p11 = pnand %p3673_p9, %p58_p13  ;;  %s3626_s12 = smul.u32 2304, %s4033_s25 }
  0x50   : > { %s4250_s28 = scalar_select %p47_p3, %s4025_s23, %s49_s18  }
  0x51   : > { %s422_s19 = scalar_lea.vmem [#allocation2], %s3625_s20  ;;  %s428_s6 = scalar_lea.hbm %s5837_s0, %s3626_s12 }
  0x52   : > { %s429_s1 = sshll.u32 %s422_s19, 4  ;;  %s419_s9 = scalar_lea.sflag [#allocation3], %s418_s27  ;;  %s430_s1 = int_to_ptr.vmem [resolvable:$true] %s429_s1 }
  0x53   : > { %p3923_p2 = pneg %p4245_p11  ;;  %s3934_s24 = scalar_lea.vmem %s430_s1, 2304 }
  0x54   : > { %p3935_p5 = scmp.ne.s32.totalorder %s430_s1, %s3934_s24  ;;  %s4047_s16 = smov [#allocation2]  }
  0x55   : > { %s3939_s26 = sshll.u32 %s4047_s16, 4  ;;  %s3940_s26 = int_to_ptr.vmem [resolvable:$false] %s3939_s26 }
  0x56   : > { %p3937_p10 = pnand %p3935_p5, %p3923_p2  ;;  %s3941_s18 = scalar_lea.vmem %s3940_s26, 4608 }
  0x57   : > { %p3942_p7 = scmp.lt.s32.totalorder %s430_s1, %s3940_s26  ;;  %p3943_p6 = scmp.lt.s32.totalorder %s3941_s18, %s3934_s24 }
  0x58   : > { %p3938_p12 = pneg %p3937_p10 }
  0x59   : > { %p3944_p9 = por %p3943_p6, %p3942_p7 }
  0x5b   : > { %p3945_p13 = pnand %p3944_p9, %p3938_p12 }
  0x5d   : > { %3948 = shalt.err (!%p3945_p13)
}
  0x5e   : > { %s5919_s4 = smov 4   ;;  %441 = sbr.rel (%p4172_p8) target bundleno = 1013 (0x3f5), region = 68 }
  0x5f   : > { %3664 = dma.hbm_to_vmem [thread:$0]  (!%p4245_p11), %s428_s6, 2304, %s430_s1, %s419_s9, %s5914_s21, %s5914_s21, %s5919_s4  }
  0x63   : > { %s4266_s19 = sand.u32 1, %s4021_s22  }
  0x64   : > { %s3627_s26 = smul.u32 144, %s4266_s19  ;;  %s444_s16 = scalar_lea.sflag [#allocation3], %s4266_s19 }
  0x66   : > { %s4270_s27 = scalar_lea.vmem [#allocation2], %s3627_s26 }
  0x67   : > { %4000 = dma.done.wait (%p4162_p4), %s444_s16, 2304  }
  0x68   : > { %4002 = vsyncadd (%p4162_p4), %s444_s16, 4294964992 }
  0x69   : > { %4004 = dma.done.wait (%p4152_p1), [#allocation6], 1280  }
  0x6a   : > { %4006 = vsyncadd (%p4152_p1), [#allocation6], 4294966016 }
  0x6b   : > { %4008 = dma.done.wait (%p4152_p1), [#allocation9], 2048  }
  0x6c   : > { %4010 = vsyncadd (%p4152_p1), [#allocation9], 4294965248  ;;  %v3739_v0 = vld [vmem:[#allocation5 + $0x38] sm:$0xff]   ;;  %v3740_v1 = vld [vmem:[#allocation5 + $0x30] sm:$0xff]   ;;  %v1017_v34 = vlaneseq  ;;  %v5859_v39 = vmov 0.0   ;;  %vm1185_vm1 = vcmask 1040384  }
  0x6d   : > { %3461 = vmatprep.subr.bf16.mxu0 %v3739_v0  ;;  %v3741_v2 = vld [vmem:[#allocation5 + $0x28] sm:$0xff]   ;;  %v3742_v3 = vld [vmem:[#allocation5 + $0x20] sm:$0xff]   ;;  %v3743_v5 = vld [vmem:[#allocation5 + $0x18] sm:$0xff]   ;;  %vm1294_vm2 = vcmask 1046528   ;;  %s3169_s13 = sshll.u32 %s4266_s19, 7  ;;  %s6087_s21 = sld [smem:[#allocation17_spill]] }
  0x6e   : > { %3462 = vmatpush3.bf16.msra.mxu0 %v3739_v0  ;;  %v3747_v4 = vld [vmem:[%s4270_s27] sm:$0xff]   ;;  %v3765_v7 = vld [vmem:[#allocation8 + $0x38] sm:$0xff]   ;;  %v3767_v10 = vld [vmem:[#allocation8 + $0x28] sm:$0xff]   ;;  %v4302_v35 = vshrl.u32 %v1017_v34, 7  ;;  %s5694_s15 = scalar_lea.vmem [#allocation11], %s3169_s13  ;;  %s6088_s30 = sld [smem:[#allocation64_spill]] }
  0x6f   : > { %3463 = vmatprep.subr.bf16.mxu0 %v3740_v1  ;;  %3477 = vmatprep.mubr.bf16.mxu0 %v3747_v4  ;;  %v3744_v6 = vld [vmem:[#allocation5 + $0x10] sm:$0xff]   ;;  %v3745_v8 = vld [vmem:[#allocation5 + $0x8] sm:$0xff]   ;;  %v3766_v9 = vld [vmem:[#allocation8 + $0x30] sm:$0xff]   ;;  %s3031_s20 = sshll.u32 %s5694_s15, 4  ;;  %s3015_s18 = scalar_lea.sflag [#allocation4], %s4266_s19  ;;  %s5787_s20 = int_to_ptr.vmem [resolvable:$true] %s3031_s20 }
  0x70   : > { %3609 = vmatprep.subr.bf16.mxu1 %v3765_v7  ;;  %v3746_v11 = vld [vmem:[#allocation5] sm:$0xff]   ;;  %v512_v12 = vld [vmem:[%s4270_s27 + $0x8] sm:$0xff]   ;;  %v516_v14 = vld [vmem:[%s4270_s27 + $0x18] sm:$0xff]   ;;  %5920 = vst [vmem:[#allocation21_spill] sm:$0xff] %v4302_v35  ;;  %v1023_v36 = vadd.s32 4294967295, %v4302_v35  ;;  %v4311_v38 = vsub.s32 1, %v4302_v35 }
  0x71   : > { %3617 = vmatpush3.bf16.msra.mxu1 %v3765_v7  ;;  %v514_v13 = vld [vmem:[%s4270_s27 + $0x10] sm:$0xff]   ;;  %v518_v15 = vld [vmem:[%s4270_s27 + $0x20] sm:$0xff]   ;;  %v520_v16 = vld [vmem:[%s4270_s27 + $0x28] sm:$0xff]   ;;  %v1059_v41 = vsub.s32 4, %v4302_v35  ;;  %v4321_v44 = vsub.s32 0, %v4302_v35  ;;  %v1055_v45 = vsub.s32 3, %v4302_v35 }
  0x72   : > { %3464 = vmatpush3.bf16.msra.mxu0 %v3740_v1  ;;  %3610 = vmatprep.subr.bf16.mxu1 %v3766_v9  ;;  %v522_v17 = vld [vmem:[%s4270_s27 + $0x30] sm:$0xff]   ;;  %v524_v18 = vld [vmem:[%s4270_s27 + $0x38] sm:$0xff]   ;;  %v526_v19 = vld [vmem:[%s4270_s27 + $0x40] sm:$0xff]   ;;  %vm1026_vm0 = vcmp.ge.s32.totalorder %v1023_v36, 0  ;;  %5921 = vst [vmem:[#allocation22_spill] sm:$0xff] %v4311_v38  ;;  %v1051_v48 = vsub.s32 2, %v4302_v35 }
  0x73   : > { %3465 = vmatprep.subr.bf16.mxu0 %v3741_v2  ;;  %v528_v20 = vld [vmem:[%s4270_s27 + $0x48] sm:$0xff]   ;;  %v530_v21 = vld [vmem:[%s4270_s27 + $0x50] sm:$0xff]   ;;  %v532_v22 = vld [vmem:[%s4270_s27 + $0x58] sm:$0xff]   ;;  %v3198_v40 = vsel %vm1026_vm0, 1.0, %v5859_v39  ;;  %5922 = vst [vmem:[#allocation23_spill] sm:$0xff] %v4321_v44  ;;  %v1063_v51 = vsub.s32 5, %v4302_v35 }
  0x74   : > { %v534_v23 = vld [vmem:[%s4270_s27 + $0x60] sm:$0xff]   ;;  %v536_v24 = vld [vmem:[%s4270_s27 + $0x68] sm:$0xff]   ;;  %v538_v25 = vld [vmem:[%s4270_s27 + $0x70] sm:$0xff]   ;;  %v1048_v49 = vrot.slane %v3198_v40, %v4311_v38  ;;  %v1071_v52 = vsub.s32 7, %v4302_v35  ;;  %v1044_v59 = vrot.slane %v3198_v40, %v4321_v44  ;;  %v1067_v61 = vsub.s32 6, %v4302_v35  ;;  %s3949_s4 = scalar_lea.vmem %s5787_s20, 2048 }
  0x75   : > { %3618 = vmatpush3.bf16.msra.mxu1 %v3766_v9  ;;  %v540_v26 = vld [vmem:[%s4270_s27 + $0x78] sm:$0xff]   ;;  %v542_v27 = vld [vmem:[%s4270_s27 + $0x80] sm:$0xff]   ;;  %v3764_v28 = vld [vmem:[%s4270_s27 + $0x88] sm:$0xff]   ;;  %v4349_v4 = vrot.slane %v3198_v40, %v1055_v45  ;;  %p3950_p1 = scmp.ne.s32.totalorder %s5787_s20, %s3949_s4  ;;  %s4050_s26 = smov [#allocation11]  }
  0x76   : > { %3466 = vmatpush3.bf16.msra.mxu0 %v3741_v2  ;;  %3611 = vmatprep.subr.bf16.mxu1 %v3767_v10  ;;  %v3768_v29 = vld [vmem:[#allocation8 + $0x20] sm:$0xff]   ;;  %v3769_v30 = vld [vmem:[#allocation8 + $0x18] sm:$0xff]   ;;  %v3770_v31 = vld [vmem:[#allocation8 + $0x10] sm:$0xff]   ;;  %s3953_s16 = sshll.u32 %s4050_s26, 4  ;;  %s3954_s16 = int_to_ptr.vmem [resolvable:$false] %s3953_s16 }
  0x77   : > { %3467 = vmatprep.subr.bf16.mxu0 %v3742_v3  ;;  %v3771_v32 = vld [vmem:[#allocation8 + $0x8] sm:$0xff]   ;;  %v3772_v33 = vld [vmem:[#allocation8] sm:$0xff]   ;;  %v4308_v37 = vld [vmem:[%s5839_s2] ss:$0 sm:$0xff]  ;;  %p3951_p4 = pnand %p3950_p1, %p4238_p0  ;;  %s3955_s1 = scalar_lea.vmem %s3954_s16, 4096 }
  0x78   : > { %v4318_v43 = vld [vmem:[%s5840_s3] ss:$0 sm:$0xff]  ;;  %p3956_p3 = scmp.lt.s32.totalorder %s5787_s20, %s3954_s16  ;;  %p3957_p11 = scmp.lt.s32.totalorder %s3955_s1, %s3949_s4 }
  0x79   : > { %3619 = vmatpush3.bf16.msra.mxu1 %v3767_v10  ;;  %v1403_v46 = vld [vmem:[#allocation7] sm:$0xff]  ;;  %p3952_p8 = pneg %p3951_p4 }
  0x7a   : > { %3468 = vmatpush3.bf16.msra.mxu0 %v3742_v3  ;;  %3612 = vmatprep.subr.bf16.mxu1 %v3768_v29  ;;  %v4331_v54 = vrot.slane %v1403_v46, %v4311_v38  ;;  %v4333_v55 = vrot.slane %v1403_v46, %v1059_v41  ;;  %v4337_v57 = vrot.slane %v1403_v46, %v4321_v44  ;;  %p3958_p2 = por %p3957_p11, %p3956_p3 }
  0x7b   : > { %3469 = vmatprep.subr.bf16.mxu0 %v3743_v5  ;;  %v4339_v58 = vrot.slane %v1403_v46, %v1055_v45  ;;  %v4345_v1 = vrot.slane %v1403_v46, %v1051_v48  ;;  %v4347_v2 = vrot.slane %v1403_v46, %v1063_v51 }
  0x7c   : > { %p3959_p5 = pnand %p3958_p2, %p3952_p8 }
  0x7d   : > { %3620 = vmatpush3.bf16.msra.mxu1 %v3768_v29 }
  0x7e   : > { %3470 = vmatpush3.bf16.msra.mxu0 %v3743_v5  ;;  %3613 = vmatprep.subr.bf16.mxu1 %v3769_v30  ;;  %v4351_v5 = vrot.slane %v1403_v46, %v1071_v52 }
  0x7f   : > { %3471 = vmatprep.subr.bf16.mxu0 %v3744_v6 }
  0x81   : > { %3621 = vmatpush3.bf16.msra.mxu1 %v3769_v30 }
  0x82   : > { %3472 = vmatpush3.bf16.msra.mxu0 %v3744_v6  ;;  %3614 = vmatprep.subr.bf16.mxu1 %v3770_v31 }
  0x83   : > { %3473 = vmatprep.subr.bf16.mxu0 %v3745_v8 }
  0x85   : > { %3622 = vmatpush3.bf16.msra.mxu1 %v3770_v31 }
  0x86   : > { %3474 = vmatpush3.bf16.msra.mxu0 %v3745_v8  ;;  %3615 = vmatprep.subr.bf16.mxu1 %v3771_v32 }
  0x87   : > { %3475 = vmatprep.subr.bf16.mxu0 %v3746_v11 }
  0x89   : > { %3623 = vmatpush3.bf16.msra.mxu1 %v3771_v32 }
  0x8a   : > { %3476 = vmatpush3.bf16.msra.mxu0 %v3746_v11  ;;  %3616 = vmatprep.subr.bf16.mxu1 %v3772_v33  ;;  %v4357_v11 = vrot.slane %v3198_v40, %v1051_v48 }
  0x8b   : > { %3513 = vmatprep.subr.bf16.mxu0 %v3765_v7 }
  0x8d   : > { %3478 = vmatmul.mubr.bf16.vlgmr.msra.gmra.mxu0 %v512_v12  ;;  %3624 = vmatpush3.bf16.msra.mxu1 %v3772_v33  ;;  %v4359_v12 = vrot.slane %v3198_v40, %v1063_v51 }
  0x8e   : > { %3481 = vmatprep.mubr.bf16.mxu0 %v514_v13  ;;  %3514 = vmatpush3.bf16.msra.mxu0 %v3765_v7  ;;  %v4361_v13 = vrot.slane %v3198_v40, %v1059_v41 }
  0x8f   : > { %3515 = vmatprep.subr.bf16.mxu0 %v3766_v9 }
  0x92   : > { %3516 = vmatpush3.bf16.msra.mxu0 %v3766_v9 }
  0x93   : > { %3517 = vmatprep.subr.bf16.mxu0 %v3767_v10 }
  0x95   : > { %3482 = vmatmul.mubr.bf16.gmra.mxu0 %v516_v14  ;;  %v4363_v14 = vrot.slane %v1403_v46, %v1067_v61 }
  0x96   : > { %3485 = vmatprep.mubr.bf16.mxu0 %v518_v15  ;;  %3518 = vmatpush3.bf16.msra.mxu0 %v3767_v10 }
  0x97   : > { %3519 = vmatprep.subr.bf16.mxu0 %v3768_v29 }
  0x9a   : > { %3520 = vmatpush3.bf16.msra.mxu0 %v3768_v29 }
  0x9b   : > { %3521 = vmatprep.subr.bf16.mxu0 %v3769_v30 }
  0x9d   : > { %3486 = vmatmul.mubr.bf16.gmra.mxu0 %v520_v16  ;;  %v4366_v16 = vrot.slane %v3198_v40, %v1071_v52 }
  0x9e   : > { %3489 = vmatprep.mubr.bf16.mxu0 %v522_v17  ;;  %3522 = vmatpush3.bf16.msra.mxu0 %v3769_v30  ;;  %v4368_v17 = vrot.slane %v3198_v40, %v1067_v61 }
  0x9f   : > { %3523 = vmatprep.subr.bf16.mxu0 %v3770_v31 }
  0xa2   : > { %3524 = vmatpush3.bf16.msra.mxu0 %v3770_v31 }
  0xa3   : > { %3525 = vmatprep.subr.bf16.mxu0 %v3771_v32 }
  0xa5   : > { %3490 = vmatmul.mubr.bf16.gmra.mxu0 %v524_v18  ;;  %v4049_v18 = vmov 1.0  }
  0xa6   : > { %3493 = vmatprep.mubr.bf16.mxu0 %v526_v19  ;;  %3526 = vmatpush3.bf16.msra.mxu0 %v3771_v32  ;;  %v4371_v19 = vrot.slane %v4049_v18, %v4311_v38  ;;  %v4385_v32 = vrot.slane %v4049_v18, %v1059_v41 }
  0xa7   : > { %3527 = vmatprep.subr.bf16.mxu0 %v3772_v33 }
  0xaa   : > { %3528 = vmatpush3.bf16.msra.mxu0 %v3772_v33  ;;  %v4387_v33 = vrot.slane %v4049_v18, %v1071_v52 }
  0xac   : > { %5923 = vst [vmem:[#allocation24_spill] sm:$0xff] %v4387_v33 }
  0xad   : > { %3494 = vmatmul.mubr.bf16.gmra.mxu0 %v528_v20 }
  0xae   : > { %3497 = vmatprep.mubr.bf16.mxu0 %v530_v21 }
  0xb5   : > { %3498 = vmatmul.mubr.bf16.gmra.mxu0 %v532_v22 }
  0xb6   : > { %3501 = vmatprep.mubr.bf16.mxu0 %v534_v23 }
  0xbd   : > { %3502 = vmatmul.mubr.bf16.gmra.mxu0 %v536_v24 }
  0xbe   : > { %3505 = vmatprep.mubr.bf16.mxu0 %v538_v25  ;;  %v4376_v25 = vrot.slane %v4049_v18, %v4321_v44 }
  0xc5   : > { %3506 = vmatmul.mubr.bf16.gmra.mxu0 %v540_v26  ;;  %v4378_v26 = vrot.slane %v4049_v18, %v1055_v45 }
  0xc6   : > { %3509 = vmatprep.mubr.bf16.mxu0 %v542_v27  ;;  %v4380_v27 = vrot.slane %v4049_v18, %v1051_v48 }
  0xcd   : > { %3510 = vmatmul.mubr.bf16.gmra.mxu0 %v3764_v28  ;;  %v4382_v28 = vrot.slane %v4049_v18, %v1063_v51 }
 0x14d   : > { %v3479_v42 = vpop.f32.mrf.mxu0 }
 0x14e   : > { %v904_v47 = vmul.f32 %v3479_v42, %v4308_v37 }
 0x14f   : > { %v752_v50 = vpop.f32.mrf.mxu0 }
 0x150   : > { %v947_v53 = vadd.f32 %v4318_v43, %v904_v47  ;;  %v902_v56 = vmul.f32 %v4308_v37, %v752_v50  ;;  %v4397_v50 = vrot.slane %v4049_v18, %v1067_v61 }
 0x151   : > { %v3480_v60 = vpop.f32.mrf.mxu0 }
 0x152   : > { %v983_v62 = vmax.f32 %v947_v53, 0.0  ;;  %v945_v63 = vadd.f32 %v4318_v43, %v902_v56  ;;  %v905_v0 = vmul.f32 %v3480_v60, %v4308_v37  ;;  %5924 = vst [vmem:[#allocation25_spill] sm:$0xff] %v4397_v50 }
 0x153   : > { %v755_v3 = vpop.f32.mrf.mxu0 }
 0x154   : > { %v4353_v6 = vmul.f32 %v1048_v49, %v983_v62  ;;  %v981_v7 = vmax.f32 %v945_v63, 0.0  ;;  %v948_v8 = vadd.f32 %v4318_v43, %v905_v0  ;;  %v903_v9 = vmul.f32 %v4308_v37, %v755_v3 }
 0x155   : > { %v3483_v10 = vpop.f32.mrf.mxu0 }
 0x156   : > { %v1189_v15 = vrot.slane %v4353_v6, 7  ;;  %v1113_v20 = vmul.f32 %v1044_v59, %v981_v7  ;;  %v984_v21 = vmax.f32 %v948_v8, 0.0  ;;  %v946_v22 = vadd.f32 %v4318_v43, %v903_v9 }
 0x157   : > { %v908_v23 = vmul.f32 %v3483_v10, %v4308_v37  ;;  %v768_v24 = vpop.f32.mrf.mxu0  ;;  %v1479_v46 = vmul.f32 %v4331_v54, %v4353_v6  ;;  %v4401_v41 = vmul.f32 %v4333_v55, %v4353_v6 }
 0x158   : > { %v1186_v29 = vrot.slane %v1113_v20, 7  ;;  %v906_v30 = vmul.f32 %v4308_v37, %v768_v24  ;;  %v1277_v34 = vsel %vm1185_vm1, 0.0, %v1189_v15  ;;  %v4390_v36 = vmul.f32 %v1048_v49, %v984_v21 }
 0x159   : > { %v3484_v31 = vpop.f32.mrf.mxu0  ;;  %v982_v40 = vmax.f32 %v946_v22, 0.0  ;;  %v951_v42 = vadd.f32 %v4318_v43, %v908_v23  ;;  %v1411_v53 = vmul.f32 %v4337_v57, %v1277_v34  ;;  %v4409_v61 = vmul.f32 %v4339_v58, %v1277_v34 }
 0x15a   : > { %v909_v47 = vmul.f32 %v3484_v31, %v4308_v37  ;;  %v1276_v49 = vsel %vm1185_vm1, 0.0, %v1186_v29  ;;  %v1190_v51 = vrot.slane %v4390_v36, 7  ;;  %v5860_v52 = vrot.slane %v4390_v36, 1 }
 0x15b   : > { %v771_v48 = vpop.f32.mrf.mxu0  ;;  %v1114_v56 = vmul.f32 %v1044_v59, %v982_v40  ;;  %v987_v60 = vmax.f32 %v951_v42, 0.0  ;;  %v949_v62 = vadd.f32 %v4318_v43, %v906_v30  ;;  %v1295_v0 = vrot.slane %v1113_v20, 1 }
 0x15c   : > { %v1191_v3 = vsel %vm1185_vm1, %v1189_v15, %v1190_v51  ;;  %v952_v7 = vadd.f32 %v4318_v43, %v909_v47  ;;  %v1409_v8 = vmul.f32 %v4337_v57, %v1276_v49  ;;  %v1480_v10 = vmul.f32 %v4331_v54, %v4390_v36 }
 0x15d   : > { %v3487_v63 = vpop.f32.mrf.mxu0  ;;  %v1412_v9 = vmul.f32 %v4337_v57, %v1191_v3  ;;  %v1187_v59 = vrot.slane %v1114_v56, 7  ;;  %v1477_v21 = vmul.f32 %v4331_v54, %v1113_v20  ;;  %v1386_v22 = vsel %vm1294_vm2, %v5860_v52, 0.0 }
 0x15e   : > { %v1296_v23 = vrot.slane %v1114_v56, 1  ;;  %v4422_v15 = vmul.f32 %v4349_v4, %v987_v60  ;;  %v985_v31 = vmax.f32 %v949_v62, 0.0  ;;  %v988_v34 = vmax.f32 %v952_v7, 0.0 }
 0x15f   : > { %v784_v18 = vpop.f32.mrf.mxu0  ;;  %v1512_v24 = vadd.f32 %v1480_v10, %v1412_v9  ;;  %v1188_v30 = vsel %vm1185_vm1, %v1186_v29, %v1187_v59  ;;  %v4429_v51 = vadd.f32 %v1479_v46, %v1411_v53  ;;  %v1509_v39 = vadd.f32 %v1477_v21, %v1409_v8 }
 0x160   : > { %v1297_v42 = vsel %vm1294_vm2, %v1295_v0, %v1296_v23  ;;  %v1385_v47 = vsel %vm1294_vm2, %v1296_v23, 0.0  ;;  %v1410_v20 = vmul.f32 %v4337_v57, %v1188_v30  ;;  %v1195_v49 = vrot.slane %v4422_v15, 7 }
 0x161   : > { %v3488_v40 = vpop.f32.mrf.mxu0  ;;  %v1548_v60 = vmul.f32 %v4345_v1, %v1386_v22  ;;  %v4434_v9 = vmul.f32 %v4333_v55, %v4390_v36  ;;  %v4437_v62 = vmul.f32 %v4347_v2, %v1386_v22  ;;  %v1478_v0 = vmul.f32 %v4331_v54, %v1114_v56 }
 0x162   : > { %v1545_v7 = vmul.f32 %v4345_v1, %v1297_v42  ;;  %v1614_v10 = vmul.f32 %v4339_v58, %v1191_v3  ;;  %v1546_v46 = vmul.f32 %v4345_v1, %v1385_v47  ;;  %v4446_v53 = vsel %vm1185_vm1, 0.0, %v1195_v49 }
 0x163   : > { %v787_v29 = vpop.f32.mrf.mxu0  ;;  %v4442_v59 = vadd.f32 %v1548_v60, %v1512_v24  ;;  %v4449_v8 = vmul.f32 %v4357_v11, %v985_v31  ;;  %v1510_v23 = vadd.f32 %v1478_v0, %v1410_v20  ;;  %v1483_v56 = vmul.f32 %v4331_v54, %v4422_v15 }
 0x164   : > { %v4455_v30 = vmul.f32 %v4349_v4, %v988_v34  ;;  %v4459_v3 = vmul.f32 %v4333_v55, %v4422_v15  ;;  %v907_v24 = vmul.f32 %v4308_v37, %v771_v48  ;;  %v912_v42 = vmul.f32 %v3487_v63, %v4308_v37 }
 0x165   : > { %v3491_v21 = vpop.f32.mrf.mxu0  ;;  %v910_v31 = vmul.f32 %v4308_v37, %v784_v18  ;;  %v4464_v20 = vadd.f32 %v1545_v7, %v1509_v39  ;;  %v1415_v60 = vmul.f32 %v4337_v57, %v4446_v53  ;;  %v4470_v4 = vmul.f32 %v4351_v5, %v4422_v15 }
 0x166   : > { %5925 = vst [vmem:[#allocation26_spill] sm:$0xff] %v4459_v3  ;;  %v1196_v34 = vrot.slane %v4455_v30, 7  ;;  %v950_v63 = vadd.f32 %v4318_v43, %v907_v24  ;;  %v955_v18 = vadd.f32 %v4318_v43, %v912_v42  ;;  %v1578_v39 = vadd.f32 %v1546_v46, %v1510_v23 }
 0x167   : > { %v800_v47 = vpop.f32.mrf.mxu0  ;;  %v953_v45 = vadd.f32 %v4318_v43, %v910_v31  ;;  %v913_v52 = vmul.f32 %v3488_v40, %v4308_v37  ;;  %v4484_v44 = vmul.f32 %v4331_v54, %v4449_v8  ;;  %v916_v23 = vmul.f32 %v3491_v21, %v4308_v37 }
 0x168   : > { %v4478_v7 = vsel %vm1185_vm1, %v1195_v49, %v1196_v34  ;;  %v986_v48 = vmax.f32 %v950_v63, 0.0  ;;  %v991_v24 = vmax.f32 %v955_v18, 0.0  ;;  %v911_v49 = vmul.f32 %v4308_v37, %v787_v29 }
 0x169   : > { %v3492_v22 = vpop.f32.mrf.mxu0  ;;  %v1416_v0 = vmul.f32 %v4337_v57, %v4478_v7  ;;  %v989_v42 = vmax.f32 %v953_v45, 0.0  ;;  %v956_v46 = vadd.f32 %v4318_v43, %v913_v52  ;;  %v4491_v31 = vadd.f32 %v1483_v56, %v1415_v60 }
 0x16a   : > { %v4495_v40 = vmul.f32 %v4333_v55, %v4449_v8  ;;  %v5927_v34 = vrot.slane %v4455_v30, 1  ;;  %v4503_v63 = vmul.f32 %v4357_v11, %v986_v48  ;;  %v1484_v52 = vmul.f32 %v4331_v54, %v4455_v30 }
 0x16b   : > { %v803_v38 = vpop.f32.mrf.mxu0  ;;  %5926 = vst [vmem:[#allocation27_spill] sm:$0xff] %v4491_v31  ;;  %v992_v29 = vmax.f32 %v956_v46, 0.0  ;;  %v954_v21 = vadd.f32 %v4318_v43, %v911_v49  ;;  %v914_v56 = vmul.f32 %v4308_v37, %v800_v47  ;;  %v4509_v60 = vadd.f32 %v1614_v10, %v1578_v39 }
 0x16c   : > { %v4500_v35 = vsel %vm1294_vm2, %v5927_v34, 0.0  ;;  %v4513_v18 = vmul.f32 %v4333_v55, %v4455_v30  ;;  %v4516_v34 = vmul.f32 %v4359_v12, %v991_v24  ;;  %v959_v11 = vadd.f32 %v4318_v43, %v916_v23 }
 0x16d   : > { %v3495_v45 = vpop.f32.mrf.mxu0  ;;  %v4519_v50 = vadd.f32 %v1484_v52, %v1416_v0  ;;  %v4523_v46 = vmul.f32 %v4345_v1, %v4500_v35  ;;  %v4527_v10 = vmul.f32 %v4351_v5, %v4455_v30  ;;  %v4530_v47 = vmul.f32 %v4361_v13, %v989_v42 }
 0x16e   : > { %5928 = vst [vmem:[#allocation28_spill] sm:$0xff] %v4513_v18  ;;  %5929 = vst [vmem:[#allocation29_spill] sm:$0xff] %v4516_v34  ;;  %v4535_v24 = vmul.f32 %v4331_v54, %v4503_v63  ;;  %v4538_v0 = vmul.f32 %v4359_v12, %v992_v29  ;;  %v990_v49 = vmax.f32 %v954_v21, 0.0  ;;  %v957_v52 = vadd.f32 %v4318_v43, %v914_v56 }
 0x16f   : > { %v816_v48 = vpop.f32.mrf.mxu0  ;;  %5930 = vst [vmem:[#allocation30_spill] sm:$0xff] %v4519_v50  ;;  %5931 = vst [vmem:[#allocation31_spill] sm:$0xff] %v4523_v46  ;;  %v917_v33 = vmul.f32 %v3492_v22, %v4308_v37  ;;  %v915_v46 = vmul.f32 %v4308_v37, %v803_v38  ;;  %v920_v42 = vmul.f32 %v3495_v45, %v4308_v37  ;;  %v995_v29 = vmax.f32 %v959_v11, 0.0 }
 0x170   : > { %5932 = vst [vmem:[#allocation32_spill] sm:$0xff] %v4538_v0  ;;  %v4546_v39 = vmul.f32 %v4333_v55, %v4503_v63  ;;  %v4551_v12 = vmul.f32 %v4331_v54, %v4516_v34  ;;  %v4554_v56 = vmul.f32 %v4361_v13, %v990_v49  ;;  %v993_v22 = vmax.f32 %v957_v52, 0.0 }
 0x171   : > { %v3496_v23 = vpop.f32.mrf.mxu0  ;;  %v960_v38 = vadd.f32 %v4318_v43, %v917_v33  ;;  %v958_v45 = vadd.f32 %v4318_v43, %v915_v46  ;;  %v4560_v31 = vmul.f32 %v4333_v55, %v4516_v34  ;;  %v4565_v18 = vmul.f32 %v4331_v54, %v4530_v47 }
 0x172   : > { %5933 = vst [vmem:[#allocation33_spill] sm:$0xff] %v4551_v12  ;;  %v963_v11 = vadd.f32 %v4318_v43, %v920_v42  ;;  %v4570_v13 = vmul.f32 %v4333_v55, %v4530_v47  ;;  %v4575_v46 = vmul.f32 %v4331_v54, %v4538_v0  ;;  %v4579_v49 = vmul.f32 %v4333_v55, %v4538_v0 }
 0x173   : > { %v819_v21 = vpop.f32.mrf.mxu0  ;;  %5934 = vst [vmem:[#allocation34_spill] sm:$0xff] %v4560_v31  ;;  %v4582_v52 = vmul.f32 %v4366_v16, %v995_v29  ;;  %v996_v50 = vmax.f32 %v960_v38, 0.0  ;;  %v994_v42 = vmax.f32 %v958_v45, 0.0  ;;  %v918_v31 = vmul.f32 %v4308_v37, %v816_v48 }
 0x174   : > { %5935 = vst [vmem:[#allocation35_spill] sm:$0xff] %v4570_v13  ;;  %5936 = vst [vmem:[#allocation36_spill] sm:$0xff] %v4575_v46  ;;  %v4587_v33 = vmul.f32 %v4368_v17, %v993_v22  ;;  %v999_v3 = vmax.f32 %v963_v11, 0.0  ;;  %v921_v46 = vmul.f32 %v3496_v23, %v4308_v37  ;;  %v4592_v0 = vmul.f32 %v4331_v54, %v4554_v56 }
 0x175   : > { %v3499_v12 = vpop.f32.mrf.mxu0  ;;  %5937 = vst [vmem:[#allocation37_spill] sm:$0xff] %v4579_v49  ;;  %5938 = vst [vmem:[#allocation38_spill] sm:$0xff] %v4582_v52  ;;  %v4596_v29 = vmul.f32 %v4333_v55, %v4554_v56  ;;  %v4599_v38 = vmul.f32 %v4366_v16, %v996_v50  ;;  %v961_v48 = vadd.f32 %v4318_v43, %v918_v31 }
 0x176   : > { %v964_v45 = vadd.f32 %v4318_v43, %v921_v46  ;;  %v919_v22 = vmul.f32 %v4308_v37, %v819_v21  ;;  %v924_v11 = vmul.f32 %v3499_v12, %v4308_v37  ;;  %v4609_v49 = vmul.f32 %v4331_v54, %v4582_v52 }
 0x177   : > { %v832_v34 = vpop.f32.mrf.mxu0  ;;  %5939 = vst [vmem:[#allocation39_spill] sm:$0xff] %v4599_v38  ;;  %v4613_v16 = vmul.f32 %v4333_v55, %v4582_v52  ;;  %v4616_v50 = vmul.f32 %v4368_v17, %v994_v42  ;;  %v4621_v12 = vmul.f32 %v4331_v54, %v4587_v33  ;;  %v4628_v21 = vmul.f32 %v4371_v19, %v999_v3 }
 0x178   : > { %v922_v23 = vmul.f32 %v4308_v37, %v832_v34  ;;  %5940 = vst [vmem:[#allocation40_spill] sm:$0xff] %v4609_v49  ;;  %v4625_v34 = vmul.f32 %v4333_v55, %v4587_v33  ;;  %v997_v46 = vmax.f32 %v961_v48, 0.0  ;;  %v1000_v13 = vmax.f32 %v964_v45, 0.0 }
 0x179   : > { %5941 = vst [vmem:[#allocation41_spill] sm:$0xff] %v4613_v16  ;;  %5943 = vst [vmem:[#allocation43_spill] sm:$0xff] %v4628_v21  ;;  %v962_v16 = vadd.f32 %v4318_v43, %v919_v22  ;;  %v967_v17 = vadd.f32 %v4318_v43, %v924_v11  ;;  %v4635_v31 = vmul.f32 %v4331_v54, %v4599_v38  ;;  %v5947_v22 = vrot.slane %v4449_v8, 7 }
 0x17a   : > { %5942 = vst [vmem:[#allocation42_spill] sm:$0xff] %v4625_v34  ;;  %v4639_v49 = vmul.f32 %v4333_v55, %v4599_v38  ;;  %v965_v34 = vadd.f32 %v4318_v43, %v922_v23  ;;  %v4644_v48 = vmul.f32 %v4376_v25, %v997_v46  ;;  %v4651_v42 = vmul.f32 %v4331_v54, %v4616_v50 }
 0x17b   : > { %5944 = vst [vmem:[#allocation44_spill] sm:$0xff] %v4635_v31  ;;  %v998_v45 = vmax.f32 %v962_v16, 0.0  ;;  %v1278_v11 = vsel %vm1185_vm1, 0.0, %v5947_v22  ;;  %v4654_v31 = vmul.f32 %v4371_v19, %v1000_v13  ;;  %v4658_v23 = vmul.f32 %v4333_v55, %v4616_v50 }
 0x17c   : > { %5945 = vst [vmem:[#allocation45_spill] sm:$0xff] %v4639_v49  ;;  %5946 = vst [vmem:[#allocation46_spill] sm:$0xff] %v4644_v48  ;;  %v1003_v49 = vmax.f32 %v967_v17, 0.0  ;;  %v1001_v52 = vmax.f32 %v965_v34, 0.0  ;;  %v4663_v16 = vmul.f32 %v4331_v54, %v4628_v21  ;;  %v1302_v22 = vrot.slane %v4503_v63, 1 }
 0x17d   : > { %5948 = vst [vmem:[#allocation47_spill] sm:$0xff] %v4651_v42  ;;  %5949 = vst [vmem:[#allocation48_spill] sm:$0xff] %v4654_v31  ;;  %v4667_v3 = vmul.f32 %v4376_v25, %v998_v45  ;;  %v5952_v19 = vrot.slane %v4503_v63, 7  ;;  %v5953_v13 = vrot.slane %v4449_v8, 7  ;;  %v5954_v17 = vrot.slane %v4390_v36, 1 }
 0x17e   : > { %5950 = vst [vmem:[#allocation49_spill] sm:$0xff] %v4658_v23  ;;  %5951 = vst [vmem:[#allocation50_spill] sm:$0xff] %v4663_v16  ;;  %v5955_v23 = vrot.slane %v4353_v6, 1  ;;  %v1413_v21 = vmul.f32 %v4337_v57, %v1278_v11  ;;  %v4683_v25 = vmul.f32 %v4331_v54, %v4644_v48  ;;  %v4687_v45 = vmul.f32 %v4333_v55, %v4644_v48 }
 0x17f   : > { %v1194_v34 = vsel %vm1185_vm1, %v5953_v13, %v5952_v19  ;;  %v1301_v19 = vrot.slane %v4449_v8, 1  ;;  %v3500_v13 = vpop.f32.mrf.mxu0  ;;  %v4693_v6 = vmul.f32 %v4331_v54, %v4654_v31  ;;  %v1714_v48 = vadd.f32 %v4434_v9, %v4509_v60 }
 0x180   : > { %v1300_v46 = vsel %vm1294_vm2, %v5955_v23, %v5954_v17  ;;  %5956 = vst [vmem:[#allocation51_spill] sm:$0xff] %v4683_v25  ;;  %5957 = vst [vmem:[#allocation52_spill] sm:$0xff] %v4687_v45  ;;  %v4696_v23 = vmul.f32 %v4378_v26, %v1003_v49  ;;  %v4699_v17 = vmul.f32 %v4380_v27, %v1001_v52  ;;  %v4705_v25 = vsel %vm1294_vm2, %v1302_v22, 0.0 }
 0x181   : > { %5958 = vst [vmem:[#allocation53_spill] sm:$0xff] %v4693_v6  ;;  %v4702_v16 = vsel %vm1294_vm2, %v1301_v19, %v1302_v22  ;;  %v4708_v45 = vmul.f32 %v4337_v57, %v1194_v34  ;;  %v1547_v36 = vmul.f32 %v4345_v1, %v1300_v46  ;;  %v4713_v6 = vadd.f32 %v4484_v44, %v1413_v21  ;;  %v835_v31 = vpop.f32.mrf.mxu0 }
 0x182   : > { %5959 = vst [vmem:[#allocation54_spill] sm:$0xff] %v4699_v17  ;;  %v1615_v49 = vmul.f32 %v4339_v58, %v1278_v11  ;;  %v1616_v52 = vmul.f32 %v4339_v58, %v1194_v34  ;;  %v4719_v19 = vmul.f32 %v4331_v54, %v4667_v3  ;;  %v1645_v17 = vadd.f32 %v4409_v61, %v4464_v20 }
 0x183   : > { %v1579_v22 = vadd.f32 %v1547_v36, %v4429_v51  ;;  %v4728_v44 = vmul.f32 %v4333_v55, %v4667_v3  ;;  %v1749_v38 = vmul.f32 %v4347_v2, %v1300_v46  ;;  %v1752_v61 = vmul.f32 %v4347_v2, %v4705_v25  ;;  %v4743_v46 = vld [vmem:[#allocation7 + $0x8] ss:$0 sm:$0xff] }
 0x184   : > { %5960 = vst [vmem:[#allocation55_spill] sm:$0xff] %v4719_v19  ;;  %v1648_v21 = vadd.f32 %v1616_v52, %v4442_v59  ;;  %v1751_v19 = vmul.f32 %v4347_v2, %v4702_v16  ;;  %v1713_v51 = vadd.f32 %v4401_v41, %v1645_v17  ;;  %v1782_v9 = vadd.f32 %v4437_v62, %v1714_v48  ;;  %v3503_v48 = vpop.f32.mrf.mxu0 }
 0x185   : > { %v1647_v42 = vadd.f32 %v1615_v49, %v1579_v22  ;;  %v1817_v60 = vmul.f32 %v4363_v14, %v1278_v11  ;;  %v1818_v36 = vmul.f32 %v4363_v14, %v1194_v34  ;;  %v1819_v59 = vmul.f32 %v4363_v14, %v4446_v53 }
 0x186   : > { %v1716_v20 = vadd.f32 %v4546_v39, %v1648_v21  ;;  %v1781_v52 = vadd.f32 %v1749_v38, %v1713_v51  ;;  %v1820_v41 = vmul.f32 %v4363_v14, %v4478_v7  ;;  %v1885_v62 = vmul.f32 %v4351_v5, %v4449_v8 }
 0x187   : > { %v1715_v49 = vadd.f32 %v4495_v40, %v1647_v42  ;;  %v1850_v17 = vadd.f32 %v1818_v36, %v1782_v9  ;;  %v1886_v11 = vmul.f32 %v4351_v5, %v4503_v63  ;;  %v1953_v34 = vmul.f32 %v4743_v46, %v4702_v16 }
 0x188   : > { %v1784_v39 = vadd.f32 %v1752_v61, %v1716_v20  ;;  %v1849_v21 = vadd.f32 %v1817_v60, %v1781_v52  ;;  %v1954_v40 = vmul.f32 %v4743_v46, %v4705_v25  ;;  %v925_v38 = vmul.f32 %v3500_v13, %v4308_v37 }
 0x189   : > { %v1783_v22 = vadd.f32 %v1751_v19, %v1715_v49  ;;  %v1918_v51 = vadd.f32 %v1886_v11, %v1850_v17  ;;  %v923_v8 = vmul.f32 %v4308_v37, %v835_v31  ;;  %v5961_v61 = vrot.slane %v4455_v30, 1  ;;  %v848_v49 = vpop.f32.mrf.mxu0  ;;  %v4771_v31 = vld [vmem:[%s5842_s5] ss:$0 sm:$0xff] }
 0x18a   : > { %v1852_v42 = vadd.f32 %v1820_v41, %v1784_v39  ;;  %v5962_v9 = vrot.slane %v4422_v15, 1  ;;  %v1917_v36 = vadd.f32 %v1885_v62, %v1849_v21  ;;  %v968_v19 = vadd.f32 %v4318_v43, %v925_v38 }
 0x18b   : > { %v1851_v20 = vadd.f32 %v1819_v59, %v1783_v22  ;;  %v1986_v13 = vadd.f32 %v1954_v40, %v1918_v51  ;;  %v966_v30 = vadd.f32 %v4318_v43, %v923_v8  ;;  %v1956_v59 = vmul.f32 %v4743_v46, %v4500_v35 }
 0x18c   : > { %v4763_v63 = vsel %vm1294_vm2, %v5962_v9, %v5961_v61  ;;  %v1920_v15 = vadd.f32 %v4527_v10, %v1852_v42  ;;  %v1985_v52 = vadd.f32 %v1953_v34, %v1917_v36  ;;  %v1004_v41 = vmax.f32 %v968_v19, 0.0 }
 0x18d   : > { %v1955_v60 = vmul.f32 %v4743_v46, %v4763_v63  ;;  %v1919_v62 = vadd.f32 %v4470_v4, %v1851_v20  ;;  %v928_v39 = vmul.f32 %v3503_v48, %v4308_v37  ;;  %v2025_v11 = vadd.f32 %v4771_v31, %v1986_v13 }
 0x18e   : > { %v1988_v22 = vadd.f32 %v1956_v59, %v1920_v15  ;;  %v926_v21 = vmul.f32 %v4308_v37, %v848_v49  ;;  %v4784_v40 = vmul.f32 %v4331_v54, %v4696_v23  ;;  %v2024_v10 = vadd.f32 %v4771_v31, %v1985_v52 }
 0x18f   : > { %v1987_v38 = vadd.f32 %v1955_v60, %v1919_v62  ;;  %v971_v34 = vadd.f32 %v4318_v43, %v928_v39  ;;  %v1514_v4 = vadd.f32 %v4535_v24, %v4708_v45  ;;  %v2057_v48 = vmax.f32 %v2025_v11, 0.0 }
 0x190   : > { %v2027_v42 = vadd.f32 %v4771_v31, %v1988_v22  ;;  %v969_v51 = vadd.f32 %v4318_v43, %v926_v21  ;;  %v1549_v8 = vmul.f32 %v4345_v1, %v4702_v16  ;;  %v2056_v61 = vmax.f32 %v2024_v10, 0.0 }
 0x191   : > { %v4795_v9 = vmul.f32 %v4378_v26, %v1004_v41  ;;  %v1002_v20 = vmax.f32 %v966_v30, 0.0  ;;  %v2026_v36 = vadd.f32 %v4771_v31, %v1987_v38  ;;  %v1007_v60 = vmax.f32 %v971_v34, 0.0 }
 0x192   : > { %v2059_v19 = vmax.f32 %v2027_v42, 0.0  ;;  %v1005_v49 = vmax.f32 %v969_v51, 0.0  ;;  %v4800_v24 = vmul.f32 %v4333_v55, %v4696_v23  ;;  %v1550_v45 = vmul.f32 %v4345_v1, %v4705_v25  ;;  %v3504_v42 = vpop.f32.mrf.mxu0 }
 0x193   : > { %v2088_v13 = vpack.c.bf16 %v2057_v48, %v2056_v61  ;;  %v5963_v16 = vrot.slane %v4530_v47, 7  ;;  %v2058_v26 = vmax.f32 %v2026_v36, 0.0  ;;  %v4808_v30 = vmul.f32 %v4382_v28, %v1007_v60 }
 0x194   : > { %v5965_v59 = vrot.slane %v4554_v56, 7  ;;  %v1308_v62 = vrot.slane %v4554_v56, 1  ;;  %v1581_v39 = vadd.f32 %v1549_v8, %v4713_v6  ;;  %v1582_v25 = vadd.f32 %v1550_v45, %v1514_v4 }
 0x195   : > { %v1280_v15 = vsel %vm1185_vm1, 0.0, %v5963_v16  ;;  %5964 = vst [vmem:[#allocation56_spill] sm:$0xff] %v4808_v30  ;;  %v5966_v52 = vmov %v5963_v16  ;;  %3529 = vmatprep.mubr.bf16.mxu0 %v2088_v13  ;;  %v4818_v11 = vmul.f32 %v4380_v27, %v1002_v20  ;;  %v4821_v22 = vmul.f32 %v4385_v32, %v1005_v49 }
 0x196   : > { %v1200_v41 = vsel %vm1185_vm1, %v5966_v52, %v5965_v59  ;;  %v2089_v10 = vpack.c.bf16 %v2059_v19, %v2058_v26  ;;  %v1307_v38 = vrot.slane %v4530_v47, 1  ;;  %v1417_v34 = vmul.f32 %v4337_v57, %v1280_v15  ;;  %v5970_v59 = vld [vmem:[#allocation26_spill] sm:$0xff] }
 0x197   : > { %v4828_v48 = vmul.f32 %v4331_v54, %v4795_v9  ;;  %v4832_v6 = vmul.f32 %v4333_v55, %v4795_v9  ;;  %v1418_v27 = vmul.f32 %v4337_v57, %v1200_v41  ;;  %v1617_v4 = vmul.f32 %v4339_v58, %v4446_v53 }
 0x198   : > { %3530 = vmatmul.mubr.bf16.vlgmr.msra.gmra.mxu0 %v2089_v10  ;;  %v4840_v8 = vmul.f32 %v4331_v54, %v4808_v30  ;;  %v1309_v61 = vsel %vm1294_vm2, %v1307_v38, %v1308_v62  ;;  %v1618_v20 = vmul.f32 %v4339_v58, %v4478_v7  ;;  %v4847_v36 = vmul.f32 %v4333_v55, %v4808_v30 }
 0x199   : > { %v1389_v53 = vsel %vm1294_vm2, %v1308_v62, 0.0  ;;  %v1649_v60 = vadd.f32 %v1617_v4, %v1581_v39  ;;  %v4853_v49 = vmul.f32 %v4331_v54, %v4821_v22  ;;  %v4857_v45 = vmul.f32 %v4333_v55, %v4821_v22  ;;  %v851_v39 = vpop.f32.mrf.mxu0  ;;  %v5971_v4 = vld [vmem:[#allocation28_spill] sm:$0xff] }
 0x19a   : > { %5967 = vst [vmem:[#allocation57_spill] sm:$0xff] %v4840_v8  ;;  %5968 = vst [vmem:[#allocation58_spill] sm:$0xff] %v4847_v36  ;;  %v1517_v13 = vadd.f32 %v4565_v18, %v1417_v34  ;;  %v1650_v7 = vadd.f32 %v1618_v20, %v1582_v25  ;;  %v1518_v16 = vadd.f32 %v4592_v0, %v1418_v27 }
 0x19b   : > { %5969 = vst [vmem:[#allocation59_spill] sm:$0xff] %v4857_v45  ;;  %v1553_v26 = vmul.f32 %v4345_v1, %v1309_v61  ;;  %v1717_v52 = vadd.f32 %v5970_v59, %v1649_v60  ;;  %v1753_v62 = vmul.f32 %v4347_v2, %v4763_v63  ;;  %v1554_v10 = vmul.f32 %v4345_v1, %v1389_v53 }
 0x19c   : > { %v1619_v38 = vmul.f32 %v4339_v58, %v1280_v15  ;;  %v1718_v51 = vadd.f32 %v5971_v4, %v1650_v7  ;;  %v1754_v18 = vmul.f32 %v4347_v2, %v4500_v35  ;;  %v1821_v0 = vmul.f32 %v4363_v14, %v1280_v15  ;;  %v5972_v4 = vld [vmem:[#allocation29_spill] sm:$0xff] }
 0x19d   : > { %v1785_v25 = vadd.f32 %v1753_v62, %v1717_v52  ;;  %v1822_v34 = vmul.f32 %v4363_v14, %v1200_v41  ;;  %v1889_v27 = vmul.f32 %v4351_v5, %v4530_v47  ;;  %v1890_v60 = vmul.f32 %v4351_v5, %v4554_v56  ;;  %v5974_v52 = vld [vmem:[#allocation32_spill] sm:$0xff] }
 0x19e   : > { %v1786_v20 = vadd.f32 %v1754_v18, %v1718_v51  ;;  %v929_v59 = vmul.f32 %v3504_v42, %v4308_v37  ;;  %v927_v19 = vmul.f32 %v4308_v37, %v851_v39  ;;  %v5973_v17 = vrot.slane %v5972_v4, 7 }
 0x19f   : > { %v1853_v7 = vadd.f32 %v1821_v0, %v1785_v25  ;;  %v1310_v15 = vrot.slane %v5972_v4, 1  ;;  %v1311_v62 = vrot.slane %v5974_v52, 1  ;;  %v5975_v56 = vrot.slane %v5974_v52, 7 }
 0x1a0   : > { %v1281_v35 = vsel %vm1185_vm1, 0.0, %v5973_v17  ;;  %v1854_v21 = vadd.f32 %v1822_v34, %v1786_v20  ;;  %v972_v47 = vadd.f32 %v4318_v43, %v929_v59  ;;  %v970_v51 = vadd.f32 %v4318_v43, %v927_v19 }
 0x1a1   : > { %v5976_v42 = vmov %v5973_v17  ;;  %v1921_v18 = vadd.f32 %v1889_v27, %v1853_v7  ;;  %v1957_v25 = vmul.f32 %v4743_v46, %v1309_v61  ;;  %v1958_v17 = vmul.f32 %v4743_v46, %v1389_v53 }
 0x1a2   : > { %v4890_v39 = vsel %vm1185_vm1, %v5976_v42, %v5975_v56  ;;  %v4895_v0 = vsel %vm1294_vm2, %v1310_v15, %v1311_v62  ;;  %v1922_v34 = vadd.f32 %v1890_v60, %v1854_v21  ;;  %v1008_v20 = vmax.f32 %v972_v47, 0.0 }
 0x1a3   : > { %v1006_v59 = vmax.f32 %v970_v51, 0.0  ;;  %v1419_v19 = vmul.f32 %v4337_v57, %v1281_v35  ;;  %v1620_v36 = vmul.f32 %v4339_v58, %v1200_v41  ;;  %v1989_v45 = vadd.f32 %v1957_v25, %v1921_v18  ;;  %v3507_v18 = vpop.f32.mrf.mxu0 }
 0x1a4   : > { %v1420_v56 = vmul.f32 %v4337_v57, %v4890_v39  ;;  %v1551_v27 = vmul.f32 %v4345_v1, %v4763_v63  ;;  %v1990_v7 = vadd.f32 %v1958_v17, %v1922_v34  ;;  %v4904_v42 = vmul.f32 %v4382_v28, %v1008_v20  ;;  %v5978_v34 = vld [vmem:[#allocation36_spill] sm:$0xff] }
 0x1a5   : > { %v4907_v15 = vsel %vm1294_vm2, %v1311_v62, 0.0  ;;  %v1555_v21 = vmul.f32 %v4345_v1, %v4895_v0  ;;  %v1585_v60 = vadd.f32 %v1553_v26, %v1517_v13  ;;  %v4911_v47 = vadd.f32 %v1554_v10, %v1518_v16  ;;  %v5977_v62 = vld [vmem:[#allocation33_spill] sm:$0xff]  ;;  %v5979_v16 = vld [vmem:[#allocation27_spill] sm:$0xff] }
 0x1a6   : > { %v1755_v41 = vmul.f32 %v4347_v2, %v1309_v61  ;;  %v2028_v51 = vadd.f32 %v4771_v31, %v1989_v45  ;;  %v1756_v63 = vmul.f32 %v4347_v2, %v1389_v53  ;;  %v2029_v25 = vadd.f32 %v4771_v31, %v1990_v7  ;;  %v5980_v61 = vld [vmem:[#allocation30_spill] sm:$0xff]  ;;  %v5981_v10 = vld [vmem:[#allocation31_spill] sm:$0xff] }
 0x1a7   : > { %v4918_v28 = vmul.f32 %v4385_v32, %v1006_v59  ;;  %v1519_v17 = vadd.f32 %v5977_v62, %v1419_v19  ;;  %v1520_v20 = vadd.f32 %v5978_v34, %v1420_v56  ;;  %v1556_v13 = vmul.f32 %v4345_v1, %v4907_v15 }
 0x1a8   : > { %v1583_v26 = vadd.f32 %v1551_v27, %v5979_v16  ;;  %v1584_v45 = vadd.f32 %v5981_v10, %v5980_v61  ;;  %v2060_v8 = vmax.f32 %v2028_v51, 0.0  ;;  %v2061_v30 = vmax.f32 %v2029_v25, 0.0  ;;  %v864_v27 = vpop.f32.mrf.mxu0  ;;  %v5985_v16 = vld [vmem:[#allocation35_spill] sm:$0xff] }
 0x1a9   : > { %v4928_v7 = vadd.f32 %v1555_v21, %v1519_v17  ;;  %v4932_v32 = vmul.f32 %v4331_v54, %v4904_v42  ;;  %v4936_v59 = vmul.f32 %v4333_v55, %v4904_v42  ;;  %v4941_v51 = vmul.f32 %v4331_v54, %v4918_v28 }
 0x1aa   : > { %v1651_v19 = vadd.f32 %v1619_v38, %v1583_v26  ;;  %v1652_v56 = vadd.f32 %v1620_v36, %v1584_v45  ;;  %v2090_v62 = vpack.c.bf16 %v2061_v30, %v2060_v8  ;;  %v4945_v21 = vmul.f32 %v4333_v55, %v4918_v28 }
 0x1ab   : > { %5982 = vst [vmem:[#allocation26_spill] sm:$0xff] %v4932_v32  ;;  %5983 = vst [vmem:[#allocation28_spill] sm:$0xff] %v4936_v59  ;;  %v4947_v25 = vadd.f32 %v1556_v13, %v1520_v20  ;;  %v1621_v17 = vmul.f32 %v4339_v58, %v1281_v35  ;;  %v1823_v30 = vmul.f32 %v4363_v14, %v1281_v35  ;;  %v5986_v20 = vrot.slane %v4616_v50, 7 }
 0x1ac   : > { %5984 = vst [vmem:[#allocation29_spill] sm:$0xff] %v4945_v21  ;;  %v1719_v61 = vadd.f32 %v5985_v16, %v1651_v19  ;;  %v1720_v36 = vadd.f32 %v4596_v29, %v1652_v56  ;;  %3533 = vmatprep.mubr.bf16.mxu0 %v2090_v62  ;;  %v1824_v8 = vmul.f32 %v4363_v14, %v4890_v39  ;;  %v5987_v13 = vrot.slane %v4587_v33, 7 }
 0x1ad   : > { %v932_v38 = vmul.f32 %v3507_v18, %v4308_v37  ;;  %v930_v26 = vmul.f32 %v4308_v37, %v864_v27  ;;  %v1891_v35 = vmul.f32 %v4351_v5, %v5972_v4  ;;  %v1892_v16 = vmul.f32 %v4351_v5, %v5974_v52 }
 0x1ae   : > { %v1787_v10 = vadd.f32 %v1755_v41, %v1719_v61  ;;  %v1788_v45 = vadd.f32 %v1756_v63, %v1720_v36  ;;  %v1206_v19 = vsel %vm1185_vm1, %v5987_v13, %v5986_v20  ;;  %v5988_v29 = vmov %v5987_v13 }
 0x1af   : > { %v1282_v56 = vsel %vm1185_vm1, 0.0, %v5988_v29  ;;  %v975_v62 = vadd.f32 %v4318_v43, %v932_v38  ;;  %v973_v18 = vadd.f32 %v4318_v43, %v930_v26  ;;  %v1314_v41 = vrot.slane %v4616_v50, 1 }
 0x1b0   : > { %v1855_v63 = vadd.f32 %v1823_v30, %v1787_v10  ;;  %v1856_v27 = vadd.f32 %v1824_v8, %v1788_v45  ;;  %v1959_v61 = vmul.f32 %v4743_v46, %v4895_v0  ;;  %v1313_v20 = vrot.slane %v4587_v33, 1 }
 0x1b1   : > { %v1011_v36 = vmax.f32 %v975_v62, 0.0  ;;  %v1421_v13 = vmul.f32 %v4337_v57, %v1282_v56  ;;  %v1422_v4 = vmul.f32 %v4337_v57, %v1206_v19  ;;  %v1960_v26 = vmul.f32 %v4743_v46, %v4907_v15 }
 0x1b2   : > { %v1923_v38 = vadd.f32 %v1891_v35, %v1855_v63  ;;  %v1924_v29 = vadd.f32 %v1892_v16, %v1856_v27  ;;  %v1009_v30 = vmax.f32 %v973_v18, 0.0  ;;  %v1622_v8 = vmul.f32 %v4339_v58, %v4890_v39  ;;  %v5989_v35 = vld [vmem:[#allocation24_spill] sm:$0xff]  ;;  %v5991_v16 = vld [vmem:[#allocation47_spill] sm:$0xff] }
 0x1b3   : > { %v1757_v52 = vmul.f32 %v4347_v2, %v4895_v0  ;;  %v4984_v10 = vsel %vm1294_vm2, %v1313_v20, %v1314_v41  ;;  %v4987_v45 = vsel %vm1294_vm2, %v1314_v41, 0.0  ;;  %v4990_v63 = vmul.f32 %v5989_v35, %v1011_v36  ;;  %v3508_v20 = vpop.f32.mrf.mxu0  ;;  %v5994_v36 = vld [vmem:[#allocation34_spill] sm:$0xff] }
 0x1b4   : > { %v1991_v62 = vadd.f32 %v1959_v61, %v1923_v38  ;;  %v1992_v53 = vadd.f32 %v1960_v26, %v1924_v29  ;;  %v1653_v27 = vadd.f32 %v1621_v17, %v1585_v60  ;;  %v1758_v18 = vmul.f32 %v4347_v2, %v4907_v15  ;;  %v5992_v61 = vld [vmem:[#allocation25_spill] sm:$0xff] }
 0x1b5   : > { %5990 = vst [vmem:[#allocation32_spill] sm:$0xff] %v4990_v63  ;;  %v1521_v39 = vadd.f32 %v4621_v12, %v1421_v13  ;;  %v1522_v34 = vadd.f32 %v5991_v16, %v1422_v4  ;;  %v1623_v0 = vmul.f32 %v4339_v58, %v1282_v56  ;;  %v5000_v38 = vmul.f32 %v5992_v61, %v1009_v30 }
 0x1b6   : > { %v2030_v59 = vadd.f32 %v4771_v31, %v1991_v62  ;;  %v2031_v41 = vadd.f32 %v4771_v31, %v1992_v53  ;;  %v1557_v60 = vmul.f32 %v4345_v1, %v4984_v10  ;;  %v1558_v15 = vmul.f32 %v4345_v1, %v4987_v45  ;;  %v5997_v62 = vld [vmem:[#allocation37_spill] sm:$0xff] }
 0x1b7   : > { %5993 = vst [vmem:[#allocation33_spill] sm:$0xff] %v5000_v38  ;;  %v5007_v12 = vmul.f32 %v4339_v58, %v1206_v19  ;;  %v1654_v17 = vadd.f32 %v1622_v8, %v4911_v47  ;;  %v1721_v13 = vadd.f32 %v5994_v36, %v1653_v27  ;;  %v5014_v26 = vmul.f32 %v4331_v54, %v4990_v63  ;;  %v867_v47 = vpop.f32.mrf.mxu0 }
 0x1b8   : > { %v2062_v4 = vmax.f32 %v2030_v59, 0.0  ;;  %v2063_v29 = vmax.f32 %v2031_v41, 0.0  ;;  %v5018_v30 = vmul.f32 %v4333_v55, %v4990_v63  ;;  %v1825_v32 = vmul.f32 %v4363_v14, %v1282_v56 }
 0x1b9   : > { %5995 = vst [vmem:[#allocation36_spill] sm:$0xff] %v5014_v26  ;;  %v1722_v16 = vadd.f32 %v5997_v62, %v1654_v17  ;;  %v1789_v21 = vadd.f32 %v1757_v52, %v1721_v13  ;;  %v1826_v27 = vmul.f32 %v4363_v14, %v1206_v19  ;;  %v1893_v41 = vmul.f32 %v4351_v5, %v4587_v33  ;;  %v5998_v17 = vld [vmem:[#allocation39_spill] sm:$0xff] }
 0x1ba   : > { %5996 = vst [vmem:[#allocation27_spill] sm:$0xff] %v5018_v30  ;;  %v2091_v8 = vpack.c.bf16 %v2063_v29, %v2062_v4  ;;  %v1894_v26 = vmul.f32 %v4351_v5, %v4616_v50  ;;  %v933_v30 = vmul.f32 %v3508_v20, %v4308_v37  ;;  %v1961_v56 = vmul.f32 %v4743_v46, %v4984_v10  ;;  %v6000_v4 = vld [vmem:[#allocation38_spill] sm:$0xff] }
 0x1bb   : > { %v1790_v36 = vadd.f32 %v1758_v18, %v1722_v16  ;;  %v1857_v53 = vadd.f32 %v1825_v32, %v1789_v21  ;;  %v931_v52 = vmul.f32 %v4308_v37, %v867_v47  ;;  %v5999_v13 = vrot.slane %v5998_v17, 7 }
 0x1bc   : > { %3534 = vmatmul.mubr.bf16.gmra.mxu0 %v2091_v8  ;;  %v6001_v19 = vrot.slane %v6000_v4, 7  ;;  %v976_v18 = vadd.f32 %v4318_v43, %v933_v30  ;;  %v1317_v20 = vrot.slane %v5998_v17, 1  ;;  %v5044_v62 = vmul.f32 %v4331_v54, %v5000_v38 }
 0x1bd   : > { %v1858_v21 = vadd.f32 %v1826_v27, %v1790_v36  ;;  %v1925_v50 = vadd.f32 %v1893_v41, %v1857_v53  ;;  %v5048_v37 = vmul.f32 %v4333_v55, %v5000_v38  ;;  %v1962_v16 = vmul.f32 %v4743_v46, %v4987_v45 }
 0x1be   : > { %v1209_v29 = vsel %vm1185_vm1, %v6001_v19, %v5999_v13  ;;  %v6002_v33 = vmov %v6001_v19  ;;  %6003 = vst [vmem:[#allocation30_spill] sm:$0xff] %v5044_v62  ;;  %v974_v47 = vadd.f32 %v4318_v43, %v931_v52  ;;  %v1012_v53 = vmax.f32 %v976_v18, 0.0  ;;  %v3511_v52 = vpop.f32.mrf.mxu0 }
 0x1bf   : > { %v1283_v32 = vsel %vm1185_vm1, 0.0, %v6002_v33  ;;  %6004 = vst [vmem:[#allocation31_spill] sm:$0xff] %v5048_v37  ;;  %v1926_v8 = vadd.f32 %v1894_v26, %v1858_v21  ;;  %v1993_v27 = vadd.f32 %v1961_v56, %v1925_v50  ;;  %v1316_v30 = vrot.slane %v6000_v4, 1  ;;  %v5058_v33 = vld [vmem:[#allocation10 + $0x38] sm:$0xff]  }
 0x1c0   : > { %v5054_v41 = vadd.f32 %v1557_v60, %v1521_v39  ;;  %v1010_v36 = vmax.f32 %v974_v47, 0.0  ;;  %v1423_v13 = vmul.f32 %v4337_v57, %v1283_v32  ;;  %v1424_v19 = vmul.f32 %v4337_v57, %v1209_v29  ;;  %6005 = vst [vmem:[#allocation35_spill] sm:$0xff] %v5058_v33  ;;  %3561 = vmatprep.subr.bf16.mxu1 %v5058_v33 }
 0x1c1   : > { %v1994_v59 = vadd.f32 %v1962_v16, %v1926_v8  ;;  %v2032_v37 = vadd.f32 %v4771_v31, %v1993_v27  ;;  %v5062_v63 = vsel %vm1294_vm2, %v1316_v30, %v1317_v20  ;;  %v5065_v43 = vsel %vm1294_vm2, %v1317_v20, 0.0  ;;  %v6009_v20 = vld [vmem:[#allocation44_spill] sm:$0xff] }
 0x1c2   : > { %v5067_v26 = vadd.f32 %v1558_v15, %v1522_v34  ;;  %v1759_v39 = vmul.f32 %v4347_v2, %v4984_v10  ;;  %v5072_v60 = vmul.f32 %v5989_v35, %v1012_v53  ;;  %v1655_v56 = vadd.f32 %v1623_v0, %v4928_v7  ;;  %v6008_v15 = vld [vmem:[#allocation40_spill] sm:$0xff]  ;;  %v6012_v53 = vld [vmem:[#allocation42_spill] sm:$0xff] }
 0x1c3   : > { %v1760_v21 = vmul.f32 %v4347_v2, %v4987_v45  ;;  %v2033_v50 = vadd.f32 %v4771_v31, %v1994_v59  ;;  %v5080_v18 = vmul.f32 %v5992_v61, %v1010_v36  ;;  %v1625_v34 = vmul.f32 %v4339_v58, %v1283_v32  ;;  %v880_v36 = vpop.f32.mrf.mxu0 }
 0x1c4   : > { %6006 = vst [vmem:[#allocation24_spill] sm:$0xff] %v5072_v60  ;;  %v1523_v10 = vadd.f32 %v6008_v15, %v1423_v13  ;;  %v1524_v35 = vadd.f32 %v6009_v20, %v1424_v19  ;;  %v1559_v7 = vmul.f32 %v4345_v1, %v5062_v63  ;;  %v1560_v0 = vmul.f32 %v4345_v1, %v5065_v43 }
 0x1c5   : > { %6007 = vst [vmem:[#allocation47_spill] sm:$0xff] %v5080_v18  ;;  %v2064_v16 = vmax.f32 %v2032_v37, 0.0  ;;  %v2065_v47 = vmax.f32 %v2033_v50, 0.0  ;;  %v1626_v45 = vmul.f32 %v4339_v58, %v1209_v29  ;;  %v1656_v61 = vadd.f32 %v5007_v12, %v4947_v25  ;;  %v6014_v25 = vld [vmem:[#allocation49_spill] sm:$0xff] }
 0x1c6   : > { %v5095_v8 = vmul.f32 %v4331_v54, %v5072_v60  ;;  %v5099_v27 = vmul.f32 %v4333_v55, %v5072_v60  ;;  %v1723_v30 = vadd.f32 %v6012_v53, %v1655_v56  ;;  %v5105_v19 = vmul.f32 %v4331_v54, %v5080_v18  ;;  %v6016_v53 = vld [vmem:[#allocation21_spill] sm:$0xff] }
 0x1c7   : > { %v2092_v37 = vpack.c.bf16 %v2065_v47, %v2064_v16  ;;  %v1724_v12 = vadd.f32 %v6014_v25, %v1656_v61  ;;  %v5110_v50 = vmul.f32 %v4333_v55, %v5080_v18  ;;  %v1827_v20 = vmul.f32 %v4363_v14, %v1283_v32  ;;  %v5117_v16 = vld [vmem:[%s5839_s2] ss:$0 sm:$0xff] }
 0x1c8   : > { %6010 = vst [vmem:[#allocation25_spill] sm:$0xff] %v5095_v8  ;;  %6011 = vst [vmem:[#allocation34_spill] sm:$0xff] %v5099_v27  ;;  %v1791_v15 = vadd.f32 %v1759_v39, %v1723_v30  ;;  %v1828_v59 = vmul.f32 %v4363_v14, %v1209_v29  ;;  %v936_v47 = vmul.f32 %v5117_v16, %v3511_v52  ;;  %v1020_v61 = vadd.s32 16, %v6016_v53  ;;  %v5131_v30 = vld [vmem:[%s5840_s3] ss:$0 sm:$0xff]  ;;  %v6022_v8 = vld [vmem:[#allocation22_spill] sm:$0xff] }
 0x1c9   : > { %6013 = vst [vmem:[#allocation37_spill] sm:$0xff] %v5105_v19  ;;  %6015 = vst [vmem:[#allocation39_spill] sm:$0xff] %v5110_v50  ;;  %3537 = vmatprep.mubr.bf16.mxu0 %v2092_v37  ;;  %v1792_v56 = vadd.f32 %v1760_v21, %v1724_v12  ;;  %v934_v25 = vmul.f32 %v5117_v16, %v880_v36  ;;  %v5122_v13 = vadd.f32 %v1559_v7, %v1523_v10  ;;  %v6029_v18 = vld [vmem:[#allocation43_spill] sm:$0xff] }
 0x1ca   : > { %v1859_v39 = vadd.f32 %v1827_v20, %v1791_v15  ;;  %v1895_v32 = vmul.f32 %v4351_v5, %v6000_v4  ;;  %v1896_v29 = vmul.f32 %v4351_v5, %v5998_v17  ;;  %v979_v52 = vadd.f32 %v5131_v30, %v936_v47  ;;  %v6018_v15 = vld [vmem:[#allocation46_spill] sm:$0xff] }
 0x1cb   : > { %v1860_v21 = vadd.f32 %v1828_v59, %v1792_v56  ;;  %v1025_v37 = vadd.s32 4294967295, %v1020_v61  ;;  %v977_v36 = vadd.f32 %v5131_v30, %v934_v25  ;;  %v1963_v7 = vmul.f32 %v4743_v46, %v5062_v63 }
 0x1cc   : > { %v1927_v10 = vadd.f32 %v1895_v32, %v1859_v39  ;;  %v1964_v4 = vmul.f32 %v4743_v46, %v5065_v43  ;;  %v1320_v17 = vrot.slane %v4667_v3, 1  ;;  %v6017_v12 = vrot.slane %v4667_v3, 7 }
 0x1cd   : > { %v1928_v59 = vadd.f32 %v1896_v29, %v1860_v21  ;;  %vm1031_vm3 = vcmp.lt.s32.totalorder %v1025_v37, 16  ;;  %v6019_v20 = vrot.slane %v6018_v15, 7  ;;  %v1015_v25 = vmax.f32 %v979_v52, 0.0  ;;  %v6023_v37 = vld [vmem:[#allocation23_spill] sm:$0xff] }
 0x1ce   : > { %v1995_v61 = vadd.f32 %v1963_v7, %v1927_v10  ;;  %v6021_v39 = vmov 0.0   ;;  %v1319_v27 = vrot.slane %v6018_v15, 1  ;;  %v1013_v21 = vmax.f32 %v977_v36, 0.0 }
 0x1cf   : > { %v1212_v56 = vsel %vm1185_vm1, %v6019_v20, %v6017_v12  ;;  %v6020_v47 = vmov %v6019_v20  ;;  %v3199_v32 = vsel %vm1031_vm3, 1.0, %v6021_v39  ;;  %v1996_v50 = vadd.f32 %v1964_v4, %v1928_v59 }
 0x1d0   : > { %v1284_v53 = vsel %vm1185_vm1, 0.0, %v6020_v47  ;;  %v5151_v29 = vrot.slane %v3199_v32, %v6022_v8  ;;  %v5154_v60 = vrot.slane %v3199_v32, %v6023_v37  ;;  %v5156_v19 = vadd.f32 %v1560_v0, %v1524_v35 }
 0x1d1   : > { %v1761_v12 = vmul.f32 %v4347_v2, %v5062_v63  ;;  %v2034_v10 = vadd.f32 %v4771_v31, %v1995_v61  ;;  %v1321_v52 = vsel %vm1294_vm2, %v1319_v27, %v1320_v17  ;;  %v1762_v7 = vmul.f32 %v4347_v2, %v5065_v43  ;;  %v3512_v27 = vpop.f32.mrf.mxu0  ;;  %v6025_v61 = vld [vmem:[#allocation41_spill] sm:$0xff] }
 0x1d2   : > { %v2035_v4 = vadd.f32 %v4771_v31, %v1996_v50  ;;  %v1393_v8 = vsel %vm1294_vm2, %v1320_v17, 0.0  ;;  %v1657_v36 = vadd.f32 %v1625_v34, %v5054_v41  ;;  %v5168_v59 = vmul.f32 %v5151_v29, %v1015_v25 }
 0x1d3   : > { %v5171_v35 = vmul.f32 %v4337_v57, %v1284_v53  ;;  %v5174_v63 = vmul.f32 %v4337_v57, %v1212_v56  ;;  %v1658_v0 = vadd.f32 %v1626_v45, %v5067_v26  ;;  %v2066_v20 = vmax.f32 %v2034_v10, 0.0  ;;  %v6026_v26 = vld [vmem:[#allocation45_spill] sm:$0xff]  ;;  %v883_v38 = vpop.f32.mrf.mxu0 }
 0x1d4   : > { %v2067_v43 = vmax.f32 %v2035_v4, 0.0  ;;  %v5178_v50 = vmul.f32 %v5154_v60, %v1013_v21  ;;  %v5181_v17 = vmul.f32 %v4345_v1, %v1321_v52  ;;  %v5184_v41 = vmul.f32 %v4345_v1, %v1393_v8 }
 0x1d5   : > { %v1627_v34 = vmul.f32 %v4339_v58, %v1284_v53  ;;  %v1628_v47 = vmul.f32 %v4339_v58, %v1212_v56  ;;  %v1725_v25 = vadd.f32 %v6025_v61, %v1657_v36  ;;  %v1726_v45 = vadd.f32 %v6026_v26, %v1658_v0 }
 0x1d6   : > { %6024 = vst [vmem:[#allocation38_spill] sm:$0xff] %v5178_v50  ;;  %v2093_v39 = vpack.c.bf16 %v2067_v43, %v2066_v20  ;;  %v1763_v32 = vmul.f32 %v4347_v2, %v1321_v52  ;;  %v5192_v21 = vmul.f32 %v4347_v2, %v1393_v8  ;;  %v5891_v37 = vrot.slane %v5168_v59, 7 }
 0x1d7   : > { %v1793_v4 = vadd.f32 %v1761_v12, %v1725_v25  ;;  %v1829_v62 = vmul.f32 %v4363_v14, %v1284_v53  ;;  %v1794_v36 = vadd.f32 %v1762_v7, %v1726_v45  ;;  %v1830_v20 = vmul.f32 %v4363_v14, %v1212_v56 }
 0x1d8   : > { %3538 = vmatmul.mubr.bf16.gmra.mxu0 %v2093_v39  ;;  %v1897_v0 = vmul.f32 %v4351_v5, %v6018_v15  ;;  %v1898_v61 = vmul.f32 %v4351_v5, %v4667_v3  ;;  %v1965_v26 = vmul.f32 %v4743_v46, %v1321_v52  ;;  %v937_v12 = vmul.f32 %v5117_v16, %v3512_v27  ;;  %v6027_v39 = vld [vmem:[#allocation48_spill] sm:$0xff] }
 0x1d9   : > { %v1861_v43 = vadd.f32 %v1829_v62, %v1793_v4  ;;  %v1862_v25 = vadd.f32 %v1830_v20, %v1794_v36  ;;  %v935_v53 = vmul.f32 %v5117_v16, %v883_v38  ;;  %v6028_v10 = vrot.slane %v6027_v39, 7 }
 0x1da   : > { %v6030_v7 = vrot.slane %v6029_v18, 7  ;;  %v980_v52 = vadd.f32 %v5131_v30, %v937_v12  ;;  %v1322_v27 = vrot.slane %v6029_v18, 1  ;;  %v1323_v45 = vrot.slane %v6027_v39, 1 }
 0x1db   : > { %v1929_v3 = vadd.f32 %v1897_v0, %v1861_v43  ;;  %v1930_v38 = vadd.f32 %v1898_v61, %v1862_v25  ;;  %v1966_v16 = vmul.f32 %v4743_v46, %v1393_v8  ;;  %v978_v4 = vadd.f32 %v5131_v30, %v935_v53 }
 0x1dc   : > { %v5211_v56 = vsel %vm1185_vm1, %v6030_v7, %v6028_v10  ;;  %v6031_v15 = vmov %v6030_v7  ;;  %v1293_v36 = vsel %vm1185_vm1, 0.0, %v5891_v37  ;;  %v5229_v0 = vsel %vm1294_vm2, %v1322_v27, %v1323_v45 }
 0x1dd   : > { %v5216_v62 = vsel %vm1185_vm1, 0.0, %v6031_v15  ;;  %v1428_v10 = vmul.f32 %v4337_v57, %v5211_v56  ;;  %v1997_v20 = vadd.f32 %v1965_v26, %v1929_v3  ;;  %v6032_v61 = vrot.slane %v5178_v50, 7  ;;  %v6034_v26 = vld [vmem:[#allocation53_spill] sm:$0xff] }
 0x1de   : > { %v1427_v43 = vmul.f32 %v4337_v57, %v5216_v62  ;;  %v1998_v30 = vadd.f32 %v1966_v16, %v1930_v38  ;;  %v1016_v12 = vmax.f32 %v980_v52, 0.0  ;;  %v5239_v25 = vsel %vm1294_vm2, %v1323_v45, 0.0  ;;  %v6037_v16 = vld [vmem:[#allocation50_spill] sm:$0xff] }
 0x1df   : > { %v5236_v8 = vsel %vm1185_vm1, 0.0, %v6032_v61  ;;  %v2036_v53 = vadd.f32 %v4771_v31, %v1997_v20  ;;  %v1014_v7 = vmax.f32 %v978_v4, 0.0  ;;  %v1528_v15 = vadd.f32 %v6034_v26, %v1428_v10  ;;  %v6039_v26 = vld [vmem:[#allocation52_spill] sm:$0xff] }
 0x1e0   : > { %6033 = vst [vmem:[#allocation40_spill] sm:$0xff] %v5236_v8  ;;  %v1563_v3 = vmul.f32 %v4345_v1, %v5229_v0  ;;  %v2037_v37 = vadd.f32 %v4771_v31, %v1998_v30  ;;  %v1659_v61 = vadd.f32 %v1627_v34, %v5122_v13  ;;  %v1660_v38 = vadd.f32 %v1628_v47, %v5156_v19 }
 0x1e1   : > { %v5250_v52 = vmul.f32 %v4363_v14, %v1293_v36  ;;  %v5254_v45 = vmul.f32 %v4333_v55, %v5178_v50  ;;  %v1527_v4 = vadd.f32 %v6037_v16, %v1427_v43  ;;  %v1564_v10 = vmul.f32 %v4345_v1, %v5239_v25 }
 0x1e2   : > { %v5261_v20 = vmul.f32 %v4339_v58, %v5236_v8  ;;  %v2068_v30 = vmax.f32 %v2036_v53, 0.0  ;;  %v2069_v13 = vmax.f32 %v2037_v37, 0.0  ;;  %v5264_v19 = vmul.f32 %v5151_v29, %v1016_v12 }
 0x1e3   : > { %6035 = vst [vmem:[#allocation44_spill] sm:$0xff] %v5250_v52  ;;  %6036 = vst [vmem:[#allocation42_spill] sm:$0xff] %v5254_v45  ;;  %v5267_v34 = vmul.f32 %v5154_v60, %v1014_v7  ;;  %v1595_v47 = vadd.f32 %v1563_v3, %v1527_v4  ;;  %v1596_v36 = vadd.f32 %v1564_v10, %v1528_v15  ;;  %v6040_v15 = vld [vmem:[#allocation54_spill] sm:$0xff] }
 0x1e4   : > { %6038 = vst [vmem:[#allocation49_spill] sm:$0xff] %v5261_v20  ;;  %v1727_v27 = vadd.f32 %v6039_v26, %v1659_v61  ;;  %v2094_v43 = vpack.c.bf16 %v2069_v13, %v2068_v30  ;;  %v1728_v16 = vadd.f32 %v4728_v44, %v1660_v38  ;;  %v1831_v52 = vmul.f32 %v4363_v14, %v5216_v62 }
 0x1e5   : > { %v1832_v53 = vmul.f32 %v4363_v14, %v5211_v56  ;;  %v1899_v29 = vmul.f32 %v4351_v5, %v6029_v18  ;;  %v1900_v60 = vmul.f32 %v4351_v5, %v6027_v39  ;;  %v1967_v12 = vmul.f32 %v4743_v46, %v5229_v0 }
 0x1e6   : > { %v1795_v37 = vadd.f32 %v1763_v32, %v1727_v27  ;;  %3541 = vmatprep.mubr.bf16.mxu0 %v2094_v43  ;;  %v1796_v7 = vadd.f32 %v5192_v21, %v1728_v16  ;;  %v1968_v44 = vmul.f32 %v4743_v46, %v5239_v25  ;;  %v1216_v3 = vrot.slane %v6040_v15, 7 }
 0x1e7   : > { %v1217_v61 = vrot.slane %v4818_v11, 7  ;;  %v6041_v27 = vrot.slane %v4795_v9, 7  ;;  %v6042_v38 = vrot.slane %v4696_v23, 7  ;;  %v1325_v21 = vrot.slane %v6040_v15, 1 }
 0x1e8   : > { %v1863_v32 = vadd.f32 %v1831_v52, %v1795_v37  ;;  %v1864_v13 = vadd.f32 %v1832_v53, %v1796_v7  ;;  %v1286_v43 = vsel %vm1185_vm1, 0.0, %v1216_v3  ;;  %v1326_v52 = vrot.slane %v4818_v11, 1 }
 0x1e9   : > { %v5291_v4 = vsel %vm1185_vm1, %v6042_v38, %v6041_v27  ;;  %v6043_v10 = vmov %v6042_v38  ;;  %v1218_v26 = vsel %vm1185_vm1, %v1216_v3, %v1217_v61  ;;  %v1429_v37 = vmul.f32 %v4337_v57, %v1286_v43  ;;  %v6044_v3 = vld [vmem:[#allocation51_spill] sm:$0xff] }
 0x1ea   : > { %v5296_v30 = vsel %vm1185_vm1, 0.0, %v6043_v10  ;;  %v1931_v16 = vadd.f32 %v1899_v29, %v1863_v32  ;;  %v1430_v27 = vmul.f32 %v4337_v57, %v1218_v26  ;;  %v1497_v38 = vmul.f32 %v4331_v54, %v6040_v15  ;;  %v6045_v61 = vld [vmem:[#allocation55_spill] sm:$0xff] }
 0x1eb   : > { %v1932_v45 = vadd.f32 %v1900_v60, %v1864_v13  ;;  %v1327_v10 = vsel %vm1294_vm2, %v1325_v21, %v1326_v52  ;;  %v5308_v20 = vsel %vm1294_vm2, %v1326_v52, 0.0  ;;  %v1498_v53 = vmul.f32 %v4331_v54, %v4818_v11 }
 0x1ec   : > { %v1999_v7 = vadd.f32 %v1967_v12, %v1931_v16  ;;  %v1525_v29 = vadd.f32 %v6044_v3, %v5171_v35  ;;  %v1526_v32 = vadd.f32 %v6045_v61, %v5174_v63  ;;  %v1529_v8 = vadd.f32 %v1497_v38, %v1429_v37 }
 0x1ed   : > { %v2000_v50 = vadd.f32 %v1968_v44, %v1932_v45  ;;  %v1530_v33 = vadd.f32 %v1498_v53, %v1430_v27  ;;  %v1565_v60 = vmul.f32 %v4345_v1, %v1327_v10  ;;  %v1566_v21 = vmul.f32 %v4345_v1, %v5308_v20 }
 0x1ee   : > { %v2038_v13 = vadd.f32 %v4771_v31, %v1999_v7  ;;  %v1593_v52 = vadd.f32 %v5181_v17, %v1525_v29  ;;  %v1594_v54 = vadd.f32 %v5184_v41, %v1526_v32  ;;  %v1629_v35 = vmul.f32 %v4339_v58, %v5216_v62 }
 0x1ef   : > { %v2039_v12 = vadd.f32 %v4771_v31, %v2000_v50  ;;  %v1597_v63 = vadd.f32 %v1565_v60, %v1529_v8  ;;  %v1598_v16 = vadd.f32 %v1566_v21, %v1530_v33  ;;  %v1630_v45 = vmul.f32 %v4339_v58, %v5211_v56 }
 0x1f0   : > { %v2070_v44 = vmax.f32 %v2038_v13, 0.0  ;;  %v1631_v37 = vmul.f32 %v4339_v58, %v1286_v43  ;;  %v1632_v27 = vmul.f32 %v4339_v58, %v1218_v26  ;;  %v1633_v17 = vmul.f32 %v4339_v58, %v5296_v30 }
 0x1f1   : > { %v2071_v38 = vmax.f32 %v2039_v12, 0.0  ;;  %v1634_v41 = vmul.f32 %v4339_v58, %v5291_v4  ;;  %v1661_v62 = vadd.f32 %v1629_v35, %v1593_v52  ;;  %v1662_v53 = vadd.f32 %v1630_v45, %v1594_v54 }
 0x1f2   : > { %v1663_v50 = vadd.f32 %v1631_v37, %v1595_v47  ;;  %v1664_v8 = vadd.f32 %v1632_v27, %v1596_v36  ;;  %v5333_v33 = vadd.f32 %v1633_v17, %v1597_v63  ;;  %v1697_v56 = vmul.f32 %v4333_v55, %v6029_v18 }
 0x1f3   : > { %v2095_v7 = vpack.c.bf16 %v2071_v38, %v2070_v44  ;;  %v5337_v3 = vadd.f32 %v1634_v41, %v1598_v16  ;;  %v1698_v29 = vmul.f32 %v4333_v55, %v6027_v39  ;;  %v1699_v61 = vmul.f32 %v4333_v55, %v6040_v15 }
 0x1f4   : > { %v1238_v32 = vrot.slane %v5264_v19, 7  ;;  %v1700_v47 = vmul.f32 %v4333_v55, %v4818_v11  ;;  %v1729_v36 = vadd.f32 %v1697_v56, %v1661_v62  ;;  %v1765_v60 = vmul.f32 %v4347_v2, %v5229_v0 }
 0x1f5   : > { %3542 = vmatmul.mubr.bf16.gmra.mxu0 %v2095_v7  ;;  %v1730_v18 = vadd.f32 %v1698_v29, %v1662_v53  ;;  %v1731_v21 = vadd.f32 %v1699_v61, %v1663_v50  ;;  %v1766_v13 = vmul.f32 %v4347_v2, %v5239_v25  ;;  %v1767_v39 = vmul.f32 %v4347_v2, %v1327_v10 }
 0x1f6   : > { %v1347_v52 = vrot.slane %v5264_v19, 1  ;;  %v1732_v54 = vadd.f32 %v1700_v47, %v1664_v8  ;;  %v1797_v35 = vadd.f32 %v1765_v60, %v1729_v36  ;;  %v1833_v12 = vmul.f32 %v4363_v14, %v1286_v43 }
 0x1f7   : > { %v1235_v63 = vrot.slane %v5267_v34, 7  ;;  %v1768_v16 = vmul.f32 %v4347_v2, %v5308_v20  ;;  %v1798_v0 = vadd.f32 %v1766_v13, %v1730_v18  ;;  %v1834_v45 = vmul.f32 %v4363_v14, %v1218_v26 }
 0x1f8   : > { %v1799_v44 = vadd.f32 %v1767_v39, %v1731_v21  ;;  %v1865_v37 = vadd.f32 %v1833_v12, %v1797_v35  ;;  %v1901_v25 = vmul.f32 %v4351_v5, %v6040_v15  ;;  %v1902_v27 = vmul.f32 %v4351_v5, %v4818_v11 }
 0x1f9   : > { %v1800_v17 = vadd.f32 %v1768_v16, %v1732_v54  ;;  %v1866_v38 = vadd.f32 %v1834_v45, %v1798_v0  ;;  %v1969_v43 = vmul.f32 %v4743_v46, %v1327_v10  ;;  %v1329_v41 = vrot.slane %v4795_v9, 1 }
 0x1fa   : > { %v1933_v62 = vadd.f32 %v1901_v25, %v1865_v37  ;;  %v1328_v53 = vrot.slane %v4696_v23, 1  ;;  %v1431_v26 = vmul.f32 %v4337_v57, %v5296_v30  ;;  %v1432_v50 = vmul.f32 %v4337_v57, %v5291_v4 }
 0x1fb   : > { %v1344_v15 = vrot.slane %v5267_v34, 1  ;;  %v1934_v8 = vadd.f32 %v1902_v27, %v1866_v38  ;;  %v1970_v11 = vmul.f32 %v4743_v46, %v5308_v20  ;;  %v1835_v10 = vmul.f32 %v4363_v14, %v5296_v30 }
 0x1fc   : > { %v5375_v56 = vmul.f32 %v4333_v55, %v5267_v34  ;;  %v2001_v7 = vadd.f32 %v1969_v43, %v1933_v62  ;;  %v1330_v29 = vsel %vm1294_vm2, %v1328_v53, %v1329_v41  ;;  %v1836_v61 = vmul.f32 %v4363_v14, %v5291_v4 }
 0x1fd   : > { %v6046_v47 = vrot.slane %v5168_v59, 7  ;;  %v2002_v60 = vadd.f32 %v1970_v11, %v1934_v8  ;;  %v1396_v20 = vsel %vm1294_vm2, %v1329_v41, 0.0  ;;  %v1867_v18 = vadd.f32 %v1835_v10, %v1799_v44 }
 0x1fe   : > { %v2040_v30 = vadd.f32 %v4771_v31, %v2001_v7  ;;  %v1531_v55 = vadd.f32 %v4784_v40, %v1431_v26  ;;  %v1532_v21 = vadd.f32 %v4828_v48, %v1432_v50  ;;  %v1868_v13 = vadd.f32 %v1836_v61, %v1800_v17 }
 0x1ff   : > { %v5383_v36 = vsel %vm1185_vm1, %v6046_v47, %v1238_v32  ;;  %v2041_v39 = vadd.f32 %v4771_v31, %v2002_v60  ;;  %v1567_v4 = vmul.f32 %v4345_v1, %v1330_v29  ;;  %v1903_v54 = vmul.f32 %v4351_v5, %v4696_v23 }
 0x200   : > { %v1904_v32 = vmul.f32 %v4351_v5, %v4795_v9  ;;  %v2072_v35 = vmax.f32 %v2040_v30, 0.0  ;;  %v1971_v12 = vmul.f32 %v4743_v46, %v1330_v29  ;;  %v6047_v16 = vrot.slane %v4918_v28, 7 }
 0x201   : > { %v6048_v40 = vrot.slane %v4821_v22, 7  ;;  %v2073_v44 = vmax.f32 %v2041_v39, 0.0  ;;  %v1935_v37 = vadd.f32 %v1903_v54, %v1867_v18  ;;  %v1972_v23 = vmul.f32 %v4743_v46, %v1396_v20 }
 0x202   : > { %v1936_v25 = vadd.f32 %v1904_v32, %v1868_v13  ;;  %v1568_v9 = vmul.f32 %v4345_v1, %v1396_v20  ;;  %v1769_v27 = vmul.f32 %v4347_v2, %v1330_v29  ;;  %v1332_v17 = vrot.slane %v4918_v28, 1 }
 0x203   : > { %v1224_v48 = vsel %vm1185_vm1, %v6048_v40, %v6047_v16  ;;  %v6049_v0 = vmov %v6048_v40  ;;  %v2096_v43 = vpack.c.bf16 %v2073_v44, %v2072_v35  ;;  %v2003_v41 = vadd.f32 %v1971_v12, %v1935_v37  ;;  %v6051_v12 = vld [vmem:[#allocation56_spill] sm:$0xff] }
 0x204   : > { %v1288_v45 = vsel %vm1185_vm1, 0.0, %v6049_v0  ;;  %v2004_v62 = vadd.f32 %v1972_v23, %v1936_v25  ;;  %v1434_v53 = vmul.f32 %v4337_v57, %v1224_v48  ;;  %v1599_v26 = vadd.f32 %v1567_v4, %v1531_v55 }
 0x205   : > { %v1433_v38 = vmul.f32 %v4337_v57, %v1288_v45  ;;  %v1600_v50 = vadd.f32 %v1568_v9, %v1532_v21  ;;  %v1770_v8 = vmul.f32 %v4347_v2, %v1396_v20  ;;  %v1331_v11 = vrot.slane %v4821_v22, 1  ;;  %3545 = vmatprep.mubr.bf16.mxu1 %v2096_v43 }
 0x206   : > { %v2042_v46 = vadd.f32 %v4771_v31, %v2003_v41  ;;  %v2043_v10 = vadd.f32 %v4771_v31, %v2004_v62  ;;  %v1635_v7 = vmul.f32 %v4339_v58, %v1288_v45  ;;  %v1636_v29 = vmul.f32 %v4339_v58, %v1224_v48  ;;  %v3775_v62 = vld [vmem:[#allocation10 + $0x28] sm:$0xff]  }
 0x207   : > { %v1333_v61 = vsel %vm1294_vm2, %v1331_v11, %v1332_v17  ;;  %v1397_v47 = vsel %vm1294_vm2, %v1332_v17, 0.0  ;;  %v1733_v60 = vadd.f32 %v4800_v24, %v5333_v33  ;;  %v1734_v20 = vadd.f32 %v4832_v6, %v5337_v3  ;;  %v3774_v33 = vld [vmem:[#allocation10 + $0x30] sm:$0xff]  }
 0x208   : > { %v2074_v18 = vmax.f32 %v2042_v46, 0.0  ;;  %v2075_v30 = vmax.f32 %v2043_v10, 0.0  ;;  %v1533_v55 = vadd.f32 %v4853_v49, %v1433_v38  ;;  %v1534_v31 = vadd.f32 %v4941_v51, %v1434_v53 }
 0x209   : > { %v1801_v21 = vadd.f32 %v1769_v27, %v1733_v60  ;;  %v1802_v13 = vadd.f32 %v1770_v8, %v1734_v20  ;;  %v1837_v39 = vmul.f32 %v4363_v14, %v1288_v45  ;;  %v1838_v4 = vmul.f32 %v4363_v14, %v1224_v48  ;;  %v5437_v48 = vld [vmem:[#allocation7 + $0x8] ss:$0 sm:$0xff]  ;;  %v6054_v27 = vld [vmem:[#allocation35_spill] sm:$0xff] }
 0x20a   : > { %v2097_v54 = vpack.c.bf16 %v2075_v30, %v2074_v18  ;;  %v1569_v32 = vmul.f32 %v4345_v1, %v1333_v61  ;;  %v1570_v24 = vmul.f32 %v4345_v1, %v1397_v47  ;;  %v1905_v6 = vmul.f32 %v4351_v5, %v4821_v22 }
 0x20b   : > { %v1869_v3 = vadd.f32 %v1837_v39, %v1801_v21  ;;  %v1870_v35 = vadd.f32 %v1838_v4, %v1802_v13  ;;  %v1906_v49 = vmul.f32 %v4351_v5, %v4918_v28  ;;  %v6050_v51 = vrot.slane %v4904_v42, 7  ;;  %v6056_v13 = vld [vmem:[#allocation57_spill] sm:$0xff] }
 0x20c   : > { %v6052_v16 = vrot.slane %v6051_v12, 7  ;;  %3546 = vmatmul.mubr.bf16.vlgmr.msra.gmra.mxu1 %v2097_v54  ;;  %v1973_v0 = vmul.f32 %v5437_v48, %v1333_v61  ;;  %v1974_v45 = vmul.f32 %v5437_v48, %v1397_v47  ;;  %v1335_v37 = vrot.slane %v4904_v42, 1  ;;  %v3776_v54 = vld [vmem:[#allocation10 + $0x20] sm:$0xff]  }
 0x20d   : > { %v1937_v28 = vadd.f32 %v1905_v6, %v1869_v3  ;;  %v1938_v25 = vadd.f32 %v1906_v49, %v1870_v35  ;;  %v1334_v23 = vrot.slane %v6051_v12, 1  ;;  %3562 = vmatpush3.bf16.msra.mxu1 %v6054_v27  ;;  %v1601_v17 = vadd.f32 %v1569_v32, %v1533_v55  ;;  %v6055_v55 = vld [vmem:[#allocation26_spill] sm:$0xff] }
 0x20e   : > { %v1227_v40 = vsel %vm1185_vm1, %v6052_v16, %v6050_v51  ;;  %v6053_v22 = vmov %v6052_v16  ;;  %v1771_v38 = vmul.f32 %v4347_v2, %v1333_v61  ;;  %v1772_v43 = vmul.f32 %v4347_v2, %v1397_v47  ;;  %3563 = vmatprep.subr.bf16.mxu1 %v3774_v33  ;;  %v5457_v61 = vld [vmem:[%s5842_s5] ss:$0 sm:$0xff] }
 0x20f   : > { %v1289_v44 = vsel %vm1185_vm1, 0.0, %v6053_v22  ;;  %v1436_v9 = vmul.f32 %v4337_v57, %v1227_v40  ;;  %v1602_v53 = vadd.f32 %v1570_v24, %v1534_v31  ;;  %v2005_v8 = vadd.f32 %v1973_v0, %v1937_v28 }
 0x210   : > { %v1435_v41 = vmul.f32 %v4337_v57, %v1289_v44  ;;  %v2006_v11 = vadd.f32 %v1974_v45, %v1938_v25  ;;  %v1336_v46 = vsel %vm1294_vm2, %v1334_v23, %v1335_v37  ;;  %v1398_v10 = vsel %vm1294_vm2, %v1335_v37, 0.0  ;;  %v6059_v45 = vld [vmem:[#allocation47_spill] sm:$0xff]  ;;  %v6061_v37 = vld [vmem:[#allocation33_spill] sm:$0xff] }
 0x211   : > { %v1637_v60 = vmul.f32 %v4339_v58, %v1289_v44  ;;  %v1667_v20 = vadd.f32 %v1635_v7, %v1599_v26  ;;  %v1668_v18 = vadd.f32 %v1636_v29, %v1600_v50  ;;  %v2044_v47 = vadd.f32 %v5457_v61, %v2005_v8  ;;  %3564 = vmatpush3.bf16.msra.mxu1 %v3774_v33  ;;  %v6057_v26 = vld [vmem:[#allocation59_spill] sm:$0xff]  ;;  %v6058_v7 = vld [vmem:[#allocation29_spill] sm:$0xff] }
 0x212   : > { %v2045_v30 = vadd.f32 %v5457_v61, %v2006_v11  ;;  %v1536_v31 = vadd.f32 %v6055_v55, %v1436_v9  ;;  %v1638_v21 = vmul.f32 %v4339_v58, %v1227_v40  ;;  %v1535_v39 = vadd.f32 %v6056_v13, %v1435_v41  ;;  %3565 = vmatprep.subr.bf16.mxu1 %v3775_v62 }
 0x213   : > { %v1571_v4 = vmul.f32 %v4345_v1, %v1336_v46  ;;  %v1735_v50 = vadd.f32 %v6057_v26, %v1667_v20  ;;  %v1736_v29 = vadd.f32 %v6058_v7, %v1668_v18  ;;  %v2076_v32 = vmax.f32 %v2044_v47, 0.0  ;;  %v3778_v7 = vld [vmem:[#allocation10 + $0x10] sm:$0xff]  }
 0x214   : > { %v2077_v24 = vmax.f32 %v2045_v30, 0.0  ;;  %v1572_v6 = vmul.f32 %v4345_v1, %v1398_v10  ;;  %v1773_v3 = vmul.f32 %v4347_v2, %v1336_v46  ;;  %v1839_v33 = vmul.f32 %v4363_v14, %v1289_v44 }
 0x215   : > { %v1803_v35 = vadd.f32 %v1771_v38, %v1735_v50  ;;  %v1804_v49 = vadd.f32 %v1772_v43, %v1736_v29  ;;  %v1840_v51 = vmul.f32 %v4363_v14, %v1227_v40  ;;  %v1907_v0 = vmul.f32 %v4351_v5, %v6051_v12  ;;  %3566 = vmatpush3.bf16.msra.mxu1 %v3775_v62  ;;  %v3777_v12 = vld [vmem:[#allocation10 + $0x18] sm:$0xff]   ;;  %v6064_v29 = vld [vmem:[#allocation30_spill] sm:$0xff] }
 0x216   : > { %v2098_v16 = vpack.c.bf16 %v2077_v24, %v2076_v32  ;;  %v6060_v22 = vrot.slane %v6059_v45, 7  ;;  %v6062_v28 = vrot.slane %v6061_v37, 7  ;;  %v1908_v40 = vmul.f32 %v4351_v5, %v4904_v42  ;;  %3567 = vmatprep.subr.bf16.mxu1 %v3776_v54  ;;  %v6065_v24 = vld [vmem:[#allocation37_spill] sm:$0xff] }
 0x217   : > { %v1871_v27 = vadd.f32 %v1839_v33, %v1803_v35  ;;  %v1872_v38 = vadd.f32 %v1840_v51, %v1804_v49  ;;  %v1338_v44 = vrot.slane %v6059_v45, 1  ;;  %v1603_v43 = vadd.f32 %v1571_v4, %v1535_v39  ;;  %v6066_v49 = vld [vmem:[#allocation58_spill] sm:$0xff]  ;;  %v6067_v33 = vld [vmem:[#allocation28_spill] sm:$0xff] }
 0x218   : > { %v1230_v25 = vsel %vm1185_vm1, %v6062_v28, %v6060_v22  ;;  %v6063_v23 = vmov %v6062_v28  ;;  %3549 = vmatprep.mubr.bf16.mxu1 %v2098_v16  ;;  %v1337_v41 = vrot.slane %v6061_v37, 1  ;;  %v1975_v62 = vmul.f32 %v5437_v48, %v1336_v46 }
 0x219   : > { %v1290_v9 = vsel %vm1185_vm1, 0.0, %v6063_v23  ;;  %v1438_v11 = vmul.f32 %v4337_v57, %v1230_v25  ;;  %v1939_v20 = vadd.f32 %v1907_v0, %v1871_v27  ;;  %v1940_v18 = vadd.f32 %v1908_v40, %v1872_v38  ;;  %3568 = vmatpush3.bf16.msra.mxu1 %v3776_v54  ;;  %v6068_v38 = vld [vmem:[#allocation24_spill] sm:$0xff] }
 0x21a   : > { %v1437_v8 = vmul.f32 %v4337_v57, %v1290_v9  ;;  %v1976_v47 = vmul.f32 %v5437_v48, %v1398_v10  ;;  %v1604_v30 = vadd.f32 %v1572_v6, %v1536_v31  ;;  %v1774_v42 = vmul.f32 %v4347_v2, %v1398_v10  ;;  %3569 = vmatprep.subr.bf16.mxu1 %v3777_v12 }
 0x21b   : > { %v1339_v55 = vsel %vm1294_vm2, %v1337_v41, %v1338_v44  ;;  %v1399_v13 = vsel %vm1294_vm2, %v1338_v44, 0.0  ;;  %v2007_v39 = vadd.f32 %v1975_v62, %v1939_v20  ;;  %v1669_v26 = vadd.f32 %v1637_v60, %v1601_v17  ;;  %v6070_v44 = vld [vmem:[#allocation32_spill] sm:$0xff] }
 0x21c   : > { %v2008_v4 = vadd.f32 %v1976_v47, %v1940_v18  ;;  %v1670_v50 = vadd.f32 %v1638_v21, %v1602_v53  ;;  %v1537_v32 = vadd.f32 %v6064_v29, %v1437_v8  ;;  %v1538_v46 = vadd.f32 %v6065_v24, %v1438_v11  ;;  %v3779_v8 = vld [vmem:[#allocation10 + $0x8] sm:$0xff]  }
 0x21d   : > { %v1639_v35 = vmul.f32 %v4339_v58, %v1290_v9  ;;  %v1640_v31 = vmul.f32 %v4339_v58, %v1230_v25  ;;  %v2046_v10 = vadd.f32 %v5457_v61, %v2007_v39  ;;  %v1737_v54 = vadd.f32 %v6066_v49, %v1669_v26  ;;  %3570 = vmatpush3.bf16.msra.mxu1 %v3777_v12 }
 0x21e   : > { %v2047_v6 = vadd.f32 %v5457_v61, %v2008_v4  ;;  %v1738_v51 = vadd.f32 %v6067_v33, %v1670_v50  ;;  %v1573_v17 = vmul.f32 %v4345_v1, %v1339_v55  ;;  %v1574_v53 = vmul.f32 %v4345_v1, %v1399_v13  ;;  %3571 = vmatprep.subr.bf16.mxu1 %v3778_v7  ;;  %v3780_v50 = vld [vmem:[#allocation10] sm:$0xff]  }
 0x21f   : > { %v1841_v60 = vmul.f32 %v4363_v14, %v1290_v9  ;;  %v1842_v21 = vmul.f32 %v4363_v14, %v1230_v25  ;;  %v2078_v16 = vmax.f32 %v2046_v10, 0.0  ;;  %v1805_v22 = vadd.f32 %v1773_v3, %v1737_v54 }
 0x220   : > { %v2079_v0 = vmax.f32 %v2047_v6, 0.0  ;;  %v1806_v28 = vadd.f32 %v1774_v42, %v1738_v51  ;;  %v1909_v23 = vmul.f32 %v4351_v5, %v6061_v37  ;;  %v1910_v27 = vmul.f32 %v4351_v5, %v6059_v45 }
 0x221   : > { %v6069_v40 = vrot.slane %v6068_v38, 7  ;;  %v6071_v41 = vrot.slane %v6070_v44, 7  ;;  %v1873_v11 = vadd.f32 %v1841_v60, %v1805_v22  ;;  %v1977_v18 = vmul.f32 %v5437_v48, %v1339_v55  ;;  %3572 = vmatpush3.bf16.msra.mxu1 %v3778_v7 }
 0x222   : > { %v2099_v3 = vpack.c.bf16 %v2079_v0, %v2078_v16  ;;  %v1874_v20 = vadd.f32 %v1842_v21, %v1806_v28  ;;  %v1978_v37 = vmul.f32 %v5437_v48, %v1399_v13  ;;  %v1340_v45 = vrot.slane %v6070_v44, 1  ;;  %3573 = vmatprep.subr.bf16.mxu1 %v3779_v8  ;;  %v6076_v16 = vld [vmem:[#allocation39_spill] sm:$0xff] }
 0x223   : > { %v1233_v9 = vsel %vm1185_vm1, %v6071_v41, %v6069_v40  ;;  %v6072_v25 = vmov %v6071_v41  ;;  %v1341_v62 = vrot.slane %v6068_v38, 1  ;;  %v1941_v42 = vadd.f32 %v1909_v23, %v1873_v11 }
 0x224   : > { %v1291_v12 = vsel %vm1185_vm1, 0.0, %v6072_v25  ;;  %3550 = vmatmul.mubr.bf16.gmra.mxu1 %v2099_v3  ;;  %v1942_v39 = vadd.f32 %v1910_v27, %v1874_v20  ;;  %v1440_v4 = vmul.f32 %v4337_v57, %v1233_v9  ;;  %v1671_v26 = vadd.f32 %v1639_v35, %v1603_v43  ;;  %v6073_v43 = vld [vmem:[#allocation31_spill] sm:$0xff]  ;;  %v6077_v20 = vld [vmem:[#allocation38_spill] sm:$0xff] }
 0x225   : > { %v1439_v47 = vmul.f32 %v4337_v57, %v1291_v12  ;;  %v1605_v29 = vadd.f32 %v1573_v17, %v1537_v32  ;;  %v1606_v24 = vadd.f32 %v1574_v53, %v1538_v46  ;;  %v1775_v10 = vmul.f32 %v4347_v2, %v1339_v55  ;;  %3574 = vmatpush3.bf16.msra.mxu1 %v3779_v8  ;;  %v6075_v17 = vld [vmem:[#allocation25_spill] sm:$0xff] }
 0x226   : > { %v1776_v6 = vmul.f32 %v4347_v2, %v1399_v13  ;;  %v2009_v49 = vadd.f32 %v1977_v18, %v1941_v42  ;;  %v2010_v54 = vadd.f32 %v1978_v37, %v1942_v39  ;;  %v1342_v33 = vsel %vm1294_vm2, %v1340_v45, %v1341_v62  ;;  %v6074_v13 = vld [vmem:[#allocation36_spill] sm:$0xff]  ;;  %3575 = vmatprep.subr.bf16.mxu1 %v3780_v50 }
 0x227   : > { %v1641_v7 = vmul.f32 %v4339_v58, %v1291_v12  ;;  %v1400_v51 = vsel %vm1294_vm2, %v1341_v62, 0.0  ;;  %v1642_v60 = vmul.f32 %v4339_v58, %v1233_v9  ;;  %v1672_v57 = vadd.f32 %v1640_v31, %v1604_v30 }
 0x228   : > { %v1739_v35 = vadd.f32 %v6073_v43, %v1671_v26  ;;  %v2048_v32 = vadd.f32 %v5457_v61, %v2009_v49  ;;  %v2049_v55 = vadd.f32 %v5457_v61, %v2010_v54  ;;  %v1539_v46 = vadd.f32 %v6074_v13, %v1439_v47  ;;  %v6081_v54 = vld [vmem:[#allocation34_spill] sm:$0xff]  ;;  %v6082_v43 = vld [vmem:[#allocation40_spill] sm:$0xff] }
 0x229   : > { %v1540_v53 = vadd.f32 %v6075_v17, %v1440_v4  ;;  %v1575_v21 = vmul.f32 %v4345_v1, %v1342_v33  ;;  %v1740_v0 = vadd.f32 %v6076_v16, %v1672_v57  ;;  %v1843_v28 = vmul.f32 %v4363_v14, %v1291_v12  ;;  %3576 = vmatpush3.bf16.msra.mxu1 %v3780_v50  ;;  %v6080_v50 = vld [vmem:[#allocation27_spill] sm:$0xff] }
 0x22a   : > { %v1807_v22 = vadd.f32 %v1775_v10, %v1739_v35  ;;  %v2080_v30 = vmax.f32 %v2048_v32, 0.0  ;;  %v2081_v31 = vmax.f32 %v2049_v55, 0.0  ;;  %v1576_v23 = vmul.f32 %v4345_v1, %v1400_v51  ;;  %v6083_v35 = vld [vmem:[#allocation49_spill] sm:$0xff] }
 0x22b   : > { %v1777_v27 = vmul.f32 %v4347_v2, %v1342_v33  ;;  %v1808_v40 = vadd.f32 %v1776_v6, %v1740_v0  ;;  %v1844_v41 = vmul.f32 %v4363_v14, %v1233_v9  ;;  %v1911_v8 = vmul.f32 %v4351_v5, %v6070_v44  ;;  %v6084_v0 = vld [vmem:[#allocation42_spill] sm:$0xff] }
 0x22c   : > { %v1875_v25 = vadd.f32 %v1843_v28, %v1807_v22  ;;  %v2100_v3 = vpack.c.bf16 %v2081_v31, %v2080_v30  ;;  %v1912_v11 = vmul.f32 %v4351_v5, %v6068_v38  ;;  %v1979_v12 = vmul.f32 %v5437_v48, %v1342_v33 }
 0x22d   : > { %v6078_v1 = vrot.slane %v6077_v20, 7  ;;  %v1876_v37 = vadd.f32 %v1844_v41, %v1808_v40  ;;  %v6079_v9 = vrot.slane %v6077_v20, 1  ;;  %v1673_v62 = vadd.f32 %v1641_v7, %v1605_v29 }
 0x22e   : > { %v1943_v45 = vadd.f32 %v1911_v8, %v1875_v25  ;;  %3553 = vmatprep.mubr.bf16.mxu1 %v2100_v3  ;;  %v1778_v38 = vmul.f32 %v4347_v2, %v1400_v51  ;;  %v1980_v47 = vmul.f32 %v5437_v48, %v1400_v51  ;;  %v1401_v42 = vsel %vm1294_vm2, %v1344_v15, 0.0 }
 0x22f   : > { %v1236_v18 = vsel %vm1185_vm1, %v6078_v1, %v1235_v63  ;;  %v1345_v44 = vsel %vm1294_vm2, %v6079_v9, %v1344_v15  ;;  %v1674_v39 = vadd.f32 %v1642_v60, %v1606_v24  ;;  %v1944_v63 = vadd.f32 %v1912_v11, %v1876_v37  ;;  %v6086_v1 = vld [vmem:[#allocation44_spill] sm:$0xff] }
 0x230   : > { %v2011_v4 = vadd.f32 %v1979_v12, %v1943_v45  ;;  %v1644_v26 = vmul.f32 %v4339_v58, %v1236_v18  ;;  %v1741_v10 = vadd.f32 %v6080_v50, %v1673_v62  ;;  %v1607_v6 = vadd.f32 %v1575_v21, %v1539_v46 }
 0x231   : > { %v1608_v49 = vadd.f32 %v1576_v23, %v1540_v53  ;;  %v1742_v29 = vadd.f32 %v6081_v54, %v1674_v39  ;;  %v1779_v33 = vmul.f32 %v4347_v2, %v1345_v44  ;;  %v2012_v7 = vadd.f32 %v1980_v47, %v1944_v63 }
 0x232   : > { %v2050_v51 = vadd.f32 %v5457_v61, %v2011_v4  ;;  %v1809_v57 = vadd.f32 %v1777_v27, %v1741_v10  ;;  %v1845_v15 = vmul.f32 %v4363_v14, %v6082_v43  ;;  %v1780_v24 = vmul.f32 %v4347_v2, %v1401_v42  ;;  %v5602_v10 = vld [vmem:[%s5844_s7] ss:$0 sm:$0xff] }
 0x233   : > { %v1810_v60 = vadd.f32 %v1778_v38, %v1742_v29  ;;  %v1846_v58 = vmul.f32 %v4363_v14, %v1236_v18  ;;  %v1675_v32 = vadd.f32 %v6083_v35, %v1607_v6  ;;  %v2051_v55 = vadd.f32 %v5457_v61, %v2012_v7 }
 0x234   : > { %v1877_v13 = vadd.f32 %v1845_v15, %v1809_v57  ;;  %v1913_v46 = vmul.f32 %v4351_v5, %v6077_v20  ;;  %v1676_v17 = vadd.f32 %v1644_v26, %v1608_v49  ;;  %v1914_v21 = vmul.f32 %v4351_v5, %v5267_v34 }
 0x235   : > { %v1878_v53 = vadd.f32 %v1846_v58, %v1810_v60  ;;  %v1981_v16 = vmul.f32 %v5437_v48, %v1345_v44  ;;  %v1743_v2 = vadd.f32 %v6084_v0, %v1675_v32  ;;  %v2082_v22 = vmax.f32 %v2050_v51, 0.0 }
 0x236   : > { %v2083_v28 = vmax.f32 %v2051_v55, 0.0  ;;  %v1945_v30 = vadd.f32 %v1913_v46, %v1877_v13  ;;  %v1744_v31 = vadd.f32 %v5375_v56, %v1676_v17  ;;  %v1982_v27 = vmul.f32 %v5437_v48, %v1401_v42 }
 0x237   : > { %v1946_v23 = vadd.f32 %v1914_v21, %v1878_v53  ;;  %v6085_v40 = vrot.slane %v5168_v59, 1  ;;  %v1811_v25 = vadd.f32 %v1779_v33, %v1743_v2  ;;  %v1848_v11 = vmul.f32 %v4363_v14, %v5383_v36 }
 0x238   : > { %v2101_v34 = vpack.c.bf16 %v2083_v28, %v2082_v22  ;;  %v2013_v8 = vadd.f32 %v1981_v16, %v1945_v30  ;;  %v1812_v3 = vadd.f32 %v1780_v24, %v1744_v31  ;;  %v1915_v12 = vmul.f32 %v4351_v5, %v5168_v59 }
 0x239   : > { %v1348_v41 = vsel %vm1294_vm2, %v6085_v40, %v1347_v52  ;;  %v2014_v56 = vadd.f32 %v1982_v27, %v1946_v23  ;;  %v1402_v20 = vsel %vm1294_vm2, %v1347_v52, 0.0  ;;  %v1879_v18 = vadd.f32 %v6086_v1, %v1811_v25 }
 0x23a   : > { %v1916_v37 = vmul.f32 %v4351_v5, %v5264_v19  ;;  %3554 = vmatmul.mubr.bf16.gmra.mxu1 %v2101_v34  ;;  %v2052_v45 = vadd.f32 %v5457_v61, %v2013_v8  ;;  %v1880_v9 = vadd.f32 %v1848_v11, %v1812_v3  ;;  %v1983_v36 = vmul.f32 %v5437_v48, %v1348_v41 }
 0x23b   : > { %v2053_v44 = vadd.f32 %v5457_v61, %v2014_v56  ;;  %v1947_v14 = vadd.f32 %v1915_v12, %v1879_v18  ;;  %v1984_v62 = vmul.f32 %v5437_v48, %v1402_v20 }
 0x23c   : > { %v1948_v59 = vadd.f32 %v1916_v37, %v1880_v9  ;;  %v2084_v38 = vmax.f32 %v2052_v45, 0.0 }
 0x23d   : > { %v2085_v47 = vmax.f32 %v2053_v44, 0.0  ;;  %v2015_v52 = vadd.f32 %v1983_v36, %v1947_v14 }
 0x23e   : > { %v2016_v42 = vadd.f32 %v1984_v62, %v1948_v59 }
 0x23f   : > { %v2102_v39 = vpack.c.bf16 %v2085_v47, %v2084_v38  ;;  %v2054_v63 = vadd.f32 %v5457_v61, %v2015_v52 }
 0x240   : > { %v2055_v5 = vadd.f32 %v5457_v61, %v2016_v42  ;;  %v5609_v61 = vld [vmem:[%s5845_s8] ss:$0 sm:$0xff] }
 0x241   : > { %3557 = vmatprep.mubr.bf16.mxu1 %v2102_v39  ;;  %v2086_v19 = vmax.f32 %v2054_v63, 0.0 }
 0x242   : > { %v2087_v4 = vmax.f32 %v2055_v5, 0.0 }
 0x244   : > { %v2103_v26 = vpack.c.bf16 %v2087_v4, %v2086_v19 }
 0x246   : > { %3558 = vmatmul.mubr.bf16.gmra.mxu1 %v2103_v26 }
 0x258   : > { %v3531_v50 = vpop.f32.mrf.mxu0 }
 0x259   : > { %v2338_v49 = vmul.f32 %v3531_v50, %v5602_v10 }
 0x25a   : > { %v2202_v48 = vpop.f32.mrf.mxu0 }
 0x25b   : > { %v2336_v6 = vmul.f32 %v5602_v10, %v2202_v48  ;;  %v2377_v43 = vadd.f32 %v5609_v61, %v2338_v49 }
 0x25c   : > { %v3532_v54 = vpop.f32.mrf.mxu0 }
 0x25d   : > { %v2339_v29 = vmul.f32 %v3532_v54, %v5602_v10  ;;  %v2375_v7 = vadd.f32 %v5609_v61, %v2336_v6  ;;  %v2409_v35 = vmax.f32 %v2377_v43, 0.0 }
 0x25e   : > { %v2205_v33 = vpop.f32.mrf.mxu0 }
 0x25f   : > { %v2378_v51 = vadd.f32 %v5609_v61, %v2339_v29  ;;  %v2337_v57 = vmul.f32 %v5602_v10, %v2205_v33  ;;  %v2407_v60 = vmax.f32 %v2375_v7, 0.0 }
 0x261   : > { %v2376_v15 = vadd.f32 %v5609_v61, %v2337_v57  ;;  %v2410_v24 = vmax.f32 %v2378_v51, 0.0 }
 0x263   : > { %v2408_v58 = vmax.f32 %v2376_v15, 0.0  ;;  %v2440_v55 = vpack.c.bf16 %v2410_v24, %v2409_v35 }
 0x265   : > { %v2439_v32 = vpack.c.bf16 %v2408_v58, %v2407_v60 }
 0x267   : > { %3577 = vmatprep.mubr.bf16.mxu1 %v2439_v32 }
 0x268   : > { %3578 = vmatmul.mubr.bf16.vlgmr.msra.gmra.mxu1 %v2440_v55 }
 0x27c   : > { %v3535_v13 = vpop.f32.mrf.mxu0 }
 0x27d   : > { %v2342_v53 = vmul.f32 %v3535_v13, %v5602_v10 }
 0x27e   : > { %v2218_v46 = vpop.f32.mrf.mxu0 }
 0x27f   : > { %v2340_v17 = vmul.f32 %v5602_v10, %v2218_v46  ;;  %v2381_v30 = vadd.f32 %v5609_v61, %v2342_v53 }
 0x280   : > { %v3536_v21 = vpop.f32.mrf.mxu0 }
 0x281   : > { %v2343_v16 = vmul.f32 %v3536_v21, %v5602_v10  ;;  %v2379_v2 = vadd.f32 %v5609_v61, %v2340_v17  ;;  %v2413_v41 = vmax.f32 %v2381_v30, 0.0 }
 0x282   : > { %v2221_v0 = vpop.f32.mrf.mxu0 }
 0x283   : > { %v2382_v22 = vadd.f32 %v5609_v61, %v2343_v16  ;;  %v2341_v28 = vmul.f32 %v5602_v10, %v2221_v0  ;;  %v2411_v27 = vmax.f32 %v2379_v2, 0.0 }
 0x285   : > { %v2380_v31 = vadd.f32 %v5609_v61, %v2341_v28  ;;  %v2414_v23 = vmax.f32 %v2382_v22, 0.0 }
 0x287   : > { %v2412_v40 = vmax.f32 %v2380_v31, 0.0  ;;  %v2442_v34 = vpack.c.bf16 %v2414_v23, %v2413_v41 }
 0x289   : > { %v2441_v25 = vpack.c.bf16 %v2412_v40, %v2411_v27 }
 0x28b   : > { %3581 = vmatprep.mubr.bf16.mxu1 %v2441_v25 }
 0x28c   : > { %3582 = vmatmul.mubr.bf16.gmra.mxu1 %v2442_v34 }
 0x298   : > { %v3539_v8 = vpop.f32.mrf.mxu0 }
 0x299   : > { %v2346_v12 = vmul.f32 %v3539_v8, %v5602_v10 }
 0x29a   : > { %v2234_v3 = vpop.f32.mrf.mxu0 }
 0x29b   : > { %v2344_v11 = vmul.f32 %v5602_v10, %v2234_v3  ;;  %v2385_v9 = vadd.f32 %v5609_v61, %v2346_v12 }
 0x29c   : > { %v3540_v56 = vpop.f32.mrf.mxu0 }
 0x29d   : > { %v2347_v20 = vmul.f32 %v3540_v56, %v5602_v10  ;;  %v2383_v18 = vadd.f32 %v5609_v61, %v2344_v11  ;;  %v2417_v62 = vmax.f32 %v2385_v9, 0.0 }
 0x29e   : > { %v2237_v1 = vpop.f32.mrf.mxu0 }
 0x29f   : > { %v2386_v37 = vadd.f32 %v5609_v61, %v2347_v20  ;;  %v2345_v45 = vmul.f32 %v5602_v10, %v2237_v1  ;;  %v2415_v36 = vmax.f32 %v2383_v18, 0.0 }
 0x2a1   : > { %v2384_v44 = vadd.f32 %v5609_v61, %v2345_v45  ;;  %v2418_v14 = vmax.f32 %v2386_v37, 0.0 }
 0x2a3   : > { %v2416_v59 = vmax.f32 %v2384_v44, 0.0  ;;  %v2444_v47 = vpack.c.bf16 %v2418_v14, %v2417_v62 }
 0x2a5   : > { %v2443_v38 = vpack.c.bf16 %v2416_v59, %v2415_v36 }
 0x2a7   : > { %3585 = vmatprep.mubr.bf16.mxu1 %v2443_v38 }
 0x2a8   : > { %3586 = vmatmul.mubr.bf16.gmra.mxu1 %v2444_v47 }
 0x2b5   : > { %v3543_v52 = vpop.f32.mrf.mxu0 }
 0x2b6   : > { %v2350_v63 = vmul.f32 %v3543_v52, %v5602_v10 }
 0x2b7   : > { %v2250_v42 = vpop.f32.mrf.mxu0 }
 0x2b8   : > { %v2348_v39 = vmul.f32 %v5602_v10, %v2250_v42  ;;  %v2389_v6 = vadd.f32 %v5609_v61, %v2350_v63 }
 0x2b9   : > { %v3544_v5 = vpop.f32.mrf.mxu0 }
 0x2ba   : > { %v2351_v19 = vmul.f32 %v3544_v5, %v5602_v10  ;;  %v2387_v26 = vadd.f32 %v5609_v61, %v2348_v39  ;;  %v2421_v7 = vmax.f32 %v2389_v6, 0.0 }
 0x2bb   : > { %v2253_v4 = vpop.f32.mrf.mxu0 }
 0x2bc   : > { %v2390_v50 = vadd.f32 %v5609_v61, %v2351_v19  ;;  %v2349_v48 = vmul.f32 %v5602_v10, %v2253_v4  ;;  %v2419_v29 = vmax.f32 %v2387_v26, 0.0 }
 0x2be   : > { %v2388_v49 = vadd.f32 %v5609_v61, %v2349_v48  ;;  %v2422_v54 = vmax.f32 %v2390_v50, 0.0 }
 0x2c0   : > { %v2420_v33 = vmax.f32 %v2388_v49, 0.0  ;;  %v2446_v57 = vpack.c.bf16 %v2422_v54, %v2421_v7 }
 0x2c2   : > { %v2445_v51 = vpack.c.bf16 %v2420_v33, %v2419_v29 }
 0x2c4   : > { %3589 = vmatprep.mubr.bf16.mxu1 %v2445_v51 }
 0x2c5   : > { %3590 = vmatmul.mubr.bf16.gmra.mxu1 %v2446_v57 }
 0x2cc   : > { %v3547_v43 = vpop.f32.mrf.mxu1 }
 0x2cd   : > { %v2354_v60 = vmul.f32 %v3547_v43, %v5602_v10 }
 0x2ce   : > { %v2266_v15 = vpop.f32.mrf.mxu1 }
 0x2cf   : > { %v2352_v24 = vmul.f32 %v5602_v10, %v2266_v15  ;;  %v2393_v17 = vadd.f32 %v5609_v61, %v2354_v60 }
 0x2d0   : > { %v3548_v58 = vpop.f32.mrf.mxu1 }
 0x2d1   : > { %v2355_v35 = vmul.f32 %v3548_v58, %v5602_v10  ;;  %v2391_v55 = vadd.f32 %v5609_v61, %v2352_v24  ;;  %v2425_v2 = vmax.f32 %v2393_v17, 0.0  ;;  %v5676_v17 = vld [vmem:[%s5847_s10] ss:$0 sm:$0xff] }
 0x2d2   : > { %v2269_v32 = vpop.f32.mrf.mxu1 }
 0x2d3   : > { %v2394_v13 = vadd.f32 %v5609_v61, %v2355_v35  ;;  %v2353_v46 = vmul.f32 %v5602_v10, %v2269_v32  ;;  %v2423_v16 = vmax.f32 %v2391_v55, 0.0 }
 0x2d5   : > { %v2392_v53 = vadd.f32 %v5609_v61, %v2353_v46  ;;  %v2426_v21 = vmax.f32 %v2394_v13, 0.0 }
 0x2d7   : > { %v2424_v0 = vmax.f32 %v2392_v53, 0.0  ;;  %v2448_v28 = vpack.c.bf16 %v2426_v21, %v2425_v2  ;;  %v5681_v53 = vld [vmem:[%s5848_s11] ss:$0 sm:$0xff] }
 0x2d9   : > { %v2447_v22 = vpack.c.bf16 %v2424_v0, %v2423_v16  ;;  %v3801_v16 = vld [vmem:[%s4270_s27 + $0x10] sm:$0xff]  }
 0x2da   : > { %v2760_v0 = vunpack.c.l.bf16 %v3801_v16 }
 0x2db   : > { %3593 = vmatprep.mubr.bf16.mxu1 %v2447_v22 }
 0x2dc   : > { %3594 = vmatmul.mubr.bf16.gmra.mxu1 %v2448_v28 }
 0x2e4   : > { %v3551_v30 = vpop.f32.mrf.mxu1 }
 0x2e5   : > { %v2358_v27 = vmul.f32 %v3551_v30, %v5602_v10  ;;  %v3802_v30 = vld [vmem:[%s4270_s27 + $0x8] sm:$0xff]  }
 0x2e6   : > { %v2282_v31 = vpop.f32.mrf.mxu1 }
 0x2e7   : > { %v2356_v23 = vmul.f32 %v5602_v10, %v2282_v31  ;;  %v2397_v11 = vadd.f32 %v5609_v61, %v2358_v27  ;;  %v2758_v31 = vunpack.c.l.bf16 %v3802_v30 }
 0x2e8   : > { %v3552_v40 = vpop.f32.mrf.mxu1 }
 0x2e9   : > { %v2359_v41 = vmul.f32 %v3552_v40, %v5602_v10  ;;  %v2395_v34 = vadd.f32 %v5609_v61, %v2356_v23  ;;  %v2429_v18 = vmax.f32 %v2397_v11, 0.0  ;;  %v2761_v23 = vunpack.c.h.bf16 %v3801_v16 }
 0x2ea   : > { %v2285_v25 = vpop.f32.mrf.mxu1 }
 0x2eb   : > { %v2398_v8 = vadd.f32 %v5609_v61, %v2359_v41  ;;  %v2357_v3 = vmul.f32 %v5602_v10, %v2285_v25  ;;  %v2427_v20 = vmax.f32 %v2395_v34, 0.0  ;;  %v2759_v25 = vunpack.c.h.bf16 %v3802_v30 }
 0x2ed   : > { %v2396_v12 = vadd.f32 %v5609_v61, %v2357_v3  ;;  %v2430_v56 = vmax.f32 %v2398_v8, 0.0 }
 0x2ef   : > { %v2428_v1 = vmax.f32 %v2396_v12, 0.0  ;;  %v2450_v45 = vpack.c.bf16 %v2430_v56, %v2429_v18 }
 0x2f1   : > { %v2449_v37 = vpack.c.bf16 %v2428_v1, %v2427_v20 }
 0x2f3   : > { %3597 = vmatprep.mubr.bf16.mxu1 %v2449_v37 }
 0x2f4   : > { %3598 = vmatmul.mubr.bf16.gmra.mxu1 %v2450_v45 }
 0x2fa   : > { %v3555_v9 = vpop.f32.mrf.mxu1 }
 0x2fb   : > { %v2362_v36 = vmul.f32 %v3555_v9, %v5602_v10 }
 0x2fc   : > { %v2298_v44 = vpop.f32.mrf.mxu1 }
 0x2fd   : > { %v2360_v14 = vmul.f32 %v5602_v10, %v2298_v44  ;;  %v2401_v39 = vadd.f32 %v5609_v61, %v2362_v36 }
 0x2fe   : > { %v3556_v59 = vpop.f32.mrf.mxu1 }
 0x2ff   : > { %v2363_v62 = vmul.f32 %v3556_v59, %v5602_v10  ;;  %v2399_v47 = vadd.f32 %v5609_v61, %v2360_v14  ;;  %v2433_v26 = vmax.f32 %v2401_v39, 0.0  ;;  %v3804_v39 = vld [vmem:[%s4270_s27 + $0x18] sm:$0xff]  }
 0x300   : > { %v2301_v38 = vpop.f32.mrf.mxu1 }
 0x301   : > { %v2402_v52 = vadd.f32 %v5609_v61, %v2363_v62  ;;  %v2361_v42 = vmul.f32 %v5602_v10, %v2301_v38  ;;  %v2431_v19 = vmax.f32 %v2399_v47, 0.0  ;;  %v3803_v62 = vld [vmem:[%s4270_s27 + $0x20] sm:$0xff]  }
 0x302   : > { %v2764_v38 = vunpack.c.l.bf16 %v3803_v62 }
 0x303   : > { %v2400_v63 = vadd.f32 %v5609_v61, %v2361_v42  ;;  %v2434_v5 = vmax.f32 %v2402_v52, 0.0 }
 0x305   : > { %v2432_v4 = vmax.f32 %v2400_v63, 0.0  ;;  %v2452_v49 = vpack.c.bf16 %v2434_v5, %v2433_v26  ;;  %v2762_v63 = vunpack.c.l.bf16 %v3804_v39  ;;  %v2765_v5 = vunpack.c.h.bf16 %v3803_v62 }
 0x306   : > { %v3559_v50 = vpop.f32.mrf.mxu1 }
 0x307   : > { %v2451_v48 = vpack.c.bf16 %v2432_v4, %v2431_v19  ;;  %v2366_v29 = vmul.f32 %v3559_v50, %v5602_v10  ;;  %v2763_v50 = vunpack.c.h.bf16 %v3804_v39 }
 0x308   : > { %v2314_v6 = vpop.f32.mrf.mxu1 }
 0x309   : > { %v2364_v54 = vmul.f32 %v5602_v10, %v2314_v6  ;;  %3601 = vmatprep.mubr.bf16.mxu1 %v2451_v48  ;;  %v2405_v24 = vadd.f32 %v5609_v61, %v2366_v29 }
 0x30a   : > { %v3560_v33 = vpop.f32.mrf.mxu1  ;;  %3602 = vmatmul.mubr.bf16.gmra.mxu1 %v2452_v49 }
 0x30b   : > { %v2367_v7 = vmul.f32 %v3560_v33, %v5602_v10  ;;  %v2403_v57 = vadd.f32 %v5609_v61, %v2364_v54  ;;  %v2437_v55 = vmax.f32 %v2405_v24, 0.0 }
 0x30c   : > { %v2317_v51 = vpop.f32.mrf.mxu1 }
 0x30d   : > { %v2406_v43 = vadd.f32 %v5609_v61, %v2367_v7  ;;  %v2365_v15 = vmul.f32 %v5602_v10, %v2317_v51  ;;  %v2435_v35 = vmax.f32 %v2403_v57, 0.0 }
 0x30f   : > { %v2404_v60 = vadd.f32 %v5609_v61, %v2365_v15  ;;  %v2438_v58 = vmax.f32 %v2406_v43, 0.0 }
 0x311   : > { %v2436_v32 = vmax.f32 %v2404_v60, 0.0  ;;  %v2454_v46 = vpack.c.bf16 %v2438_v58, %v2437_v55  ;;  %v3805_v55 = vld [vmem:[%s4270_s27 + $0x30] sm:$0xff]  }
 0x313   : > { %v2453_v13 = vpack.c.bf16 %v2436_v32, %v2435_v35 }
 0x315   : > { %3605 = vmatprep.mubr.bf16.mxu1 %v2453_v13  ;;  %v2768_v13 = vunpack.c.l.bf16 %v3805_v55 }
 0x316   : > { %3606 = vmatmul.mubr.bf16.gmra.mxu1 %v2454_v46 }
 0x328   : > { %v3579_v10 = vpop.f32.mrf.mxu1 }
 0x329   : > { %v2689_v61 = vmul.f32 %v3579_v10, %v5676_v17 }
 0x32a   : > { %v2553_v21 = vpop.f32.mrf.mxu1 }
 0x32b   : > { %v2728_v2 = vadd.f32 %v5681_v53, %v2689_v61  ;;  %v2687_v22 = vmul.f32 %v5676_v17, %v2553_v21  ;;  %v3806_v21 = vld [vmem:[%s4270_s27 + $0x28] sm:$0xff]  }
 0x32c   : > { %v3580_v28 = vpop.f32.mrf.mxu1  ;;  %v2766_v16 = vunpack.c.l.bf16 %v3806_v21  ;;  %v2767_v30 = vunpack.c.h.bf16 %v3806_v21 }
 0x32d   : > { %v2726_v27 = vadd.f32 %v5681_v53, %v2687_v22  ;;  %v2690_v40 = vmul.f32 %v3580_v28, %v5676_v17  ;;  %v2792_v34 = vadd.f32 %v2760_v0, %v2728_v2  ;;  %v2769_v0 = vunpack.c.h.bf16 %v3805_v55 }
 0x32e   : > { %v2556_v41 = vpop.f32.mrf.mxu1 }
 0x32f   : > { %v2729_v8 = vadd.f32 %v5681_v53, %v2690_v40  ;;  %v2688_v3 = vmul.f32 %v5676_v17, %v2556_v41  ;;  %v2790_v11 = vadd.f32 %v2758_v31, %v2726_v27  ;;  %v2824_v20 = vmax.f32 %v2792_v34, 0.0 }
 0x331   : > { %v2793_v12 = vadd.f32 %v2761_v23, %v2729_v8  ;;  %v2727_v56 = vadd.f32 %v5681_v53, %v2688_v3  ;;  %v2822_v37 = vmax.f32 %v2790_v11, 0.0 }
 0x333   : > { %v2825_v1 = vmax.f32 %v2793_v12, 0.0  ;;  %v2791_v18 = vadd.f32 %v2759_v25, %v2727_v56 }
 0x335   : > { %v3300_v45 = vpack.c.bf16 %v2825_v1, %v2824_v20  ;;  %v2823_v9 = vmax.f32 %v2791_v18, 0.0 }
 0x337   : > { %3372 = vst [vmem:[%s5694_s15 + $0x8] sm:$0xff] %v3300_v45   ;;  %v3295_v44 = vpack.c.bf16 %v2823_v9, %v2822_v37  ;;  %v3807_v45 = vld [vmem:[%s4270_s27 + $0x40] sm:$0xff]  }
 0x338   : > { %v2772_v9 = vunpack.c.l.bf16 %v3807_v45 }
 0x339   : > { %3296 = vst [vmem:[%s5694_s15] sm:$0xff] %v3295_v44  }
 0x34c   : > { %v3583_v14 = vpop.f32.mrf.mxu1 }
 0x34d   : > { %v2693_v36 = vmul.f32 %v3583_v14, %v5676_v17 }
 0x34e   : > { %v2569_v59 = vpop.f32.mrf.mxu1 }
 0x34f   : > { %v2732_v47 = vadd.f32 %v5681_v53, %v2693_v36  ;;  %v2691_v52 = vmul.f32 %v5676_v17, %v2569_v59  ;;  %v3808_v59 = vld [vmem:[%s4270_s27 + $0x38] sm:$0xff]  }
 0x350   : > { %v3584_v42 = vpop.f32.mrf.mxu1  ;;  %v2770_v62 = vunpack.c.l.bf16 %v3808_v59  ;;  %v2771_v39 = vunpack.c.h.bf16 %v3808_v59 }
 0x351   : > { %v2730_v19 = vadd.f32 %v5681_v53, %v2691_v52  ;;  %v2694_v4 = vmul.f32 %v3584_v42, %v5676_v17  ;;  %v2796_v48 = vadd.f32 %v2764_v38, %v2732_v47  ;;  %v2773_v38 = vunpack.c.h.bf16 %v3807_v45 }
 0x352   : > { %v2572_v26 = vpop.f32.mrf.mxu1 }
 0x353   : > { %v2733_v6 = vadd.f32 %v5681_v53, %v2694_v4  ;;  %v2692_v49 = vmul.f32 %v5676_v17, %v2572_v26  ;;  %v2794_v54 = vadd.f32 %v2762_v63, %v2730_v19  ;;  %v2828_v7 = vmax.f32 %v2796_v48, 0.0 }
 0x355   : > { %v2797_v29 = vadd.f32 %v2765_v5, %v2733_v6  ;;  %v2731_v33 = vadd.f32 %v5681_v53, %v2692_v49  ;;  %v2826_v43 = vmax.f32 %v2794_v54, 0.0 }
 0x357   : > { %v2829_v51 = vmax.f32 %v2797_v29, 0.0  ;;  %v2795_v57 = vadd.f32 %v2763_v50, %v2731_v33 }
 0x359   : > { %v3310_v15 = vpack.c.bf16 %v2829_v51, %v2828_v7  ;;  %v2827_v24 = vmax.f32 %v2795_v57, 0.0 }
 0x35b   : > { %3374 = vst [vmem:[%s5694_s15 + $0x18] sm:$0xff] %v3310_v15   ;;  %v3305_v60 = vpack.c.bf16 %v2827_v24, %v2826_v43  ;;  %v3809_v15 = vld [vmem:[%s4270_s27 + $0x50] sm:$0xff]  }
 0x35c   : > { %v2776_v24 = vunpack.c.l.bf16 %v3809_v15 }
 0x35d   : > { %3373 = vst [vmem:[%s5694_s15 + $0x10] sm:$0xff] %v3305_v60  }
 0x368   : > { %v3587_v58 = vpop.f32.mrf.mxu1 }
 0x369   : > { %v2697_v35 = vmul.f32 %v3587_v58, %v5676_v17 }
 0x36a   : > { %v2585_v32 = vpop.f32.mrf.mxu1 }
 0x36b   : > { %v2736_v46 = vadd.f32 %v5681_v53, %v2697_v35  ;;  %v2695_v10 = vmul.f32 %v5676_v17, %v2585_v32  ;;  %v3810_v32 = vld [vmem:[%s4270_s27 + $0x48] sm:$0xff]  }
 0x36c   : > { %v3588_v61 = vpop.f32.mrf.mxu1  ;;  %v2774_v55 = vunpack.c.l.bf16 %v3810_v32  ;;  %v2775_v21 = vunpack.c.h.bf16 %v3810_v32 }
 0x36d   : > { %v2734_v2 = vadd.f32 %v5681_v53, %v2695_v10  ;;  %v2698_v22 = vmul.f32 %v3588_v61, %v5676_v17  ;;  %v2800_v31 = vadd.f32 %v2768_v13, %v2736_v46  ;;  %v2777_v13 = vunpack.c.h.bf16 %v3809_v15 }
 0x36e   : > { %v2588_v28 = vpop.f32.mrf.mxu1 }
 0x36f   : > { %v2737_v23 = vadd.f32 %v5681_v53, %v2698_v22  ;;  %v2696_v27 = vmul.f32 %v5676_v17, %v2588_v28  ;;  %v2798_v40 = vadd.f32 %v2766_v16, %v2734_v2  ;;  %v2832_v34 = vmax.f32 %v2800_v31, 0.0 }
 0x371   : > { %v2801_v41 = vadd.f32 %v2769_v0, %v2737_v23  ;;  %v2735_v25 = vadd.f32 %v5681_v53, %v2696_v27  ;;  %v2830_v11 = vmax.f32 %v2798_v40, 0.0 }
 0x373   : > { %v2833_v8 = vmax.f32 %v2801_v41, 0.0  ;;  %v2799_v3 = vadd.f32 %v2767_v30, %v2735_v25 }
 0x375   : > { %v3320_v12 = vpack.c.bf16 %v2833_v8, %v2832_v34  ;;  %v2831_v56 = vmax.f32 %v2799_v3, 0.0 }
 0x377   : > { %3376 = vst [vmem:[%s5694_s15 + $0x28] sm:$0xff] %v3320_v12   ;;  %v3315_v20 = vpack.c.bf16 %v2831_v56, %v2830_v11  ;;  %v3811_v12 = vld [vmem:[%s4270_s27 + $0x60] sm:$0xff]  }
 0x378   : > { %v2780_v56 = vunpack.c.l.bf16 %v3811_v12 }
 0x379   : > { %3375 = vst [vmem:[%s5694_s15 + $0x20] sm:$0xff] %v3315_v20  }
 0x385   : > { %v3591_v1 = vpop.f32.mrf.mxu1 }
 0x386   : > { %v2701_v18 = vmul.f32 %v3591_v1, %v5676_v17 }
 0x387   : > { %v2601_v37 = vpop.f32.mrf.mxu1 }
 0x388   : > { %v2740_v44 = vadd.f32 %v5681_v53, %v2701_v18  ;;  %v2699_v14 = vmul.f32 %v5676_v17, %v2601_v37  ;;  %v3812_v37 = vld [vmem:[%s4270_s27 + $0x58] sm:$0xff]  }
 0x389   : > { %v3592_v36 = vpop.f32.mrf.mxu1  ;;  %v2778_v45 = vunpack.c.l.bf16 %v3812_v37  ;;  %v2779_v59 = vunpack.c.h.bf16 %v3812_v37 }
 0x38a   : > { %v2738_v47 = vadd.f32 %v5681_v53, %v2699_v14  ;;  %v2702_v52 = vmul.f32 %v3592_v36, %v5676_v17  ;;  %v2804_v63 = vadd.f32 %v2772_v9, %v2740_v44  ;;  %v2781_v9 = vunpack.c.h.bf16 %v3811_v12 }
 0x38b   : > { %v2604_v42 = vpop.f32.mrf.mxu1 }
 0x38c   : > { %v2741_v5 = vadd.f32 %v5681_v53, %v2702_v52  ;;  %v2700_v19 = vmul.f32 %v5676_v17, %v2604_v42  ;;  %v2802_v4 = vadd.f32 %v2770_v62, %v2738_v47  ;;  %v2836_v48 = vmax.f32 %v2804_v63, 0.0 }
 0x38e   : > { %v2805_v26 = vadd.f32 %v2773_v38, %v2741_v5  ;;  %v2739_v50 = vadd.f32 %v5681_v53, %v2700_v19  ;;  %v2834_v54 = vmax.f32 %v2802_v4, 0.0 }
 0x390   : > { %v2837_v6 = vmax.f32 %v2805_v26, 0.0  ;;  %v2803_v49 = vadd.f32 %v2771_v39, %v2739_v50 }
 0x392   : > { %v3330_v29 = vpack.c.bf16 %v2837_v6, %v2836_v48  ;;  %v2835_v33 = vmax.f32 %v2803_v49, 0.0 }
 0x394   : > { %3378 = vst [vmem:[%s5694_s15 + $0x38] sm:$0xff] %v3330_v29   ;;  %v3325_v7 = vpack.c.bf16 %v2835_v33, %v2834_v54  ;;  %v3813_v29 = vld [vmem:[%s4270_s27 + $0x70] sm:$0xff]  }
 0x395   : > { %v2784_v33 = vunpack.c.l.bf16 %v3813_v29 }
 0x396   : > { %3377 = vst [vmem:[%s5694_s15 + $0x30] sm:$0xff] %v3325_v7  }
 0x39c   : > { %v3595_v51 = vpop.f32.mrf.mxu1 }
 0x39d   : > { %v2705_v57 = vmul.f32 %v3595_v51, %v5676_v17 }
 0x39e   : > { %v2617_v43 = vpop.f32.mrf.mxu1 }
 0x39f   : > { %v2744_v60 = vadd.f32 %v5681_v53, %v2705_v57  ;;  %v2703_v58 = vmul.f32 %v5676_v17, %v2617_v43  ;;  %v3814_v43 = vld [vmem:[%s4270_s27 + $0x68] sm:$0xff]  }
 0x3a0   : > { %v3596_v35 = vpop.f32.mrf.mxu1  ;;  %v2782_v15 = vunpack.c.l.bf16 %v3814_v43  ;;  %v2783_v32 = vunpack.c.h.bf16 %v3814_v43 }
 0x3a1   : > { %v2742_v46 = vadd.f32 %v5681_v53, %v2703_v58  ;;  %v2706_v10 = vmul.f32 %v3596_v35, %v5676_v17  ;;  %v2808_v16 = vadd.f32 %v2776_v24, %v2744_v60  ;;  %v2785_v24 = vunpack.c.h.bf16 %v3813_v29 }
 0x3a2   : > { %v2620_v61 = vpop.f32.mrf.mxu1 }
 0x3a3   : > { %v2745_v0 = vadd.f32 %v5681_v53, %v2706_v10  ;;  %v2704_v2 = vmul.f32 %v5676_v17, %v2620_v61  ;;  %v2806_v22 = vadd.f32 %v2774_v55, %v2742_v46  ;;  %v2840_v31 = vmax.f32 %v2808_v16, 0.0 }
 0x3a5   : > { %v2809_v28 = vadd.f32 %v2777_v13, %v2745_v0  ;;  %v2743_v30 = vadd.f32 %v5681_v53, %v2704_v2  ;;  %v2838_v40 = vmax.f32 %v2806_v22, 0.0 }
 0x3a7   : > { %v2841_v23 = vmax.f32 %v2809_v28, 0.0  ;;  %v2807_v27 = vadd.f32 %v2775_v21, %v2743_v30 }
 0x3a9   : > { %v3340_v41 = vpack.c.bf16 %v2841_v23, %v2840_v31  ;;  %v2839_v25 = vmax.f32 %v2807_v27, 0.0 }
 0x3ab   : > { %3380 = vst [vmem:[%s5694_s15 + $0x48] sm:$0xff] %v3340_v41   ;;  %v3335_v34 = vpack.c.bf16 %v2839_v25, %v2838_v40  ;;  %v3815_v40 = vld [vmem:[%s4270_s27 + $0x80] sm:$0xff]  }
 0x3ac   : > { %v2788_v41 = vunpack.c.l.bf16 %v3815_v40 }
 0x3ad   : > { %3379 = vst [vmem:[%s5694_s15 + $0x40] sm:$0xff] %v3335_v34  }
 0x3b4   : > { %v3599_v8 = vpop.f32.mrf.mxu1 }
 0x3b5   : > { %v2709_v3 = vmul.f32 %v3599_v8, %v5676_v17 }
 0x3b6   : > { %v2633_v11 = vpop.f32.mrf.mxu1 }
 0x3b7   : > { %v2748_v20 = vadd.f32 %v5681_v53, %v2709_v3  ;;  %v2707_v1 = vmul.f32 %v5676_v17, %v2633_v11  ;;  %v3816_v11 = vld [vmem:[%s4270_s27 + $0x78] sm:$0xff]   ;;  %s3291_s27 = sshll.u32 %s6087_s21, 11 }
 0x3b8   : > { %v3600_v18 = vpop.f32.mrf.mxu1  ;;  %v2786_v12 = vunpack.c.l.bf16 %v3816_v11  ;;  %v2787_v37 = vunpack.c.h.bf16 %v3816_v11  ;;  %s5785_s24 = scalar_lea.hbm %s6088_s30, %s3291_s27 }
 0x3b9   : > { %v2746_v44 = vadd.f32 %v5681_v53, %v2707_v1  ;;  %v2710_v14 = vmul.f32 %v3600_v18, %v5676_v17  ;;  %v2812_v62 = vadd.f32 %v2780_v56, %v2748_v20  ;;  %v2789_v56 = vunpack.c.h.bf16 %v3815_v40 }
 0x3ba   : > { %v2636_v36 = vpop.f32.mrf.mxu1 }
 0x3bb   : > { %v2749_v38 = vadd.f32 %v5681_v53, %v2710_v14  ;;  %v2708_v47 = vmul.f32 %v5676_v17, %v2636_v36  ;;  %v2810_v52 = vadd.f32 %v2778_v45, %v2746_v44  ;;  %v2844_v63 = vmax.f32 %v2812_v62, 0.0 }
 0x3bd   : > { %v2813_v42 = vadd.f32 %v2781_v9, %v2749_v38  ;;  %v2747_v39 = vadd.f32 %v5681_v53, %v2708_v47  ;;  %v2842_v4 = vmax.f32 %v2810_v52, 0.0 }
 0x3bf   : > { %v2845_v5 = vmax.f32 %v2813_v42, 0.0  ;;  %v2811_v19 = vadd.f32 %v2779_v59, %v2747_v39 }
 0x3c1   : > { %v3350_v26 = vpack.c.bf16 %v2845_v5, %v2844_v63  ;;  %v2843_v50 = vmax.f32 %v2811_v19, 0.0 }
 0x3c3   : > { %3382 = vst [vmem:[%s5694_s15 + $0x58] sm:$0xff] %v3350_v26   ;;  %v3345_v48 = vpack.c.bf16 %v2843_v50, %v2842_v4 }
 0x3c5   : > { %3381 = vst [vmem:[%s5694_s15 + $0x50] sm:$0xff] %v3345_v48  }
 0x3ca   : > { %v3603_v6 = vpop.f32.mrf.mxu1 }
 0x3cb   : > { %v2713_v49 = vmul.f32 %v3603_v6, %v5676_v17 }
 0x3cc   : > { %v2649_v54 = vpop.f32.mrf.mxu1 }
 0x3cd   : > { %v2752_v7 = vadd.f32 %v5681_v53, %v2713_v49  ;;  %v2711_v51 = vmul.f32 %v5676_v17, %v2649_v54 }
 0x3ce   : > { %v3604_v57 = vpop.f32.mrf.mxu1 }
 0x3cf   : > { %v2750_v60 = vadd.f32 %v5681_v53, %v2711_v51  ;;  %v2714_v58 = vmul.f32 %v3604_v57, %v5676_v17  ;;  %v2816_v55 = vadd.f32 %v2784_v33, %v2752_v7 }
 0x3d0   : > { %v2652_v35 = vpop.f32.mrf.mxu1 }
 0x3d1   : > { %v2753_v13 = vadd.f32 %v5681_v53, %v2714_v58  ;;  %v2712_v46 = vmul.f32 %v5676_v17, %v2652_v35  ;;  %v2814_v10 = vadd.f32 %v2782_v15, %v2750_v60  ;;  %v2848_v16 = vmax.f32 %v2816_v55, 0.0 }
 0x3d3   : > { %v2817_v61 = vadd.f32 %v2785_v24, %v2753_v13  ;;  %v2751_v21 = vadd.f32 %v5681_v53, %v2712_v46  ;;  %v2846_v28 = vmax.f32 %v2814_v10, 0.0 }
 0x3d5   : > { %v2849_v0 = vmax.f32 %v2817_v61, 0.0  ;;  %v2815_v2 = vadd.f32 %v2783_v32, %v2751_v21 }
 0x3d6   : > { %v3607_v22 = vpop.f32.mrf.mxu1 }
 0x3d7   : > { %v3360_v30 = vpack.c.bf16 %v2849_v0, %v2848_v16  ;;  %v2847_v31 = vmax.f32 %v2815_v2, 0.0  ;;  %v2717_v23 = vmul.f32 %v3607_v22, %v5676_v17 }
 0x3d8   : > { %v2665_v27 = vpop.f32.mrf.mxu1 }
 0x3d9   : > { %3384 = vst [vmem:[%s5694_s15 + $0x68] sm:$0xff] %v3360_v30   ;;  %v3355_v25 = vpack.c.bf16 %v2847_v31, %v2846_v28  ;;  %v2756_v34 = vadd.f32 %v5681_v53, %v2717_v23  ;;  %v2715_v8 = vmul.f32 %v5676_v17, %v2665_v27 }
 0x3da   : > { %v3608_v3 = vpop.f32.mrf.mxu1 }
 0x3db   : > { %3383 = vst [vmem:[%s5694_s15 + $0x60] sm:$0xff] %v3355_v25   ;;  %v2754_v20 = vadd.f32 %v5681_v53, %v2715_v8  ;;  %v2718_v1 = vmul.f32 %v3608_v3, %v5676_v17  ;;  %v2820_v45 = vadd.f32 %v2788_v41, %v2756_v34 }
 0x3dc   : > { %v2668_v18 = vpop.f32.mrf.mxu1 }
 0x3dd   : > { %v2757_v9 = vadd.f32 %v5681_v53, %v2718_v1  ;;  %v2716_v44 = vmul.f32 %v5676_v17, %v2668_v18  ;;  %v2818_v14 = vadd.f32 %v2786_v12, %v2754_v20  ;;  %v2852_v62 = vmax.f32 %v2820_v45, 0.0 }
 0x3df   : > { %v2821_v36 = vadd.f32 %v2789_v56, %v2757_v9  ;;  %v2755_v59 = vadd.f32 %v5681_v53, %v2716_v44  ;;  %v2850_v52 = vmax.f32 %v2818_v14, 0.0 }
 0x3e1   : > { %v2853_v38 = vmax.f32 %v2821_v36, 0.0  ;;  %v2819_v47 = vadd.f32 %v2787_v37, %v2755_v59 }
 0x3e3   : > { %v3370_v42 = vpack.c.bf16 %v2853_v38, %v2852_v62  ;;  %v2851_v39 = vmax.f32 %v2819_v47, 0.0 }
 0x3e5   : > { %3386 = vst [vmem:[%s5694_s15 + $0x78] sm:$0xff] %v3370_v42   ;;  %v3365_v17 = vpack.c.bf16 %v2851_v39, %v2850_v52 }
 0x3e7   : > { %3385 = vst [vmem:[%s5694_s15 + $0x70] sm:$0xff] %v3365_v17  }
 0x3e8   : > { %3962 = shalt.err (!%p3959_p5)
}
 0x3e9   : > { %s3963_s6 = scalar_lea.hbm %s5785_s24, 2048  ;;  %s3967_s13 = scalar_lea.hbm %s6088_s30, 4096 }
 0x3ea   : > { %p3964_p10 = scmp.ne.s32.totalorder %s5785_s24, %s3963_s6  ;;  %p3968_p6 = scmp.lt.s32.totalorder %s5785_s24, %s6088_s30 }
 0x3eb   : > { %p3969_p9 = scmp.lt.s32.totalorder %s3967_s13, %s3963_s6 }
 0x3ec   : > { %p3965_p12 = pnand %p3964_p10, %p4238_p0 }
 0x3ed   : > { %p3970_p13 = por %p3969_p9, %p3968_p6 }
 0x3ee   : > { %p3966_p7 = pneg %p3965_p12 }
 0x3f0   : > { %p3971_p1 = pnand %p3970_p13, %p3966_p7 }
 0x3f2   : > { %3974 = shalt.err (!%p3971_p1)
}
 0x3f3   : > { %s4051_s27 = smov 64   ;;  %s4052_s14 = smov 4  }
 0x3f4   : > { %3646 = dma.vmem_to_hbm [thread:$0]  (%p4238_p0), %s5787_s20, 2048, %s5785_s24, %s3015_s18, %s4051_s27, %s4051_s27, %s4052_s14  }
 0x3f5 PF: > { %s6089_s12 = sld [smem:[#allocation16_spill]] }
 0x3f6   : > { %s6090_s4 = sld [smem:[#allocation19_spill]] }
 0x3f7   : > { %s6091_s26 = sld [smem:[#allocation18_spill]] }
 0x3fb   : > { %s3046_s16 = sand.u32 1, %s6089_s12  }
 0x3fc   : > { %p6092_p4 = scmp.ne.s32.totalorder %s6090_s4, 0  ;;  %s3047_s1 = scalar_lea.sflag [#allocation4], %s3046_s16 }
 0x3fd   : > { %p6093_p8 = scmp.ge.s32.totalorder %s6091_s26, 2 }
 0x3ff   : > { %p3666_p3 = pnand %p6093_p8, %p6092_p4 }
 0x401   : > { %p3667_p11 = pneg %p3666_p3 }
 0x403   : > { %4012 = dma.done.wait (%p3667_p11), %s3047_s1, 2048  }
 0x404   : > { %4014 = vsyncadd (%p3667_p11), %s3047_s1, 4294965248  ;;  %s30_s26 = sadd.s32 1, %s6091_s26   ;;  %s6094_s17 = sld [smem:[#allocation20_spill]] }
 0x405   : > { %p27_p2 = scmp.ge.s32.totalorder %s30_s26, 4   ;;  %s6095_s21 = smov %s4021_s22 }
 0x406   : > { %s6096_s22 = smov %s4025_s23  ;;  %s6097_s23 = smov %s4250_s28 }
 0x407   : > { %s6098_s24 = smov %s4033_s25  ;;  %29 = sbr.rel (!%p27_p2) target bundleno = 14 (0xe), region = 130 }
 0x40a   : > { %s6099_s25 = smov %s6094_s17 }
 0x40c   :  { %3052 = vsyncpa [#allocation3], 1 }
 0x40d   :  { %3054 = vsyncpa [#allocation3 + $0x1], 1 }
 0x40e   :  { %3055 = vsyncpa [#allocation6], 1 }
 0x40f   :  { %3056 = vsyncpa [#allocation9], 1 }
 0x410   :  { %3057 = vsyncpa [#allocation4], 1 }
 0x411   :  { %3059 = vsyncpa [#allocation4 + $0x1], 1 }

</bundles_post_ra>
